<compile_context>
chip_gen: v7x
topology: tpu7x:2x2x1
jax: 0.10.0
libtpu: 0.0.40
codegen_flags: <defaults>
</compile_context>

<pallas_src>
import functools

import jax
import jax.numpy as jnp
import numpy as np
from jax.experimental import pallas as pl
from jax.experimental.pallas import tpu as pltpu


def _round_up(x, m):
    return ((x + m - 1) // m) * m


def _make_outconv_kernel(*, Cin, Cin_p, Cout_p, D, H, W, K, TD, M, L,
                         has_halo, cdtype):
    HW = H * W
    TDHW = TD * HW
    pad = K // 2

    def kernel(*refs):
        if has_halo:
            x_ref, xp_ref, xn_ref, w_ref, b_ref, o_ref, xh_ref, slab_ref = refs
        else:
            x_ref, w_ref, b_ref, o_ref, xh_ref, slab_ref = refs
            xp_ref = xn_ref = None

        db = pl.program_id(1)
        d0 = db * TD                          # global D offset of this tile

        # ---- Stage the activation tile channel-major & spatially flat with a
        #      one-slice D halo on each side:
        #        xh[c, M + j*HW + hw] = x[c, d0 - 1 + j, hw],  j = 0 .. TD+1
        if Cin_p > Cin:
            # Padded channel rows flow through the matmul (times zero weights)
            # so they must never hold NaN/Inf -> memset them (a few KiB/step).
            xh_ref[Cin:Cin_p, :] = jnp.zeros((Cin_p - Cin, L), cdtype)
        xh_ref[0:Cin, M + HW:M + HW + TDHW] = x_ref[0]
        if has_halo:
            xh_ref[0:Cin, M:M + HW] = xp_ref[0]
            xh_ref[0:Cin, M + (TD + 1) * HW:M + (TD + 2) * HW] = xn_ref[0]

        # ---- Per-lane spatial positions for boundary masking (in-kernel iota;
        #      all tests are direct compares on lane / lane%HW / lane%W).
        lane = jax.lax.broadcasted_iota(jnp.int32, (1, TDHW), 1)
        hw_rem = lane % HW                    # h*W + w
        w_rem = lane % W                      # w

        # ---- im2col: 27 masked shifted copies into the slab (VPU/vst filler
        #      under the DMA/MXU-bound loop), then ONE large-contraction matmul.
        t = 0
        for kd in range(K):
            for kh in range(K):
                for kw in range(K):
                    dd, dh, dw = kd - pad, kh - pad, kw - pad
                    off = M + HW + dd * HW + dh * W + dw      # static lane offset
                    patch = xh_ref[0:Cin_p, off:off + TDHW]
                    conds = []
                    if dd < 0:
                        conds.append(lane >= (-dd - d0) * HW)
                    if dd > 0:
                        conds.append(lane < (D - dd - d0) * HW)
                    if dh < 0:
                        conds.append(hw_rem >= (-dh) * W)
                    if dh > 0:
                        conds.append(hw_rem < (H - dh) * W)
                    if dw < 0:
                        conds.append(w_rem >= -dw)
                    if dw > 0:
                        conds.append(w_rem < W - dw)
                    if conds:
                        mask = functools.reduce(jnp.logical_and, conds)
                        # select (not multiply): garbage in unwritten margins /
                        # halo slots can never leak through as mask*NaN.
                        patch = jnp.where(mask, patch, jnp.zeros_like(patch))
                    slab_ref[t * Cin_p:(t + 1) * Cin_p, :] = patch
                    t += 1

        acc = jnp.dot(w_ref[...], slab_ref[...],
                      preferred_element_type=jnp.float32)
        o_ref[0] = acc + b_ref[...]

    return kernel


def outconv_forward(x, w, b, *, d_tile=None, compute_dtype=jnp.bfloat16,
                    vmem_budget_bytes=40 * 2 ** 20):
    """3-D conv, kernel 3, stride 1, padding 1 (== OutConv forward).

    x: (N, Cin, D, H, W); w: (Cout, Cin, 3, 3, 3); b: (Cout,)
    returns (N, Cout, D, H, W) float32.
    """
    N, Cin, D, H, W = x.shape
    Cout, Cin_w, K, Kh, Kw = w.shape
    assert Cin_w == Cin and K == Kh == Kw == 3
    pad = K // 2
    HW, DHW, K3 = H * W, D * H * W, K ** 3
    Cin_p, Cout_p = _round_up(Cin, 8), _round_up(Cout, 8)
    KC = K3 * Cin_p
    itemsize = jnp.dtype(compute_dtype).itemsize
    M = _round_up(W + 1, 128)                 # lane margin >= max in-plane shift

    def footprint(td):                        # approx per-step VMEM bytes
        tdhw = td * HW
        return ((2 * Cin * tdhw + 4 * Cin * HW) * itemsize        # x tile + halos (2x buf)
                + 2 * Cout_p * tdhw * 4                           # f32 out tile (2x buf)
                + Cin_p * (2 * M + (td + 2 * pad) * HW) * itemsize  # halo scratch
                + KC * tdhw * itemsize                            # im2col slab
                + 2 * (Cout_p * KC * itemsize + Cout_p * 4))      # weights + bias

    if d_tile is None:
        # Largest divisor of D whose footprint fits the (v7x-safe) budget.
        # D-tiling needs H*W % 128 == 0 for lane-aligned halo / output blocks.
        d_tile = D
        for td in sorted((t for t in range(1, D + 1) if D % t == 0), reverse=True):
            if td != D and HW % 128 != 0:
                continue
            d_tile = td
            if footprint(td) <= vmem_budget_bytes:
                break
    TD = d_tile
    assert D % TD == 0, "d_tile must divide D"
    assert TD == D or HW % 128 == 0, "D-tiling requires H*W % 128 == 0"
    n_db = D // TD
    TDHW = TD * HW
    L = 2 * M + (TD + 2 * pad) * HW
    has_halo = n_db > 1

    # Activations: zero-copy reshape to (N, Cin, DHW) + bf16 cast (halves DMA).
    x2 = x.reshape(N, Cin, DHW).astype(compute_dtype)

    # Weights: (Cout, Cin, kd, kh, kw) -> (Cout_p, 27*Cin_p), tap-major columns;
    # zero padding along Cin_p / Cout_p keeps padded rows/cols inert.
    wt = jnp.transpose(w, (0, 2, 3, 4, 1)).reshape(Cout, K3, Cin)
    wt = jnp.pad(wt, ((0, Cout_p - Cout), (0, 0), (0, Cin_p - Cin)))
    wt = wt.reshape(Cout_p, KC).astype(compute_dtype)
    bb = jnp.pad(b.astype(jnp.float32), (0, Cout_p - Cout)).reshape(Cout_p, 1)

    kernel = _make_outconv_kernel(
        Cin=Cin, Cin_p=Cin_p, Cout_p=Cout_p, D=D, H=H, W=W, K=K,
        TD=TD, M=M, L=L, has_halo=has_halo, cdtype=compute_dtype)

    in_specs = [pl.BlockSpec((1, Cin, TDHW), lambda n, db: (n, 0, db))]
    inputs = [x2]
    if has_halo:
        in_specs += [
            pl.BlockSpec((1, Cin, HW),
                         lambda n, db: (n, 0, jnp.maximum(db * TD - 1, 0))),
            pl.BlockSpec((1, Cin, HW),
                         lambda n, db: (n, 0, jnp.minimum(db * TD + TD, D - 1))),
        ]
        inputs += [x2, x2]
    in_specs += [pl.BlockSpec((Cout_p, KC), lambda n, db: (0, 0)),
                 pl.BlockSpec((Cout_p, 1), lambda n, db: (0, 0))]
    inputs += [wt, bb]

    cost = pl.CostEstimate(
        flops=2 * N * Cout * Cin * K3 * DHW,
        transcendentals=0,
        bytes_accessed=(x2.size * itemsize + wt.size * itemsize
                        + bb.size * 4 + N * Cout_p * DHW * 4))

    vmem_limit = int(min(64 * 2 ** 20, max(32 * 2 ** 20, 2 * footprint(TD))))

    out_p = pl.pallas_call(
        kernel,
        out_shape=jax.ShapeDtypeStruct((N, Cout_p, DHW), jnp.float32),
        grid=(N, n_db),
        in_specs=in_specs,
        out_specs=pl.BlockSpec((1, Cout_p, TDHW), lambda n, db: (n, 0, db)),
        scratch_shapes=[pltpu.VMEM((Cin_p, L), compute_dtype),
                        pltpu.VMEM((KC, TDHW), compute_dtype)],
        compiler_params=pltpu.CompilerParams(
            dimension_semantics=("parallel", "parallel"),
            vmem_limit_bytes=vmem_limit),
        cost_estimate=cost,
    )(*inputs)

    # Un-pad Cout and restore (N, Cout, D, H, W).
    return out_p[:, :Cout, :].reshape(N, Cout, D, H, W)


if __name__ == "__main__":
    key = jax.random.PRNGKey(0)
    kx, kwt, kb = jax.random.split(key, 3)

    # Small shapes for Conv3d(in_channels=4, out_channels=3, k=3, pad=1).
    # H*W = 128 (lane-aligned); d_tile=4 exercises the D-tiling + halo path.
    N, Cin, Cout, D, H, W = 2, 4, 3, 8, 8, 16
    x = jax.random.normal(kx, (N, Cin, D, H, W), dtype=jnp.float32)
    fan_in = Cin * 3 * 3 * 3
    weight = jax.random.normal(kwt, (Cout, Cin, 3, 3, 3),
                               dtype=jnp.float32) / np.sqrt(fan_in)
    bias = 0.1 * jax.random.normal(kb, (Cout,), dtype=jnp.float32)

    out = jax.block_until_ready(outconv_forward(x, weight, bias, d_tile=4))

    # Pure-JAX reference on the same bf16-rounded inputs (kernel computes in
    # bf16 with f32 accumulation); structural bugs (wrong neighbor / mask /
    # weight indexing) give O(1) errors, accumulation order gives ~1e-6.
    xq = x.astype(jnp.bfloat16).astype(jnp.float32)
    wq = weight.astype(jnp.bfloat16).astype(jnp.float32)
    ref = jax.lax.conv_general_dilated(
        xq, wq,
        window_strides=(1, 1, 1),
        padding=((1, 1), (1, 1), (1, 1)),
        dimension_numbers=("NCDHW", "OIDHW", "NCDHW"),
        precision=jax.lax.Precision.HIGHEST,
    ) + bias.reshape(1, Cout, 1, 1, 1)

    np.testing.assert_allclose(np.asarray(out), np.asarray(ref),
                               rtol=2e-3, atol=2e-3)
    print("KERNEL_OK")
</pallas_src>

<mosaic_0001>
module attributes {stable_mosaic.version = 11 : i64} {
  func.func @kernel(%arg0: i32, %arg1: i32, %arg2: memref<1x4x512xbf16, #tpu.memory_space<vmem>>, %arg3: memref<1x4x128xbf16, #tpu.memory_space<vmem>>, %arg4: memref<1x4x128xbf16, #tpu.memory_space<vmem>>, %arg5: memref<8x216xbf16, #tpu.memory_space<vmem>>, %arg6: memref<8x1xf32, #tpu.memory_space<vmem>>, %arg7: memref<1x8x512xf32, #tpu.memory_space<vmem>>, %arg8: memref<8x1024xbf16, #tpu.memory_space<vmem>>, %arg9: memref<216x512xbf16, #tpu.memory_space<vmem>>) attributes {dimension_semantics = [#tpu.dimension_semantics<parallel>, #tpu.dimension_semantics<parallel>], iteration_bounds = array<i64: 2, 2>, scalar_prefetch = 0 : i64, scratch_operands = 2 : i64, tpu.core_type = #tpu.core_type<tc>, window_params = [{transform_indices = @transform_0, window_bounds = array<i64: 1, 4, 512>}, {transform_indices = @transform_1, window_bounds = array<i64: 1, 4, 128>}, {transform_indices = @transform_2, window_bounds = array<i64: 1, 4, 128>}, {pipeline_mode = #tpu.pipeline_mode<synchronous>, transform_indices = @transform_3, window_bounds = array<i64: 8, 216>}, {pipeline_mode = #tpu.pipeline_mode<synchronous>, transform_indices = @transform_4, window_bounds = array<i64: 8, 1>}, {transform_indices = @transform_5, window_bounds = array<i64: 1, 8, 512>}]} {
    %c4_i32 = arith.constant 4 : i32
    %0 = arith.muli %arg1, %c4_i32 : i32
    %cst = arith.constant 0.000000e+00 : bf16
    %1 = vector.broadcast %cst : bf16 to vector<4x1024xbf16>
    %c4 = arith.constant 4 : index
    %c0 = arith.constant 0 : index
    %2 = vector.load %arg8[%c4, %c0] : memref<8x1024xbf16, #tpu.memory_space<vmem>>, vector<4x1024xbf16>
    tpu.vector_store %arg8[%c4, %c0], %1 {strides = array<i32>} : memref<8x1024xbf16, #tpu.memory_space<vmem>>, vector<4x1024xbf16>,
    %c0_0 = arith.constant 0 : index
    %c0_1 = arith.constant 0 : index
    %c0_2 = arith.constant 0 : index
    %3 = vector.load %arg2[%c0_0, %c0_1, %c0_2] : memref<1x4x512xbf16, #tpu.memory_space<vmem>>, vector<1x4x512xbf16>
    %4 = vector.shape_cast %3 : vector<1x4x512xbf16> to vector<4x512xbf16>
    %c0_3 = arith.constant 0 : index
    %c256 = arith.constant 256 : index
    %5 = vector.load %arg8[%c0_3, %c256] : memref<8x1024xbf16, #tpu.memory_space<vmem>>, vector<4x512xbf16>
    tpu.vector_store %arg8[%c0_3, %c256], %4 {strides = array<i32>} : memref<8x1024xbf16, #tpu.memory_space<vmem>>, vector<4x512xbf16>,
    %c0_4 = arith.constant 0 : index
    %c0_5 = arith.constant 0 : index
    %c0_6 = arith.constant 0 : index
    %6 = vector.load %arg3[%c0_4, %c0_5, %c0_6] : memref<1x4x128xbf16, #tpu.memory_space<vmem>>, vector<1x4x128xbf16>
    %7 = vector.shape_cast %6 : vector<1x4x128xbf16> to vector<4x128xbf16>
    %c0_7 = arith.constant 0 : index
    %c128 = arith.constant 128 : index
    %8 = vector.load %arg8[%c0_7, %c128] : memref<8x1024xbf16, #tpu.memory_space<vmem>>, vector<4x128xbf16>
    tpu.vector_store %arg8[%c0_7, %c128], %7 {strides = array<i32>} : memref<8x1024xbf16, #tpu.memory_space<vmem>>, vector<4x128xbf16>,
    %c0_8 = arith.constant 0 : index
    %c0_9 = arith.constant 0 : index
    %c0_10 = arith.constant 0 : index
    %9 = vector.load %arg4[%c0_8, %c0_9, %c0_10] : memref<1x4x128xbf16, #tpu.memory_space<vmem>>, vector<1x4x128xbf16>
    %10 = vector.shape_cast %9 : vector<1x4x128xbf16> to vector<4x128xbf16>
    %c0_11 = arith.constant 0 : index
    %c768 = arith.constant 768 : index
    %11 = vector.load %arg8[%c0_11, %c768] : memref<8x1024xbf16, #tpu.memory_space<vmem>>, vector<4x128xbf16>
    tpu.vector_store %arg8[%c0_11, %c768], %10 {strides = array<i32>} : memref<8x1024xbf16, #tpu.memory_space<vmem>>, vector<4x128xbf16>,
    %12 = tpu.iota {dimensions = array<i32: 1>} : vector<1x512xi32>
    %c128_i32 = arith.constant 128 : i32
    %c0_i32 = arith.constant 0 : i32
    %13 = arith.cmpi eq, %c128_i32, %c0_i32 : i32
    %c1_i32 = arith.constant 1 : i32
    %14 = arith.select %13, %c1_i32, %c128_i32 : i32
    %15 = vector.broadcast %14 : i32 to vector<1x512xi32>
    %16 = arith.remsi %12, %15 : vector<1x512xi32>
    %c0_i32_12 = arith.constant 0 : i32
    %17 = vector.broadcast %c0_i32_12 : i32 to vector<1x512xi32>
    %18 = arith.cmpi ne, %16, %17 : vector<1x512xi32>
    %c0_i32_13 = arith.constant 0 : i32
    %19 = vector.broadcast %c0_i32_13 : i32 to vector<1x512xi32>
    %20 = arith.cmpi slt, %16, %19 : vector<1x512xi32>
    %c0_i32_14 = arith.constant 0 : i32
    %21 = arith.cmpi slt, %14, %c0_i32_14 : i32
    %22 = vector.broadcast %21 : i1 to vector<1x512xi1>
    %23 = vector.broadcast %22 : vector<1x512xi1> to vector<1x512xi1>
    %24 = arith.xori %20, %23 : vector<1x512xi1>
    %25 = arith.andi %24, %18 : vector<1x512xi1>
    %26 = vector.broadcast %14 : i32 to vector<1x512xi32>
    %27 = arith.addi %16, %26 : vector<1x512xi32>
    %28 = arith.select %25, %27, %16 : vector<1x512xi1>, vector<1x512xi32>
    %c16_i32 = arith.constant 16 : i32
    %c0_i32_15 = arith.constant 0 : i32
    %29 = arith.cmpi eq, %c16_i32, %c0_i32_15 : i32
    %c1_i32_16 = arith.constant 1 : i32
    %30 = arith.select %29, %c1_i32_16, %c16_i32 : i32
    %31 = vector.broadcast %30 : i32 to vector<1x512xi32>
    %32 = arith.remsi %12, %31 : vector<1x512xi32>
    %c0_i32_17 = arith.constant 0 : i32
    %33 = vector.broadcast %c0_i32_17 : i32 to vector<1x512xi32>
    %34 = arith.cmpi ne, %32, %33 : vector<1x512xi32>
    %c0_i32_18 = arith.constant 0 : i32
    %35 = vector.broadcast %c0_i32_18 : i32 to vector<1x512xi32>
    %36 = arith.cmpi slt, %32, %35 : vector<1x512xi32>
    %c0_i32_19 = arith.constant 0 : i32
    %37 = arith.cmpi slt, %30, %c0_i32_19 : i32
    %38 = vector.broadcast %37 : i1 to vector<1x512xi1>
    %39 = vector.broadcast %38 : vector<1x512xi1> to vector<1x512xi1>
    %40 = arith.xori %36, %39 : vector<1x512xi1>
    %41 = arith.andi %40, %34 : vector<1x512xi1>
    %42 = vector.broadcast %30 : i32 to vector<1x512xi32>
    %43 = arith.addi %32, %42 : vector<1x512xi32>
    %44 = arith.select %41, %43, %32 : vector<1x512xi1>, vector<1x512xi32>
    %c0_20 = arith.constant 0 : index
    %c111 = arith.constant 111 : index
    %45 = vector.load %arg8[%c0_20, %c111] : memref<8x1024xbf16, #tpu.memory_space<vmem>>, vector<8x512xbf16>
    %c1_i32_21 = arith.constant 1 : i32
    %46 = arith.subi %c1_i32_21, %0 : i32
    %c128_i32_22 = arith.constant 128 : i32
    %47 = arith.muli %46, %c128_i32_22 : i32
    %48 = vector.broadcast %47 : i32 to vector<1x512xi32>
    %49 = arith.cmpi sge, %12, %48 : vector<1x512xi32>
    %c16_i32_23 = arith.constant 16 : i32
    %50 = vector.broadcast %c16_i32_23 : i32 to vector<1x512xi32>
    %51 = arith.cmpi sge, %28, %50 : vector<1x512xi32>
    %c1_i32_24 = arith.constant 1 : i32
    %52 = vector.broadcast %c1_i32_24 : i32 to vector<1x512xi32>
    %53 = arith.cmpi sge, %44, %52 : vector<1x512xi32>
    %54 = arith.andi %49, %51 : vector<1x512xi1>
    %55 = arith.andi %54, %53 : vector<1x512xi1>
    %cst_25 = arith.constant 0.000000e+00 : bf16
    %56 = vector.broadcast %cst_25 : bf16 to vector<8x512xbf16>
    %57 = vector.shape_cast %55 : vector<1x512xi1> to vector<1x512xi1>
    %58 = vector.broadcast %57 : vector<1x512xi1> to vector<8x512xi1>
    %59 = arith.select %58, %45, %56 : vector<8x512xi1>, vector<8x512xbf16>
    %c0_26 = arith.constant 0 : index
    %c0_27 = arith.constant 0 : index
    %60 = vector.load %arg9[%c0_26, %c0_27] : memref<216x512xbf16, #tpu.memory_space<vmem>>, vector<8x512xbf16>
    tpu.vector_store %arg9[%c0_26, %c0_27], %59 {strides = array<i32>} : memref<216x512xbf16, #tpu.memory_space<vmem>>, vector<8x512xbf16>,
    %c0_28 = arith.constant 0 : index
    %c112 = arith.constant 112 : index
    %61 = vector.load %arg8[%c0_28, %c112] : memref<8x1024xbf16, #tpu.memory_space<vmem>>, vector<8x512xbf16>
    %c1_i32_29 = arith.constant 1 : i32
    %62 = arith.subi %c1_i32_29, %0 : i32
    %c128_i32_30 = arith.constant 128 : i32
    %63 = arith.muli %62, %c128_i32_30 : i32
    %64 = vector.broadcast %63 : i32 to vector<1x512xi32>
    %65 = arith.cmpi sge, %12, %64 : vector<1x512xi32>
    %c16_i32_31 = arith.constant 16 : i32
    %66 = vector.broadcast %c16_i32_31 : i32 to vector<1x512xi32>
    %67 = arith.cmpi sge, %28, %66 : vector<1x512xi32>
    %68 = arith.andi %65, %67 : vector<1x512xi1>
    %cst_32 = arith.constant 0.000000e+00 : bf16
    %69 = vector.broadcast %cst_32 : bf16 to vector<8x512xbf16>
    %70 = vector.shape_cast %68 : vector<1x512xi1> to vector<1x512xi1>
    %71 = vector.broadcast %70 : vector<1x512xi1> to vector<8x512xi1>
    %72 = arith.select %71, %61, %69 : vector<8x512xi1>, vector<8x512xbf16>
    %c8 = arith.constant 8 : index
    %c0_33 = arith.constant 0 : index
    %73 = vector.load %arg9[%c8, %c0_33] : memref<216x512xbf16, #tpu.memory_space<vmem>>, vector<8x512xbf16>
    tpu.vector_store %arg9[%c8, %c0_33], %72 {strides = array<i32>} : memref<216x512xbf16, #tpu.memory_space<vmem>>, vector<8x512xbf16>,
    %c0_34 = arith.constant 0 : index
    %c113 = arith.constant 113 : index
    %74 = vector.load %arg8[%c0_34, %c113] : memref<8x1024xbf16, #tpu.memory_space<vmem>>, vector<8x512xbf16>
    %c1_i32_35 = arith.constant 1 : i32
    %75 = arith.subi %c1_i32_35, %0 : i32
    %c128_i32_36 = arith.constant 128 : i32
    %76 = arith.muli %75, %c128_i32_36 : i32
    %77 = vector.broadcast %76 : i32 to vector<1x512xi32>
    %78 = arith.cmpi sge, %12, %77 : vector<1x512xi32>
    %c16_i32_37 = arith.constant 16 : i32
    %79 = vector.broadcast %c16_i32_37 : i32 to vector<1x512xi32>
    %80 = arith.cmpi sge, %28, %79 : vector<1x512xi32>
    %c15_i32 = arith.constant 15 : i32
    %81 = vector.broadcast %c15_i32 : i32 to vector<1x512xi32>
    %82 = arith.cmpi slt, %44, %81 : vector<1x512xi32>
    %83 = arith.andi %78, %80 : vector<1x512xi1>
    %84 = arith.andi %83, %82 : vector<1x512xi1>
    %cst_38 = arith.constant 0.000000e+00 : bf16
    %85 = vector.broadcast %cst_38 : bf16 to vector<8x512xbf16>
    %86 = vector.shape_cast %84 : vector<1x512xi1> to vector<1x512xi1>
    %87 = vector.broadcast %86 : vector<1x512xi1> to vector<8x512xi1>
    %88 = arith.select %87, %74, %85 : vector<8x512xi1>, vector<8x512xbf16>
    %c16 = arith.constant 16 : index
    %c0_39 = arith.constant 0 : index
    %89 = vector.load %arg9[%c16, %c0_39] : memref<216x512xbf16, #tpu.memory_space<vmem>>, vector<8x512xbf16>
    tpu.vector_store %arg9[%c16, %c0_39], %88 {strides = array<i32>} : memref<216x512xbf16, #tpu.memory_space<vmem>>, vector<8x512xbf16>,
    %c0_40 = arith.constant 0 : index
    %c127 = arith.constant 127 : index
    %90 = vector.load %arg8[%c0_40, %c127] : memref<8x1024xbf16, #tpu.memory_space<vmem>>, vector<8x512xbf16>
    %c1_i32_41 = arith.constant 1 : i32
    %91 = arith.subi %c1_i32_41, %0 : i32
    %c128_i32_42 = arith.constant 128 : i32
    %92 = arith.muli %91, %c128_i32_42 : i32
    %93 = vector.broadcast %92 : i32 to vector<1x512xi32>
    %94 = arith.cmpi sge, %12, %93 : vector<1x512xi32>
    %c1_i32_43 = arith.constant 1 : i32
    %95 = vector.broadcast %c1_i32_43 : i32 to vector<1x512xi32>
    %96 = arith.cmpi sge, %44, %95 : vector<1x512xi32>
    %97 = arith.andi %94, %96 : vector<1x512xi1>
    %cst_44 = arith.constant 0.000000e+00 : bf16
    %98 = vector.broadcast %cst_44 : bf16 to vector<8x512xbf16>
    %99 = vector.shape_cast %97 : vector<1x512xi1> to vector<1x512xi1>
    %100 = vector.broadcast %99 : vector<1x512xi1> to vector<8x512xi1>
    %101 = arith.select %100, %90, %98 : vector<8x512xi1>, vector<8x512xbf16>
    %c24 = arith.constant 24 : index
    %c0_45 = arith.constant 0 : index
    %102 = vector.load %arg9[%c24, %c0_45] : memref<216x512xbf16, #tpu.memory_space<vmem>>, vector<8x512xbf16>
    tpu.vector_store %arg9[%c24, %c0_45], %101 {strides = array<i32>} : memref<216x512xbf16, #tpu.memory_space<vmem>>, vector<8x512xbf16>,
    %c0_46 = arith.constant 0 : index
    %c128_47 = arith.constant 128 : index
    %103 = vector.load %arg8[%c0_46, %c128_47] : memref<8x1024xbf16, #tpu.memory_space<vmem>>, vector<8x512xbf16>
    %c1_i32_48 = arith.constant 1 : i32
    %104 = arith.subi %c1_i32_48, %0 : i32
    %c128_i32_49 = arith.constant 128 : i32
    %105 = arith.muli %104, %c128_i32_49 : i32
    %106 = vector.broadcast %105 : i32 to vector<1x512xi32>
    %107 = arith.cmpi sge, %12, %106 : vector<1x512xi32>
    %cst_50 = arith.constant 0.000000e+00 : bf16
    %108 = vector.broadcast %cst_50 : bf16 to vector<8x512xbf16>
    %109 = vector.shape_cast %107 : vector<1x512xi1> to vector<1x512xi1>
    %110 = vector.broadcast %109 : vector<1x512xi1> to vector<8x512xi1>
    %111 = arith.select %110, %103, %108 : vector<8x512xi1>, vector<8x512xbf16>
    %c32 = arith.constant 32 : index
    %c0_51 = arith.constant 0 : index
    %112 = vector.load %arg9[%c32, %c0_51] : memref<216x512xbf16, #tpu.memory_space<vmem>>, vector<8x512xbf16>
    tpu.vector_store %arg9[%c32, %c0_51], %111 {strides = array<i32>} : memref<216x512xbf16, #tpu.memory_space<vmem>>, vector<8x512xbf16>,
    %c0_52 = arith.constant 0 : index
    %c129 = arith.constant 129 : index
    %113 = vector.load %arg8[%c0_52, %c129] : memref<8x1024xbf16, #tpu.memory_space<vmem>>, vector<8x512xbf16>
    %c1_i32_53 = arith.constant 1 : i32
    %114 = arith.subi %c1_i32_53, %0 : i32
    %c128_i32_54 = arith.constant 128 : i32
    %115 = arith.muli %114, %c128_i32_54 : i32
    %116 = vector.broadcast %115 : i32 to vector<1x512xi32>
    %117 = arith.cmpi sge, %12, %116 : vector<1x512xi32>
    %c15_i32_55 = arith.constant 15 : i32
    %118 = vector.broadcast %c15_i32_55 : i32 to vector<1x512xi32>
    %119 = arith.cmpi slt, %44, %118 : vector<1x512xi32>
    %120 = arith.andi %117, %119 : vector<1x512xi1>
    %cst_56 = arith.constant 0.000000e+00 : bf16
    %121 = vector.broadcast %cst_56 : bf16 to vector<8x512xbf16>
    %122 = vector.shape_cast %120 : vector<1x512xi1> to vector<1x512xi1>
    %123 = vector.broadcast %122 : vector<1x512xi1> to vector<8x512xi1>
    %124 = arith.select %123, %113, %121 : vector<8x512xi1>, vector<8x512xbf16>
    %c40 = arith.constant 40 : index
    %c0_57 = arith.constant 0 : index
    %125 = vector.load %arg9[%c40, %c0_57] : memref<216x512xbf16, #tpu.memory_space<vmem>>, vector<8x512xbf16>
    tpu.vector_store %arg9[%c40, %c0_57], %124 {strides = array<i32>} : memref<216x512xbf16, #tpu.memory_space<vmem>>, vector<8x512xbf16>,
    %c0_58 = arith.constant 0 : index
    %c143 = arith.constant 143 : index
    %126 = vector.load %arg8[%c0_58, %c143] : memref<8x1024xbf16, #tpu.memory_space<vmem>>, vector<8x512xbf16>
    %c1_i32_59 = arith.constant 1 : i32
    %127 = arith.subi %c1_i32_59, %0 : i32
    %c128_i32_60 = arith.constant 128 : i32
    %128 = arith.muli %127, %c128_i32_60 : i32
    %129 = vector.broadcast %128 : i32 to vector<1x512xi32>
    %130 = arith.cmpi sge, %12, %129 : vector<1x512xi32>
    %c112_i32 = arith.constant 112 : i32
    %131 = vector.broadcast %c112_i32 : i32 to vector<1x512xi32>
    %132 = arith.cmpi slt, %28, %131 : vector<1x512xi32>
    %c1_i32_61 = arith.constant 1 : i32
    %133 = vector.broadcast %c1_i32_61 : i32 to vector<1x512xi32>
    %134 = arith.cmpi sge, %44, %133 : vector<1x512xi32>
    %135 = arith.andi %130, %132 : vector<1x512xi1>
    %136 = arith.andi %135, %134 : vector<1x512xi1>
    %cst_62 = arith.constant 0.000000e+00 : bf16
    %137 = vector.broadcast %cst_62 : bf16 to vector<8x512xbf16>
    %138 = vector.shape_cast %136 : vector<1x512xi1> to vector<1x512xi1>
    %139 = vector.broadcast %138 : vector<1x512xi1> to vector<8x512xi1>
    %140 = arith.select %139, %126, %137 : vector<8x512xi1>, vector<8x512xbf16>
    %c48 = arith.constant 48 : index
    %c0_63 = arith.constant 0 : index
    %141 = vector.load %arg9[%c48, %c0_63] : memref<216x512xbf16, #tpu.memory_space<vmem>>, vector<8x512xbf16>
    tpu.vector_store %arg9[%c48, %c0_63], %140 {strides = array<i32>} : memref<216x512xbf16, #tpu.memory_space<vmem>>, vector<8x512xbf16>,
    %c0_64 = arith.constant 0 : index
    %c144 = arith.constant 144 : index
    %142 = vector.load %arg8[%c0_64, %c144] : memref<8x1024xbf16, #tpu.memory_space<vmem>>, vector<8x512xbf16>
    %c1_i32_65 = arith.constant 1 : i32
    %143 = arith.subi %c1_i32_65, %0 : i32
    %c128_i32_66 = arith.constant 128 : i32
    %144 = arith.muli %143, %c128_i32_66 : i32
    %145 = vector.broadcast %144 : i32 to vector<1x512xi32>
    %146 = arith.cmpi sge, %12, %145 : vector<1x512xi32>
    %c112_i32_67 = arith.constant 112 : i32
    %147 = vector.broadcast %c112_i32_67 : i32 to vector<1x512xi32>
    %148 = arith.cmpi slt, %28, %147 : vector<1x512xi32>
    %149 = arith.andi %146, %148 : vector<1x512xi1>
    %cst_68 = arith.constant 0.000000e+00 : bf16
    %150 = vector.broadcast %cst_68 : bf16 to vector<8x512xbf16>
    %151 = vector.shape_cast %149 : vector<1x512xi1> to vector<1x512xi1>
    %152 = vector.broadcast %151 : vector<1x512xi1> to vector<8x512xi1>
    %153 = arith.select %152, %142, %150 : vector<8x512xi1>, vector<8x512xbf16>
    %c56 = arith.constant 56 : index
    %c0_69 = arith.constant 0 : index
    %154 = vector.load %arg9[%c56, %c0_69] : memref<216x512xbf16, #tpu.memory_space<vmem>>, vector<8x512xbf16>
    tpu.vector_store %arg9[%c56, %c0_69], %153 {strides = array<i32>} : memref<216x512xbf16, #tpu.memory_space<vmem>>, vector<8x512xbf16>,
    %c0_70 = arith.constant 0 : index
    %c145 = arith.constant 145 : index
    %155 = vector.load %arg8[%c0_70, %c145] : memref<8x1024xbf16, #tpu.memory_space<vmem>>, vector<8x512xbf16>
    %c1_i32_71 = arith.constant 1 : i32
    %156 = arith.subi %c1_i32_71, %0 : i32
    %c128_i32_72 = arith.constant 128 : i32
    %157 = arith.muli %156, %c128_i32_72 : i32
    %158 = vector.broadcast %157 : i32 to vector<1x512xi32>
    %159 = arith.cmpi sge, %12, %158 : vector<1x512xi32>
    %c112_i32_73 = arith.constant 112 : i32
    %160 = vector.broadcast %c112_i32_73 : i32 to vector<1x512xi32>
    %161 = arith.cmpi slt, %28, %160 : vector<1x512xi32>
    %c15_i32_74 = arith.constant 15 : i32
    %162 = vector.broadcast %c15_i32_74 : i32 to vector<1x512xi32>
    %163 = arith.cmpi slt, %44, %162 : vector<1x512xi32>
    %164 = arith.andi %159, %161 : vector<1x512xi1>
    %165 = arith.andi %164, %163 : vector<1x512xi1>
    %cst_75 = arith.constant 0.000000e+00 : bf16
    %166 = vector.broadcast %cst_75 : bf16 to vector<8x512xbf16>
    %167 = vector.shape_cast %165 : vector<1x512xi1> to vector<1x512xi1>
    %168 = vector.broadcast %167 : vector<1x512xi1> to vector<8x512xi1>
    %169 = arith.select %168, %155, %166 : vector<8x512xi1>, vector<8x512xbf16>
    %c64 = arith.constant 64 : index
    %c0_76 = arith.constant 0 : index
    %170 = vector.load %arg9[%c64, %c0_76] : memref<216x512xbf16, #tpu.memory_space<vmem>>, vector<8x512xbf16>
    tpu.vector_store %arg9[%c64, %c0_76], %169 {strides = array<i32>} : memref<216x512xbf16, #tpu.memory_space<vmem>>, vector<8x512xbf16>,
    %c0_77 = arith.constant 0 : index
    %c239 = arith.constant 239 : index
    %171 = vector.load %arg8[%c0_77, %c239] : memref<8x1024xbf16, #tpu.memory_space<vmem>>, vector<8x512xbf16>
    %c16_i32_78 = arith.constant 16 : i32
    %172 = vector.broadcast %c16_i32_78 : i32 to vector<1x512xi32>
    %173 = arith.cmpi sge, %28, %172 : vector<1x512xi32>
    %c1_i32_79 = arith.constant 1 : i32
    %174 = vector.broadcast %c1_i32_79 : i32 to vector<1x512xi32>
    %175 = arith.cmpi sge, %44, %174 : vector<1x512xi32>
    %176 = arith.andi %173, %175 : vector<1x512xi1>
    %cst_80 = arith.constant 0.000000e+00 : bf16
    %177 = vector.broadcast %cst_80 : bf16 to vector<8x512xbf16>
    %178 = vector.shape_cast %176 : vector<1x512xi1> to vector<1x512xi1>
    %179 = vector.broadcast %178 : vector<1x512xi1> to vector<8x512xi1>
    %180 = arith.select %179, %171, %177 : vector<8x512xi1>, vector<8x512xbf16>
    %c72 = arith.constant 72 : index
    %c0_81 = arith.constant 0 : index
    %181 = vector.load %arg9[%c72, %c0_81] : memref<216x512xbf16, #tpu.memory_space<vmem>>, vector<8x512xbf16>
    tpu.vector_store %arg9[%c72, %c0_81], %180 {strides = array<i32>} : memref<216x512xbf16, #tpu.memory_space<vmem>>, vector<8x512xbf16>,
    %c0_82 = arith.constant 0 : index
    %c240 = arith.constant 240 : index
    %182 = vector.load %arg8[%c0_82, %c240] : memref<8x1024xbf16, #tpu.memory_space<vmem>>, vector<8x512xbf16>
    %c16_i32_83 = arith.constant 16 : i32
    %183 = vector.broadcast %c16_i32_83 : i32 to vector<1x512xi32>
    %184 = arith.cmpi sge, %28, %183 : vector<1x512xi32>
    %cst_84 = arith.constant 0.000000e+00 : bf16
    %185 = vector.broadcast %cst_84 : bf16 to vector<8x512xbf16>
    %186 = vector.shape_cast %184 : vector<1x512xi1> to vector<1x512xi1>
    %187 = vector.broadcast %186 : vector<1x512xi1> to vector<8x512xi1>
    %188 = arith.select %187, %182, %185 : vector<8x512xi1>, vector<8x512xbf16>
    %c80 = arith.constant 80 : index
    %c0_85 = arith.constant 0 : index
    %189 = vector.load %arg9[%c80, %c0_85] : memref<216x512xbf16, #tpu.memory_space<vmem>>, vector<8x512xbf16>
    tpu.vector_store %arg9[%c80, %c0_85], %188 {strides = array<i32>} : memref<216x512xbf16, #tpu.memory_space<vmem>>, vector<8x512xbf16>,
    %c0_86 = arith.constant 0 : index
    %c241 = arith.constant 241 : index
    %190 = vector.load %arg8[%c0_86, %c241] : memref<8x1024xbf16, #tpu.memory_space<vmem>>, vector<8x512xbf16>
    %c16_i32_87 = arith.constant 16 : i32
    %191 = vector.broadcast %c16_i32_87 : i32 to vector<1x512xi32>
    %192 = arith.cmpi sge, %28, %191 : vector<1x512xi32>
    %c15_i32_88 = arith.constant 15 : i32
    %193 = vector.broadcast %c15_i32_88 : i32 to vector<1x512xi32>
    %194 = arith.cmpi slt, %44, %193 : vector<1x512xi32>
    %195 = arith.andi %192, %194 : vector<1x512xi1>
    %cst_89 = arith.constant 0.000000e+00 : bf16
    %196 = vector.broadcast %cst_89 : bf16 to vector<8x512xbf16>
    %197 = vector.shape_cast %195 : vector<1x512xi1> to vector<1x512xi1>
    %198 = vector.broadcast %197 : vector<1x512xi1> to vector<8x512xi1>
    %199 = arith.select %198, %190, %196 : vector<8x512xi1>, vector<8x512xbf16>
    %c88 = arith.constant 88 : index
    %c0_90 = arith.constant 0 : index
    %200 = vector.load %arg9[%c88, %c0_90] : memref<216x512xbf16, #tpu.memory_space<vmem>>, vector<8x512xbf16>
    tpu.vector_store %arg9[%c88, %c0_90], %199 {strides = array<i32>} : memref<216x512xbf16, #tpu.memory_space<vmem>>, vector<8x512xbf16>,
    %c0_91 = arith.constant 0 : index
    %c255 = arith.constant 255 : index
    %201 = vector.load %arg8[%c0_91, %c255] : memref<8x1024xbf16, #tpu.memory_space<vmem>>, vector<8x512xbf16>
    %c1_i32_92 = arith.constant 1 : i32
    %202 = vector.broadcast %c1_i32_92 : i32 to vector<1x512xi32>
    %203 = arith.cmpi sge, %44, %202 : vector<1x512xi32>
    %cst_93 = arith.constant 0.000000e+00 : bf16
    %204 = vector.broadcast %cst_93 : bf16 to vector<8x512xbf16>
    %205 = vector.shape_cast %203 : vector<1x512xi1> to vector<1x512xi1>
    %206 = vector.broadcast %205 : vector<1x512xi1> to vector<8x512xi1>
    %207 = arith.select %206, %201, %204 : vector<8x512xi1>, vector<8x512xbf16>
    %c96 = arith.constant 96 : index
    %c0_94 = arith.constant 0 : index
    %208 = vector.load %arg9[%c96, %c0_94] : memref<216x512xbf16, #tpu.memory_space<vmem>>, vector<8x512xbf16>
    tpu.vector_store %arg9[%c96, %c0_94], %207 {strides = array<i32>} : memref<216x512xbf16, #tpu.memory_space<vmem>>, vector<8x512xbf16>,
    %c0_95 = arith.constant 0 : index
    %c256_96 = arith.constant 256 : index
    %209 = vector.load %arg8[%c0_95, %c256_96] : memref<8x1024xbf16, #tpu.memory_space<vmem>>, vector<8x512xbf16>
    %c104 = arith.constant 104 : index
    %c0_97 = arith.constant 0 : index
    %210 = vector.load %arg9[%c104, %c0_97] : memref<216x512xbf16, #tpu.memory_space<vmem>>, vector<8x512xbf16>
    tpu.vector_store %arg9[%c104, %c0_97], %209 {strides = array<i32>} : memref<216x512xbf16, #tpu.memory_space<vmem>>, vector<8x512xbf16>,
    %c0_98 = arith.constant 0 : index
    %c257 = arith.constant 257 : index
    %211 = vector.load %arg8[%c0_98, %c257] : memref<8x1024xbf16, #tpu.memory_space<vmem>>, vector<8x512xbf16>
    %c15_i32_99 = arith.constant 15 : i32
    %212 = vector.broadcast %c15_i32_99 : i32 to vector<1x512xi32>
    %213 = arith.cmpi slt, %44, %212 : vector<1x512xi32>
    %cst_100 = arith.constant 0.000000e+00 : bf16
    %214 = vector.broadcast %cst_100 : bf16 to vector<8x512xbf16>
    %215 = vector.shape_cast %213 : vector<1x512xi1> to vector<1x512xi1>
    %216 = vector.broadcast %215 : vector<1x512xi1> to vector<8x512xi1>
    %217 = arith.select %216, %211, %214 : vector<8x512xi1>, vector<8x512xbf16>
    %c112_101 = arith.constant 112 : index
    %c0_102 = arith.constant 0 : index
    %218 = vector.load %arg9[%c112_101, %c0_102] : memref<216x512xbf16, #tpu.memory_space<vmem>>, vector<8x512xbf16>
    tpu.vector_store %arg9[%c112_101, %c0_102], %217 {strides = array<i32>} : memref<216x512xbf16, #tpu.memory_space<vmem>>, vector<8x512xbf16>,
    %c0_103 = arith.constant 0 : index
    %c271 = arith.constant 271 : index
    %219 = vector.load %arg8[%c0_103, %c271] : memref<8x1024xbf16, #tpu.memory_space<vmem>>, vector<8x512xbf16>
    %c112_i32_104 = arith.constant 112 : i32
    %220 = vector.broadcast %c112_i32_104 : i32 to vector<1x512xi32>
    %221 = arith.cmpi slt, %28, %220 : vector<1x512xi32>
    %c1_i32_105 = arith.constant 1 : i32
    %222 = vector.broadcast %c1_i32_105 : i32 to vector<1x512xi32>
    %223 = arith.cmpi sge, %44, %222 : vector<1x512xi32>
    %224 = arith.andi %221, %223 : vector<1x512xi1>
    %cst_106 = arith.constant 0.000000e+00 : bf16
    %225 = vector.broadcast %cst_106 : bf16 to vector<8x512xbf16>
    %226 = vector.shape_cast %224 : vector<1x512xi1> to vector<1x512xi1>
    %227 = vector.broadcast %226 : vector<1x512xi1> to vector<8x512xi1>
    %228 = arith.select %227, %219, %225 : vector<8x512xi1>, vector<8x512xbf16>
    %c120 = arith.constant 120 : index
    %c0_107 = arith.constant 0 : index
    %229 = vector.load %arg9[%c120, %c0_107] : memref<216x512xbf16, #tpu.memory_space<vmem>>, vector<8x512xbf16>
    tpu.vector_store %arg9[%c120, %c0_107], %228 {strides = array<i32>} : memref<216x512xbf16, #tpu.memory_space<vmem>>, vector<8x512xbf16>,
    %c0_108 = arith.constant 0 : index
    %c272 = arith.constant 272 : index
    %230 = vector.load %arg8[%c0_108, %c272] : memref<8x1024xbf16, #tpu.memory_space<vmem>>, vector<8x512xbf16>
    %c112_i32_109 = arith.constant 112 : i32
    %231 = vector.broadcast %c112_i32_109 : i32 to vector<1x512xi32>
    %232 = arith.cmpi slt, %28, %231 : vector<1x512xi32>
    %cst_110 = arith.constant 0.000000e+00 : bf16
    %233 = vector.broadcast %cst_110 : bf16 to vector<8x512xbf16>
    %234 = vector.shape_cast %232 : vector<1x512xi1> to vector<1x512xi1>
    %235 = vector.broadcast %234 : vector<1x512xi1> to vector<8x512xi1>
    %236 = arith.select %235, %230, %233 : vector<8x512xi1>, vector<8x512xbf16>
    %c128_111 = arith.constant 128 : index
    %c0_112 = arith.constant 0 : index
    %237 = vector.load %arg9[%c128_111, %c0_112] : memref<216x512xbf16, #tpu.memory_space<vmem>>, vector<8x512xbf16>
    tpu.vector_store %arg9[%c128_111, %c0_112], %236 {strides = array<i32>} : memref<216x512xbf16, #tpu.memory_space<vmem>>, vector<8x512xbf16>,
    %c0_113 = arith.constant 0 : index
    %c273 = arith.constant 273 : index
    %238 = vector.load %arg8[%c0_113, %c273] : memref<8x1024xbf16, #tpu.memory_space<vmem>>, vector<8x512xbf16>
    %c112_i32_114 = arith.constant 112 : i32
    %239 = vector.broadcast %c112_i32_114 : i32 to vector<1x512xi32>
    %240 = arith.cmpi slt, %28, %239 : vector<1x512xi32>
    %c15_i32_115 = arith.constant 15 : i32
    %241 = vector.broadcast %c15_i32_115 : i32 to vector<1x512xi32>
    %242 = arith.cmpi slt, %44, %241 : vector<1x512xi32>
    %243 = arith.andi %240, %242 : vector<1x512xi1>
    %cst_116 = arith.constant 0.000000e+00 : bf16
    %244 = vector.broadcast %cst_116 : bf16 to vector<8x512xbf16>
    %245 = vector.shape_cast %243 : vector<1x512xi1> to vector<1x512xi1>
    %246 = vector.broadcast %245 : vector<1x512xi1> to vector<8x512xi1>
    %247 = arith.select %246, %238, %244 : vector<8x512xi1>, vector<8x512xbf16>
    %c136 = arith.constant 136 : index
    %c0_117 = arith.constant 0 : index
    %248 = vector.load %arg9[%c136, %c0_117] : memref<216x512xbf16, #tpu.memory_space<vmem>>, vector<8x512xbf16>
    tpu.vector_store %arg9[%c136, %c0_117], %247 {strides = array<i32>} : memref<216x512xbf16, #tpu.memory_space<vmem>>, vector<8x512xbf16>,
    %c0_118 = arith.constant 0 : index
    %c367 = arith.constant 367 : index
    %249 = vector.load %arg8[%c0_118, %c367] : memref<8x1024xbf16, #tpu.memory_space<vmem>>, vector<8x512xbf16>
    %c7_i32 = arith.constant 7 : i32
    %250 = arith.subi %c7_i32, %0 : i32
    %c128_i32_119 = arith.constant 128 : i32
    %251 = arith.muli %250, %c128_i32_119 : i32
    %252 = vector.broadcast %251 : i32 to vector<1x512xi32>
    %253 = arith.cmpi slt, %12, %252 : vector<1x512xi32>
    %c16_i32_120 = arith.constant 16 : i32
    %254 = vector.broadcast %c16_i32_120 : i32 to vector<1x512xi32>
    %255 = arith.cmpi sge, %28, %254 : vector<1x512xi32>
    %c1_i32_121 = arith.constant 1 : i32
    %256 = vector.broadcast %c1_i32_121 : i32 to vector<1x512xi32>
    %257 = arith.cmpi sge, %44, %256 : vector<1x512xi32>
    %258 = arith.andi %253, %255 : vector<1x512xi1>
    %259 = arith.andi %258, %257 : vector<1x512xi1>
    %cst_122 = arith.constant 0.000000e+00 : bf16
    %260 = vector.broadcast %cst_122 : bf16 to vector<8x512xbf16>
    %261 = vector.shape_cast %259 : vector<1x512xi1> to vector<1x512xi1>
    %262 = vector.broadcast %261 : vector<1x512xi1> to vector<8x512xi1>
    %263 = arith.select %262, %249, %260 : vector<8x512xi1>, vector<8x512xbf16>
    %c144_123 = arith.constant 144 : index
    %c0_124 = arith.constant 0 : index
    %264 = vector.load %arg9[%c144_123, %c0_124] : memref<216x512xbf16, #tpu.memory_space<vmem>>, vector<8x512xbf16>
    tpu.vector_store %arg9[%c144_123, %c0_124], %263 {strides = array<i32>} : memref<216x512xbf16, #tpu.memory_space<vmem>>, vector<8x512xbf16>,
    %c0_125 = arith.constant 0 : index
    %c368 = arith.constant 368 : index
    %265 = vector.load %arg8[%c0_125, %c368] : memref<8x1024xbf16, #tpu.memory_space<vmem>>, vector<8x512xbf16>
    %c7_i32_126 = arith.constant 7 : i32
    %266 = arith.subi %c7_i32_126, %0 : i32
    %c128_i32_127 = arith.constant 128 : i32
    %267 = arith.muli %266, %c128_i32_127 : i32
    %268 = vector.broadcast %267 : i32 to vector<1x512xi32>
    %269 = arith.cmpi slt, %12, %268 : vector<1x512xi32>
    %c16_i32_128 = arith.constant 16 : i32
    %270 = vector.broadcast %c16_i32_128 : i32 to vector<1x512xi32>
    %271 = arith.cmpi sge, %28, %270 : vector<1x512xi32>
    %272 = arith.andi %269, %271 : vector<1x512xi1>
    %cst_129 = arith.constant 0.000000e+00 : bf16
    %273 = vector.broadcast %cst_129 : bf16 to vector<8x512xbf16>
    %274 = vector.shape_cast %272 : vector<1x512xi1> to vector<1x512xi1>
    %275 = vector.broadcast %274 : vector<1x512xi1> to vector<8x512xi1>
    %276 = arith.select %275, %265, %273 : vector<8x512xi1>, vector<8x512xbf16>
    %c152 = arith.constant 152 : index
    %c0_130 = arith.constant 0 : index
    %277 = vector.load %arg9[%c152, %c0_130] : memref<216x512xbf16, #tpu.memory_space<vmem>>, vector<8x512xbf16>
    tpu.vector_store %arg9[%c152, %c0_130], %276 {strides = array<i32>} : memref<216x512xbf16, #tpu.memory_space<vmem>>, vector<8x512xbf16>,
    %c0_131 = arith.constant 0 : index
    %c369 = arith.constant 369 : index
    %278 = vector.load %arg8[%c0_131, %c369] : memref<8x1024xbf16, #tpu.memory_space<vmem>>, vector<8x512xbf16>
    %c7_i32_132 = arith.constant 7 : i32
    %279 = arith.subi %c7_i32_132, %0 : i32
    %c128_i32_133 = arith.constant 128 : i32
    %280 = arith.muli %279, %c128_i32_133 : i32
    %281 = vector.broadcast %280 : i32 to vector<1x512xi32>
    %282 = arith.cmpi slt, %12, %281 : vector<1x512xi32>
    %c16_i32_134 = arith.constant 16 : i32
    %283 = vector.broadcast %c16_i32_134 : i32 to vector<1x512xi32>
    %284 = arith.cmpi sge, %28, %283 : vector<1x512xi32>
    %c15_i32_135 = arith.constant 15 : i32
    %285 = vector.broadcast %c15_i32_135 : i32 to vector<1x512xi32>
    %286 = arith.cmpi slt, %44, %285 : vector<1x512xi32>
    %287 = arith.andi %282, %284 : vector<1x512xi1>
    %288 = arith.andi %287, %286 : vector<1x512xi1>
    %cst_136 = arith.constant 0.000000e+00 : bf16
    %289 = vector.broadcast %cst_136 : bf16 to vector<8x512xbf16>
    %290 = vector.shape_cast %288 : vector<1x512xi1> to vector<1x512xi1>
    %291 = vector.broadcast %290 : vector<1x512xi1> to vector<8x512xi1>
    %292 = arith.select %291, %278, %289 : vector<8x512xi1>, vector<8x512xbf16>
    %c160 = arith.constant 160 : index
    %c0_137 = arith.constant 0 : index
    %293 = vector.load %arg9[%c160, %c0_137] : memref<216x512xbf16, #tpu.memory_space<vmem>>, vector<8x512xbf16>
    tpu.vector_store %arg9[%c160, %c0_137], %292 {strides = array<i32>} : memref<216x512xbf16, #tpu.memory_space<vmem>>, vector<8x512xbf16>,
    %c0_138 = arith.constant 0 : index
    %c383 = arith.constant 383 : index
    %294 = vector.load %arg8[%c0_138, %c383] : memref<8x1024xbf16, #tpu.memory_space<vmem>>, vector<8x512xbf16>
    %c7_i32_139 = arith.constant 7 : i32
    %295 = arith.subi %c7_i32_139, %0 : i32
    %c128_i32_140 = arith.constant 128 : i32
    %296 = arith.muli %295, %c128_i32_140 : i32
    %297 = vector.broadcast %296 : i32 to vector<1x512xi32>
    %298 = arith.cmpi slt, %12, %297 : vector<1x512xi32>
    %c1_i32_141 = arith.constant 1 : i32
    %299 = vector.broadcast %c1_i32_141 : i32 to vector<1x512xi32>
    %300 = arith.cmpi sge, %44, %299 : vector<1x512xi32>
    %301 = arith.andi %298, %300 : vector<1x512xi1>
    %cst_142 = arith.constant 0.000000e+00 : bf16
    %302 = vector.broadcast %cst_142 : bf16 to vector<8x512xbf16>
    %303 = vector.shape_cast %301 : vector<1x512xi1> to vector<1x512xi1>
    %304 = vector.broadcast %303 : vector<1x512xi1> to vector<8x512xi1>
    %305 = arith.select %304, %294, %302 : vector<8x512xi1>, vector<8x512xbf16>
    %c168 = arith.constant 168 : index
    %c0_143 = arith.constant 0 : index
    %306 = vector.load %arg9[%c168, %c0_143] : memref<216x512xbf16, #tpu.memory_space<vmem>>, vector<8x512xbf16>
    tpu.vector_store %arg9[%c168, %c0_143], %305 {strides = array<i32>} : memref<216x512xbf16, #tpu.memory_space<vmem>>, vector<8x512xbf16>,
    %c0_144 = arith.constant 0 : index
    %c384 = arith.constant 384 : index
    %307 = vector.load %arg8[%c0_144, %c384] : memref<8x1024xbf16, #tpu.memory_space<vmem>>, vector<8x512xbf16>
    %c7_i32_145 = arith.constant 7 : i32
    %308 = arith.subi %c7_i32_145, %0 : i32
    %c128_i32_146 = arith.constant 128 : i32
    %309 = arith.muli %308, %c128_i32_146 : i32
    %310 = vector.broadcast %309 : i32 to vector<1x512xi32>
    %311 = arith.cmpi slt, %12, %310 : vector<1x512xi32>
    %cst_147 = arith.constant 0.000000e+00 : bf16
    %312 = vector.broadcast %cst_147 : bf16 to vector<8x512xbf16>
    %313 = vector.shape_cast %311 : vector<1x512xi1> to vector<1x512xi1>
    %314 = vector.broadcast %313 : vector<1x512xi1> to vector<8x512xi1>
    %315 = arith.select %314, %307, %312 : vector<8x512xi1>, vector<8x512xbf16>
    %c176 = arith.constant 176 : index
    %c0_148 = arith.constant 0 : index
    %316 = vector.load %arg9[%c176, %c0_148] : memref<216x512xbf16, #tpu.memory_space<vmem>>, vector<8x512xbf16>
    tpu.vector_store %arg9[%c176, %c0_148], %315 {strides = array<i32>} : memref<216x512xbf16, #tpu.memory_space<vmem>>, vector<8x512xbf16>,
    %c0_149 = arith.constant 0 : index
    %c385 = arith.constant 385 : index
    %317 = vector.load %arg8[%c0_149, %c385] : memref<8x1024xbf16, #tpu.memory_space<vmem>>, vector<8x512xbf16>
    %c7_i32_150 = arith.constant 7 : i32
    %318 = arith.subi %c7_i32_150, %0 : i32
    %c128_i32_151 = arith.constant 128 : i32
    %319 = arith.muli %318, %c128_i32_151 : i32
    %320 = vector.broadcast %319 : i32 to vector<1x512xi32>
    %321 = arith.cmpi slt, %12, %320 : vector<1x512xi32>
    %c15_i32_152 = arith.constant 15 : i32
    %322 = vector.broadcast %c15_i32_152 : i32 to vector<1x512xi32>
    %323 = arith.cmpi slt, %44, %322 : vector<1x512xi32>
    %324 = arith.andi %321, %323 : vector<1x512xi1>
    %cst_153 = arith.constant 0.000000e+00 : bf16
    %325 = vector.broadcast %cst_153 : bf16 to vector<8x512xbf16>
    %326 = vector.shape_cast %324 : vector<1x512xi1> to vector<1x512xi1>
    %327 = vector.broadcast %326 : vector<1x512xi1> to vector<8x512xi1>
    %328 = arith.select %327, %317, %325 : vector<8x512xi1>, vector<8x512xbf16>
    %c184 = arith.constant 184 : index
    %c0_154 = arith.constant 0 : index
    %329 = vector.load %arg9[%c184, %c0_154] : memref<216x512xbf16, #tpu.memory_space<vmem>>, vector<8x512xbf16>
    tpu.vector_store %arg9[%c184, %c0_154], %328 {strides = array<i32>} : memref<216x512xbf16, #tpu.memory_space<vmem>>, vector<8x512xbf16>,
    %c0_155 = arith.constant 0 : index
    %c399 = arith.constant 399 : index
    %330 = vector.load %arg8[%c0_155, %c399] : memref<8x1024xbf16, #tpu.memory_space<vmem>>, vector<8x512xbf16>
    %c7_i32_156 = arith.constant 7 : i32
    %331 = arith.subi %c7_i32_156, %0 : i32
    %c128_i32_157 = arith.constant 128 : i32
    %332 = arith.muli %331, %c128_i32_157 : i32
    %333 = vector.broadcast %332 : i32 to vector<1x512xi32>
    %334 = arith.cmpi slt, %12, %333 : vector<1x512xi32>
    %c112_i32_158 = arith.constant 112 : i32
    %335 = vector.broadcast %c112_i32_158 : i32 to vector<1x512xi32>
    %336 = arith.cmpi slt, %28, %335 : vector<1x512xi32>
    %c1_i32_159 = arith.constant 1 : i32
    %337 = vector.broadcast %c1_i32_159 : i32 to vector<1x512xi32>
    %338 = arith.cmpi sge, %44, %337 : vector<1x512xi32>
    %339 = arith.andi %334, %336 : vector<1x512xi1>
    %340 = arith.andi %339, %338 : vector<1x512xi1>
    %cst_160 = arith.constant 0.000000e+00 : bf16
    %341 = vector.broadcast %cst_160 : bf16 to vector<8x512xbf16>
    %342 = vector.shape_cast %340 : vector<1x512xi1> to vector<1x512xi1>
    %343 = vector.broadcast %342 : vector<1x512xi1> to vector<8x512xi1>
    %344 = arith.select %343, %330, %341 : vector<8x512xi1>, vector<8x512xbf16>
    %c192 = arith.constant 192 : index
    %c0_161 = arith.constant 0 : index
    %345 = vector.load %arg9[%c192, %c0_161] : memref<216x512xbf16, #tpu.memory_space<vmem>>, vector<8x512xbf16>
    tpu.vector_store %arg9[%c192, %c0_161], %344 {strides = array<i32>} : memref<216x512xbf16, #tpu.memory_space<vmem>>, vector<8x512xbf16>,
    %c0_162 = arith.constant 0 : index
    %c400 = arith.constant 400 : index
    %346 = vector.load %arg8[%c0_162, %c400] : memref<8x1024xbf16, #tpu.memory_space<vmem>>, vector<8x512xbf16>
    %c7_i32_163 = arith.constant 7 : i32
    %347 = arith.subi %c7_i32_163, %0 : i32
    %c128_i32_164 = arith.constant 128 : i32
    %348 = arith.muli %347, %c128_i32_164 : i32
    %349 = vector.broadcast %348 : i32 to vector<1x512xi32>
    %350 = arith.cmpi slt, %12, %349 : vector<1x512xi32>
    %c112_i32_165 = arith.constant 112 : i32
    %351 = vector.broadcast %c112_i32_165 : i32 to vector<1x512xi32>
    %352 = arith.cmpi slt, %28, %351 : vector<1x512xi32>
    %353 = arith.andi %350, %352 : vector<1x512xi1>
    %cst_166 = arith.constant 0.000000e+00 : bf16
    %354 = vector.broadcast %cst_166 : bf16 to vector<8x512xbf16>
    %355 = vector.shape_cast %353 : vector<1x512xi1> to vector<1x512xi1>
    %356 = vector.broadcast %355 : vector<1x512xi1> to vector<8x512xi1>
    %357 = arith.select %356, %346, %354 : vector<8x512xi1>, vector<8x512xbf16>
    %c200 = arith.constant 200 : index
    %c0_167 = arith.constant 0 : index
    %358 = vector.load %arg9[%c200, %c0_167] : memref<216x512xbf16, #tpu.memory_space<vmem>>, vector<8x512xbf16>
    tpu.vector_store %arg9[%c200, %c0_167], %357 {strides = array<i32>} : memref<216x512xbf16, #tpu.memory_space<vmem>>, vector<8x512xbf16>,
    %c0_168 = arith.constant 0 : index
    %c401 = arith.constant 401 : index
    %359 = vector.load %arg8[%c0_168, %c401] : memref<8x1024xbf16, #tpu.memory_space<vmem>>, vector<8x512xbf16>
    %c7_i32_169 = arith.constant 7 : i32
    %360 = arith.subi %c7_i32_169, %0 : i32
    %c128_i32_170 = arith.constant 128 : i32
    %361 = arith.muli %360, %c128_i32_170 : i32
    %362 = vector.broadcast %361 : i32 to vector<1x512xi32>
    %363 = arith.cmpi slt, %12, %362 : vector<1x512xi32>
    %c112_i32_171 = arith.constant 112 : i32
    %364 = vector.broadcast %c112_i32_171 : i32 to vector<1x512xi32>
    %365 = arith.cmpi slt, %28, %364 : vector<1x512xi32>
    %c15_i32_172 = arith.constant 15 : i32
    %366 = vector.broadcast %c15_i32_172 : i32 to vector<1x512xi32>
    %367 = arith.cmpi slt, %44, %366 : vector<1x512xi32>
    %368 = arith.andi %363, %365 : vector<1x512xi1>
    %369 = arith.andi %368, %367 : vector<1x512xi1>
    %cst_173 = arith.constant 0.000000e+00 : bf16
    %370 = vector.broadcast %cst_173 : bf16 to vector<8x512xbf16>
    %371 = vector.shape_cast %369 : vector<1x512xi1> to vector<1x512xi1>
    %372 = vector.broadcast %371 : vector<1x512xi1> to vector<8x512xi1>
    %373 = arith.select %372, %359, %370 : vector<8x512xi1>, vector<8x512xbf16>
    %c208 = arith.constant 208 : index
    %c0_174 = arith.constant 0 : index
    %374 = vector.load %arg9[%c208, %c0_174] : memref<216x512xbf16, #tpu.memory_space<vmem>>, vector<8x512xbf16>
    tpu.vector_store %arg9[%c208, %c0_174], %373 {strides = array<i32>} : memref<216x512xbf16, #tpu.memory_space<vmem>>, vector<8x512xbf16>,
    %c0_175 = arith.constant 0 : index
    %c0_176 = arith.constant 0 : index
    %375 = vector.load %arg5[%c0_175, %c0_176] : memref<8x216xbf16, #tpu.memory_space<vmem>>, vector<8x216xbf16>
    %c0_177 = arith.constant 0 : index
    %c0_178 = arith.constant 0 : index
    %376 = vector.load %arg9[%c0_177, %c0_178] : memref<216x512xbf16, #tpu.memory_space<vmem>>, vector<216x512xbf16>
    %cst_179 = arith.constant dense<0.000000e+00> : vector<8x512xf32>
    %377 = tpu.matmul %375, %376, %cst_179 {dimension_numbers = #tpu.dot_dimension_numbers<[1], [0], [0], [1], [0, 0, 1, 1], [], []>} : vector<8x216xbf16>, vector<216x512xbf16>, vector<8x512xf32> -> vector<8x512xf32>
    %c0_180 = arith.constant 0 : index
    %c0_181 = arith.constant 0 : index
    %378 = vector.load %arg6[%c0_180, %c0_181] : memref<8x1xf32, #tpu.memory_space<vmem>>, vector<8x1xf32>
    %379 = vector.broadcast %378 : vector<8x1xf32> to vector<8x512xf32>
    %380 = arith.addf %377, %379 : vector<8x512xf32>
    %c0_182 = arith.constant 0 : index
    %c0_183 = arith.constant 0 : index
    %c0_184 = arith.constant 0 : index
    %381 = vector.load %arg7[%c0_182, %c0_183, %c0_184] : memref<1x8x512xf32, #tpu.memory_space<vmem>>, vector<1x8x512xf32>
    %382 = vector.shape_cast %381 : vector<1x8x512xf32> to vector<8x512xf32>
    %383 = vector.shape_cast %380 : vector<8x512xf32> to vector<1x8x512xf32>
    tpu.vector_store %arg7[%c0_182, %c0_183, %c0_184], %383 {strides = array<i32>} : memref<1x8x512xf32, #tpu.memory_space<vmem>>, vector<1x8x512xf32>,
    return
  }
  func.func @transform_0(%arg0: i32, %arg1: i32) -> (i32, i32, i32) {
    %c0_i32 = arith.constant 0 : i32
    %c0_i32_0 = arith.constant 0 : i32
    return %arg0, %c0_i32, %arg1 : i32, i32, i32
  }
  func.func @transform_1(%arg0: i32, %arg1: i32) -> (i32, i32, i32) {
    %c4_i32 = arith.constant 4 : i32
    %0 = arith.muli %arg1, %c4_i32 : i32
    %c1_i32 = arith.constant 1 : i32
    %1 = arith.subi %0, %c1_i32 : i32
    %c0_i32 = arith.constant 0 : i32
    %2 = arith.maxsi %1, %c0_i32 : i32
    %c0_i32_0 = arith.constant 0 : i32
    %c0_i32_1 = arith.constant 0 : i32
    return %arg0, %c0_i32_0, %2 : i32, i32, i32
  }
  func.func @transform_2(%arg0: i32, %arg1: i32) -> (i32, i32, i32) {
    %c4_i32 = arith.constant 4 : i32
    %0 = arith.muli %arg1, %c4_i32 : i32
    %c4_i32_0 = arith.constant 4 : i32
    %1 = arith.addi %0, %c4_i32_0 : i32
    %c7_i32 = arith.constant 7 : i32
    %2 = arith.minsi %1, %c7_i32 : i32
    %c0_i32 = arith.constant 0 : i32
    %c0_i32_1 = arith.constant 0 : i32
    return %arg0, %c0_i32, %2 : i32, i32, i32
  }
  func.func @transform_3(%arg0: i32, %arg1: i32) -> (i32, i32) {
    %c0_i32 = arith.constant 0 : i32
    %c0_i32_0 = arith.constant 0 : i32
    %c0_i32_1 = arith.constant 0 : i32
    return %c0_i32, %c0_i32_0 : i32, i32
  }
  func.func @transform_4(%arg0: i32, %arg1: i32) -> (i32, i32) {
    %c0_i32 = arith.constant 0 : i32
    %c0_i32_0 = arith.constant 0 : i32
    %c0_i32_1 = arith.constant 0 : i32
    return %c0_i32, %c0_i32_0 : i32, i32
  }
  func.func @transform_5(%arg0: i32, %arg1: i32) -> (i32, i32, i32) {
    %c0_i32 = arith.constant 0 : i32
    %c0_i32_0 = arith.constant 0 : i32
    return %arg0, %c0_i32, %arg1 : i32, i32, i32
  }
}

</mosaic_0001>

<bundles_post_ra>
// kernel: tpu_custom_call.1
= control target key start
LH: loop header
LB: loop body
LE: loop exit
PB: predicated region body
PF: predicated region fallthrough
CT: control target
= control target key end

     0   :  { %s4678_s0 = inlined_call_operand.hbm [shape: bf16[2,4,1024], index: 0, kind: input, shape index: {}]   ;;  %s4679_s1 = inlined_call_operand.hbm [shape: bf16[2,4,1024], index: 1, kind: input, shape index: {}]   ;;  %s4680_s2 = inlined_call_operand.hbm [shape: bf16[2,4,1024], index: 2, kind: input, shape index: {}]   ;;  %s4681_s3 = inlined_call_operand.vmem [shape: bf16[8,216], index: 3, kind: input, shape index: {}]   ;;  %s4682_s4 = inlined_call_operand.vmem [shape: f32[8,1], index: 4, kind: input, shape index: {}]   ;;  %s4683_s5 = inlined_call_operand.hbm [shape: f32[2,8,1024], index: 5, kind: output, shape index: {}]  }
   0x1   :  { %4760 = sst [smem:[#allocation28_spill]] %s4678_s0 }
   0x2   :  { %4761 = sst [smem:[#allocation29_spill]] %s4679_s1 }
   0x3   :  { %4762 = sst [smem:[#allocation30_spill]] %s4680_s2 }
   0x4   :  { %4763 = sst [smem:[#allocation31_spill]] %s4681_s3 }
   0x5   :  { %4764 = sst [smem:[#allocation32_spill]] %s4682_s4 }
   0x6   :  { %4765 = sst [smem:[#allocation33_spill]] %s4683_s5 }
   0x7   :  { %10 = vsyncpa [#allocation5], 0 }
   0x8   :  { %12 = vsyncpa [#allocation5 + $0x1], 0 }
   0x9   :  { %13 = vsyncpa [#allocation8], 0 }
   0xa   :  { %15 = vsyncpa [#allocation8 + $0x1], 0 }
   0xb   :  { %16 = vsyncpa [#allocation6], 0 }
   0xc   :  { %18 = vsyncpa [#allocation6 + $0x1], 0  ;;  %s2991_s18 = smov 0   ;;  %s2993_s19 = smov 0  }
   0xd   :  { %s2995_s20 = smov 0   ;;  %s2997_s21 = smov 0  }
   0xe   :  { %s2999_s22 = smov 0   ;;  %s3001_s23 = smov 0  }
   0xf   :  { %s3003_s24 = smov 0   ;;  %s3005_s25 = smov 0  }
  0x10   :  { %s3007_s26 = smov 0   ;;  %s3009_s27 = smov 0  }
  0x11   :  { %s3011_s28 = smov 0   ;;  %s3013_s29 = smov 0  }
  0x12   :  { %s3015_s30 = smov 0   ;;  %s3017_s6 = smov 0  }
  0x13 LB: > { %4766 = sst [smem:[#allocation15_spill]] %s2910_s22  ;;  %s3062_s7 = sadd.s32 4294967295, %s2946_s6   ;;  %s2946_s6 = sphi %s3017_s6, %s24_s6   ;;  %s2942_s30 = sphi %s3015_s30, %s4953_s30   ;;  %s2938_s29 = sphi %s3013_s29, %s4952_s29   ;;  %s2934_s28 = sphi %s3011_s28, %s4951_s28   ;;  %s2930_s27 = sphi %s3009_s27, %s4950_s27   ;;  %s2926_s26 = sphi %s3007_s26, %s4949_s26   ;;  %s2922_s25 = sphi %s3005_s25, %s4958_s25   ;;  %s2918_s24 = sphi %s3003_s24, %s4957_s24   ;;  %s2914_s23 = sphi %s3001_s23, %s4947_s23   ;;  %s2910_s22 = sphi %s2999_s22, %s4946_s22   ;;  %s2906_s21 = sphi %s2997_s21, %s4945_s21   ;;  %s2902_s20 = sphi %s2995_s20, %s4956_s20   ;;  %s2898_s19 = sphi %s2993_s19, %s4955_s19   ;;  %s2894_s18 = sphi %s2991_s18, %s4954_s18  }
  0x14   : > { %4767 = sst [smem:[#allocation16_spill]] %s2914_s23  ;;  %s33_s8 = sadd.s32 1, %s2938_s29 }
  0x15   : > { %4768 = sst [smem:[#allocation17_spill]] %s2926_s26  ;;  %p34_p0 = scmp.ge.s32.totalorder %s33_s8, 2 }
  0x16   : > { %4769 = sst [smem:[#allocation18_spill]] %s2930_s27  ;;  %s36_s9 = sadd.s32 1, %s2942_s30 }
  0x17   : > { %4770 = sst [smem:[#allocation19_spill]] %s2934_s28  ;;  %p4693_p1 = scmp.eq.s32.totalorder %s2946_s6, 0 }
  0x18   : > { %4771 = sst [smem:[#allocation20_spill]] %s2938_s29  ;;  %p4692_p2 = scmp.eq.s32.totalorder %s3062_s7, 0 }
  0x19   : > { %4772 = sst [smem:[#allocation21_spill]] %s2942_s30  ;;  %s4960_s8 = smov (%p34_p0, %s33_s8), 0 }
  0x1a   : > { %4773 = sst [smem:[#allocation22_spill]] %s4960_s8  ;;  %s4962_s9 = smov (!%p34_p0, %s36_s9), %s2942_s30 }
  0x1b   : > { %s41_s10 = ssub.s32 %s2938_s29, %s4960_s8  ;;  %s3074_s11 = sshll.u32 %s2938_s29, 2 }
  0x1c   : > { %p38_p3 = scmp.ge.s32.totalorder %s4962_s9, 2  ;;  %s2455_s12 = sadd.s32 4294967295, %s3074_s11 }
  0x1d   : > { %p70_p4 = scmp.gt.s32.totalorder %s2455_s12, 0  ;;  %s2456_s13 = sshll.u32 %s4960_s8, 2 }
  0x1e   : > { %s4964_s9 = smov (%p38_p3, %s4962_s9), 0  ;;  %s2457_s15 = sadd.s32 4294967295, %s2456_s13 }
  0x1f   : > { %4774 = sst [smem:[#allocation23_spill]] %s4964_s9  ;;  %s4966_s12 = smov (!%p70_p4, %s2455_s12), 0 }
  0x20   : > { %s3082_s14 = ssub.s32 %s2942_s30, %s4964_s9  ;;  %p74_p5 = scmp.gt.s32.totalorder %s2457_s15, 0 }
  0x21   : > { %4775 = sst [smem:[#allocation24_spill]] %s3082_s14  ;;  %s3085_s16 = sor.u32 %s41_s10, %s3082_s14 }
  0x22   : > { %s81_s17 = sadd.s32 1, %s2914_s23  ;;  %s4968_s15 = smov (!%p74_p5, %s2457_s15), 0 }
  0x23   : > { %p88_p7 = scmp.ne.s32.totalorder %s2914_s23, %s2910_s22  ;;  %p94_p8 = scmp.ne.s32.totalorder %s2910_s22, %s2906_s21 }
  0x24   : > { %s77_s8 = ssub.s32 %s4966_s12, %s4968_s15  ;;  %s3093_s9 = sadd.s32 4, %s2456_s13 }
  0x25   : > { %s78_s29 = sor.u32 %s77_s8, %s3082_s14  ;;  %p3098_p9 = por %p88_p7, %p4693_p1 }
  0x26   : > { %p79_p10 = scmp.eq.s32.totalorder %s78_s29, 0  ;;  %p3104_p11 = por %p94_p8, %p4692_p2 }
  0x27   : > { %p4691_p13 = scmp.lt.s32.totalorder %s2946_s6, 4  ;;  %s3114_s8 = sshll.u32 %s2942_s30, 3 }
  0x28   : > { %s4777_s10 = scalar_select %p3104_p11, 1, 0 }
  0x29   : > { %s3110_s21 = scalar_select %p79_p10, %s2914_s23, %s81_s17  }
  0x2a   : > { %s251_s13 = sand.u32 1, %s2946_s6   ;;  %s253_s15 = sand.u32 1, %s2914_s23  }
  0x2b   : > { %4778 = sst [smem:[#allocation25_spill]] %s3110_s21  ;;  %s2466_s28 = sshll.u32 %s253_s15, 1 }
  0x2c   : > { %s264_s4 = sadd.s32 %s3114_s8, %s4966_s12  ;;  %s255_s29 = scalar_lea.vmem [#allocation7], %s2466_s28 }
  0x2d   : > { %s2470_s3 = sshll.u32 %s264_s4, 5  ;;  %s268_s27 = sshll.u32 %s255_s29, 4  ;;  %s3124_s27 = int_to_ptr.vmem [resolvable:$true] %s268_s27 }
  0x2e   : > { %s4779_s1 = sld [smem:[#allocation29_spill]]  ;;  %p3130_p0 = pnand %p4691_p13, %p3098_p9 }
  0x2f   : > { %s3136_s4 = scalar_lea.sflag [#allocation8], %s251_s13 }
  0x30   : > { %p2704_p7 = pneg %p3130_p0 }
  0x34   : > { %s3122_s14 = scalar_lea.hbm %s4779_s1, %s2470_s3  ;;  %s2707_s22 = scalar_lea.hbm %s4779_s1, 512 }
  0x35   : > { %s2702_s2 = scalar_lea.hbm %s3122_s14, 32  ;;  %p2708_p9 = scmp.lt.u32.totalorder %s3122_s14, %s4779_s1 }
  0x36   : > { %p2703_p5 = scmp.ne.s32.totalorder %s3122_s14, %s2702_s2  ;;  %p2709_p12 = scmp.lt.u32.totalorder %s2707_s22, %s2702_s2 }
  0x37   : > { %p2711_p2 = scmp.lt.u32.totalorder %s2702_s2, %s3122_s14 }
  0x38   : > { %p2705_p8 = pnand %p2704_p7, %p2703_p5  ;;  %p2710_p13 = por %p2709_p12, %p2708_p9 }
  0x3a   : > { %p2706_p10 = pneg %p2705_p8  ;;  %p2712_p1 = por %p2711_p2, %p2710_p13 }
  0x3c   : > { %p2713_p6 = pnand %p2712_p1, %p2706_p10 }
  0x3e   : > { %2716 = shalt.err (!%p2713_p6)
}
  0x3f   : > { %s2717_s13 = scalar_lea.vmem %s3124_s27, 32  ;;  %s2948_s15 = smov [#allocation7]  }
  0x40   : > { %p2718_p5 = scmp.ne.s32.totalorder %s3124_s27, %s2717_s13  ;;  %s2722_s29 = sshll.u32 %s2948_s15, 4  ;;  %s2723_s29 = int_to_ptr.vmem [resolvable:$false] %s2722_s29 }
  0x41   : > { %s2724_s3 = scalar_lea.vmem %s2723_s29, 64  ;;  %p2725_p4 = scmp.lt.s32.totalorder %s3124_s27, %s2723_s29 }
  0x42   : > { %p2720_p8 = pnand %p2718_p5, %p2704_p7  ;;  %p2726_p12 = scmp.lt.s32.totalorder %s2724_s3, %s2717_s13 }
  0x44   : > { %p2721_p3 = pneg %p2720_p8  ;;  %p2727_p9 = por %p2726_p12, %p2725_p4 }
  0x46   : > { %p2728_p2 = pnand %p2727_p9, %p2721_p3 }
  0x48   : > { %2731 = shalt.err (!%p2728_p2)
}
  0x49   : > { %2567 = dma.hbm_to_vmem [thread:$0]  (!%p3130_p0), %s3122_s14, 32, %s3124_s27, %s3136_s4  }
  0x4a   : > { %p4781_p1 = scmp.lt.s32.totalorder %s2946_s6, 5  ;;  %p4782_p6 = scmp.ge.s32.totalorder %s2946_s6, 1 }
  0x4b   : > { %s2453_s2 = sadd.s32 4294967294, %s2946_s6   ;;  %s45_s5 = sadd.s32 1, %s2926_s26 }
  0x4c   : > { %p3168_p13 = pnand %p4782_p6, %p4781_p1  ;;  %p52_p3 = scmp.ne.s32.totalorder %s2926_s26, %s2922_s25 }
  0x4d   : > { %p4784_p4 = scmp.eq.s32.totalorder %s3085_s16, 0  ;;  %p4786_p7 = scmp.eq.s32.totalorder %s2946_s6, 0 }
  0x4e   : > { %p58_p0 = scmp.ne.s32.totalorder %s2922_s25, %s2918_s24  ;;  %p198_p5 = scmp.eq.s32.totalorder %s3062_s7, 3 }
  0x4f   : > { %s3179_s22 = scalar_select %p4784_p4, %s2926_s26, %s45_s5  }
  0x50   : > { %p3183_p10 = por %p4786_p7, %p52_p3  ;;  %p204_p8 = scmp.eq.s32.totalorder %s2453_s2, 3 }
  0x51   : > { %4785 = sst [smem:[#allocation26_spill]] %s3179_s22  ;;  %p4788_p12 = scmp.eq.s32.totalorder %s3062_s7, 0 }
  0x52   : > { %s230_s14 = sand.u32 1, %s2926_s26   ;;  %p3197_p2 = por %p198_p5, %p52_p3 }
  0x53   : > { %p3192_p9 = por %p4788_p12, %p58_p0  ;;  %p3201_p1 = por %p204_p8, %p58_p0 }
  0x54   : > { %s4790_s16 = scalar_select %p3197_p2, 1, 0 }
  0x55   : > { %s4789_s27 = scalar_select %p3192_p9, 1, 0 }
  0x56   : > { %s4791_s12 = scalar_select %p3201_p1, 1, 0 }
  0x57   : > { %s2462_s13 = sshll.u32 %s230_s14, 3  ;;  %s240_s15 = sadd.s32 %s3114_s8, %s3074_s11 }
  0x58   : > { %4792 = sst [smem:[#allocation27_spill]] %s4791_s12  ;;  %s2465_s29 = sshll.u32 %s240_s15, 5 }
  0x59   : > { %s234_s3 = scalar_lea.vmem [#allocation4], %s2462_s13  ;;  %s4793_s0 = sld [smem:[#allocation28_spill]] }
  0x5a   : > { %s244_s5 = sshll.u32 %s234_s3, 4  ;;  %p4794_p6 = scmp.lt.s32.totalorder %s2946_s6, 4  ;;  %s3212_s5 = int_to_ptr.vmem [resolvable:$true] %s244_s5 }
  0x5b   : > { %s231_s13 = scalar_lea.sflag [#allocation5], %s230_s14 }
  0x5c   : > { %p3218_p3 = pnand %p4794_p6, %p3183_p10 }
  0x5e   : > { %p2734_p7 = pneg %p3218_p3 }
  0x5f   : > { %s3210_s30 = scalar_lea.hbm %s4793_s0, %s2465_s29  ;;  %s2737_s28 = scalar_lea.hbm %s4793_s0, 512 }
  0x60   : > { %s2732_s15 = scalar_lea.hbm %s3210_s30, 128  ;;  %p2738_p10 = scmp.lt.u32.totalorder %s3210_s30, %s4793_s0 }
  0x61   : > { %p2733_p4 = scmp.ne.s32.totalorder %s3210_s30, %s2732_s15  ;;  %p2739_p8 = scmp.lt.u32.totalorder %s2737_s28, %s2732_s15 }
  0x62   : > { %p2741_p6 = scmp.lt.u32.totalorder %s2732_s15, %s3210_s30 }
  0x63   : > { %p2735_p0 = pnand %p2734_p7, %p2733_p4  ;;  %p2740_p12 = por %p2739_p8, %p2738_p10 }
  0x65   : > { %p2736_p5 = pneg %p2735_p0  ;;  %p2742_p1 = por %p2741_p6, %p2740_p12 }
  0x67   : > { %p2743_p2 = pnand %p2742_p1, %p2736_p5 }
  0x69   : > { %2746 = shalt.err (!%p2743_p2)
}
  0x6a   : > { %s2747_s14 = scalar_lea.vmem %s3212_s5, 128  ;;  %s2949_s1 = smov [#allocation4]  }
  0x6b   : > { %p2748_p4 = scmp.ne.s32.totalorder %s3212_s5, %s2747_s14  ;;  %s2752_s29 = sshll.u32 %s2949_s1, 4  ;;  %s2753_s29 = int_to_ptr.vmem [resolvable:$false] %s2752_s29 }
  0x6c   : > { %s2754_s3 = scalar_lea.vmem %s2753_s29, 256  ;;  %p2755_p9 = scmp.lt.s32.totalorder %s3212_s5, %s2753_s29 }
  0x6d   : > { %p2750_p0 = pnand %p2748_p4, %p2734_p7  ;;  %p2756_p10 = scmp.lt.s32.totalorder %s2754_s3, %s2747_s14 }
  0x6f   : > { %p2751_p11 = pneg %p2750_p0  ;;  %p2757_p8 = por %p2756_p10, %p2755_p9 }
  0x71   : > { %p2758_p12 = pnand %p2757_p8, %p2751_p11 }
  0x73   : > { %2761 = shalt.err (!%p2758_p12)
}
  0x74   : > { %s4796_s15 = sld [smem:[#allocation24_spill]]  ;;  %s105_s28 = sadd.s32 4, %s3074_s11 }
  0x75   : > { %2564 = dma.hbm_to_vmem [thread:$0]  (!%p3218_p3), %s3210_s30, 128, %s3212_s5, %s231_s13  }
  0x76   : > { %s117_s2 = sadd.s32 1, %s2902_s20  ;;  %p106_p11 = scmp.lt.s32.totalorder %s105_s28, 7 }
  0x77   : > { %p124_p9 = scmp.ne.s32.totalorder %s2902_s20, %s2898_s19  ;;  %p4797_p2 = scmp.lt.s32.totalorder %s3093_s9, 7 }
  0x78   : > { %s4972_s28 = smov (!%p106_p11, %s105_s28), 7  ;;  %p4798_p1 = scmp.eq.s32.totalorder %s2946_s6, 0 }
  0x79   : > { %s4970_s9 = smov (!%p4797_p2, %s3093_s9), 7  ;;  %p130_p5 = scmp.ne.s32.totalorder %s2898_s19, %s2894_s18 }
  0x7a   : > { %p3256_p7 = por %p124_p9, %p4798_p1  ;;  %s113_s14 = ssub.s32 %s4972_s28, %s4970_s9 }
  0x7b   : > { %s277_s1 = sand.u32 1, %s2902_s20   ;;  %s114_s29 = sor.u32 %s113_s14, %s4796_s15 }
  0x7c   : > { %p4800_p3 = scmp.eq.s32.totalorder %s3062_s7, 0  ;;  %p115_p4 = scmp.eq.s32.totalorder %s114_s29, 0 }
  0x7d   : > { %s2471_s11 = sshll.u32 %s277_s1, 1  ;;  %s288_s5 = sadd.s32 %s3114_s8, %s4972_s28 }
  0x7e   : > { %p3266_p6 = por %p130_p5, %p4800_p3  ;;  %s2474_s3 = sshll.u32 %s288_s5, 5 }
  0x7f   : > { %s3272_s13 = scalar_select %p115_p4, %s2902_s20, %s117_s2  }
  0x80   : > { %s4801_s30 = scalar_select %p3266_p6, 1, 0 }
  0x81   : > { %s279_s0 = scalar_lea.vmem [#allocation9], %s2471_s11  ;;  %s4802_s12 = sld [smem:[#allocation30_spill]] }
  0x82   : > { %s292_s26 = sshll.u32 %s279_s0, 4  ;;  %p4803_p0 = scmp.lt.s32.totalorder %s2946_s6, 4  ;;  %s3279_s26 = int_to_ptr.vmem [resolvable:$true] %s292_s26 }
  0x84   : > { %p3285_p10 = pnand %p4803_p0, %p3256_p7 }
  0x86   : > { %p2764_p12 = pneg %p3285_p10 }
  0x87   : > { %s3277_s18 = scalar_lea.hbm %s4802_s12, %s2474_s3  ;;  %s2767_s8 = scalar_lea.hbm %s4802_s12, 512 }
  0x88   : > { %s2762_s0 = scalar_lea.hbm %s3277_s18, 32  ;;  %p2768_p2 = scmp.lt.u32.totalorder %s3277_s18, %s4802_s12 }
  0x89   : > { %p2763_p8 = scmp.ne.s32.totalorder %s3277_s18, %s2762_s0  ;;  %p2769_p1 = scmp.lt.u32.totalorder %s2767_s8, %s2762_s0 }
  0x8a   : > { %p2771_p5 = scmp.lt.u32.totalorder %s2762_s0, %s3277_s18 }
  0x8b   : > { %p2765_p11 = pnand %p2764_p12, %p2763_p8  ;;  %p2770_p7 = por %p2769_p1, %p2768_p2 }
  0x8d   : > { %p2766_p9 = pneg %p2765_p11  ;;  %p2772_p3 = por %p2771_p5, %p2770_p7 }
  0x8f   : > { %p2773_p4 = pnand %p2772_p3, %p2766_p9 }
  0x91   : > { %2776 = shalt.err (!%p2773_p4)
}
  0x92   : > { %s2777_s2 = scalar_lea.vmem %s3279_s26, 32  ;;  %s2950_s22 = smov [#allocation9]  }
  0x93   : > { %p2778_p0 = scmp.ne.s32.totalorder %s3279_s26, %s2777_s2  ;;  %s2782_s14 = sshll.u32 %s2950_s22, 4  ;;  %s2783_s14 = int_to_ptr.vmem [resolvable:$false] %s2782_s14 }
  0x94   : > { %s2784_s1 = scalar_lea.vmem %s2783_s14, 64  ;;  %p2785_p6 = scmp.lt.s32.totalorder %s3279_s26, %s2783_s14 }
  0x95   : > { %p2780_p8 = pnand %p2778_p0, %p2764_p12  ;;  %p2786_p2 = scmp.lt.s32.totalorder %s2784_s1, %s2777_s2 }
  0x97   : > { %p2781_p11 = pneg %p2780_p8  ;;  %p2787_p1 = por %p2786_p2, %p2785_p6 }
  0x99   : > { %p2788_p7 = pnand %p2787_p1, %p2781_p11 }
  0x9b   : > { %2791 = shalt.err (!%p2788_p7)
}
  0x9c   : > { %2570 = dma.hbm_to_vmem [thread:$0]  (!%p3285_p10), %s3277_s18, 32, %s3279_s26, %s3136_s4  }
  0x9d   : > { %301 = sbr.rel (%p3168_p13) target bundleno = 831 (0x33f), region = 40  ;;  %s3318_s29 = sand.u32 (!%p3168_p13), 1, %s2922_s25  }
  0x9e   : > { %s2476_s11 = sshll.u32 (!%p3168_p13), %s3318_s29, 3  ;;  %s304_s5 = scalar_lea.sflag (!%p3168_p13), [#allocation5], %s3318_s29 }
  0x9f   : > { %s3322_s3 = scalar_lea.vmem (!%p3168_p13), [#allocation4], %s2476_s11  ;;  %p4805_p6 = scmp.ne.s32.totalorder (!%p3168_p13), %s4789_s27, 0 }
  0xa4   : > { %2877 = dma.done.wait (%p4805_p6), %s304_s5, 128  }
  0xa5   : > { %2879 = vsyncadd (%p4805_p6), %s304_s5, 4294967168  ;;  %s4806_s26 = sld [smem:[#allocation15_spill]]  ;;  %s312_s4 = sand.u32 1, %s3062_s7  }
  0xa6   : > { %s313_s9 = scalar_lea.sflag [#allocation8], %s312_s4  ;;  %p4807_p13 = scmp.ne.s32.totalorder %s4777_s10, 0 }
  0xab   : > { %s314_s17 = sand.u32 1, %s4806_s26  }
  0xac   : > { %s3330_s18 = sshll.u32 %s314_s17, 1 }
  0xad   : > { %s316_s0 = scalar_lea.vmem [#allocation7], %s3330_s18 }
  0xae   : > { %2881 = dma.done.wait (%p4807_p13), %s313_s9, 32  }
  0xaf   : > { %2883 = vsyncadd (%p4807_p13), %s313_s9, 4294967264  ;;  %s4808_s23 = sld [smem:[#allocation18_spill]]  ;;  %s323_s27 = sand.u32 1, %s2898_s19   ;;  %v405_v0 = vlaneseq }
  0xb0   : > { %s3338_s21 = sshll.u32 %s323_s27, 1  ;;  %p4809_p10 = scmp.ne.s32.totalorder %s4801_s30, 0 }
  0xb1   : > { %s325_s8 = scalar_lea.vmem [#allocation9], %s3338_s21 }
  0xb5   : > { %s3342_s7 = sshll.u32 %s4808_s23, 2 }
  0xb6   : > { %2885 = dma.done.wait (%p4809_p10), %s313_s9, 32  }
  0xb7   : > { %2887 = vsyncadd (%p4809_p10), %s313_s9, 4294967264  ;;  %s509_s15 = ssub.s32 1, %s3342_s7  ;;  %v2951_v1 = vmov 0   ;;  %v3354_v2 = vand.u32 127, %v405_v0  ;;  %v4810_v6 = vmov 0  ;;  %v4812_v10 = vmov 0 }
  0xb8   : > { %376 = vst [vmem:[#allocation2] sm:$0xcc] %v2951_v1  ;;  %377 = vst [vmem:[#allocation2 + $0x8] sm:$0xcc] %v2951_v1  ;;  %2698 = vset.pattern.permute.xlu0 %v2951_v1  ;;  %s2483_s10 = sshll.u32 %s509_s15, 7  ;;  %v4814_v11 = vmov 0 }
  0xb9   : > { %378 = vst [vmem:[#allocation2 + $0x10] sm:$0xcc] %v2951_v1  ;;  %379 = vst [vmem:[#allocation2 + $0x18] sm:$0xcc] %v2951_v1  ;;  %v511_v3 = vstv %s2483_s10  ;;  %v3357_v4 = vadd.s32 128, %v3354_v2  ;;  %v462_v5 = vand.u32 15, %v3354_v2 }
  0xba   : > { %vm3361_vm0 = vcmp.ge.s32.totalorder %v3354_v2, %v511_v3  ;;  %vm4702_vm1 = vcmp.ge.s32.totalorder %v3354_v2, 16  ;;  %v3367_v7 = vadd.s32 256, %v3354_v2  ;;  %v3370_v8 = vadd.s32 384, %v3354_v2  ;;  %v380_v16 = vld [vmem:[%s3322_s3] sm:$0xff]  ;;  %v401_v17 = vld [vmem:[%s316_s0] sm:$0x3] }
  0xbb   : > { %v4811_v6 = vsel %vm3361_vm0, 4294967295, %v4810_v6  ;;  %v469_v9 = vand.u32 15, %v3357_v4  ;;  %vm3374_vm2 = vcmp.ge.s32.totalorder %v3357_v4, %v511_v3  ;;  %vm3378_vm3 = vcmp.ge.s32.totalorder %v462_v5, 1  ;;  %vm3387_vm4 = vmand %vm3361_vm0, %vm4702_vm1  ;;  %402 = vst [vmem:[#allocation2 + $0x4] sm:$0x3] %v401_v17  ;;  %s2952_s30 = smov 127  }
  0xbc   : > { %v4813_v10 = vsel %vm3374_vm2, 4294967295, %v4812_v10  ;;  %v4815_v11 = vsel %vm3378_vm3, 4294967295, %v4814_v11  ;;  %v421_v12 = vand.u32 127, %v3357_v4  ;;  %vm697_vm5 = vmand %vm3361_vm0, %vm3378_vm3  ;;  %v428_v14 = vand.u32 127, %v3367_v7  ;;  %s2953_s28 = smov 112   ;;  %s2954_s2 = smov 111  }
  0xbd   : > { %v435_v15 = vand.u32 127, %v3370_v8  ;;  %vm3400_vm6 = vcmp.ge.s32.totalorder %v469_v9, 1  ;;  %v4818_v18 = vmov 0  ;;  %v4820_v19 = vmov 0  ;;  %s2955_s22 = smov 113   ;;  %s2956_s14 = smov 1  }
  0xbe   : > { %v4819_v18 = vsel %vm3400_vm6, 4294967295, %v4818_v18  ;;  %vm3406_vm7 = vcmp.ge.s32.totalorder %v421_v12, 16  ;;  %2481 = vst.sshfl [vmem:[#allocation2 + $0x8] sm:$0xf pattern:$0x76325410] %v380_v16  ;;  %vm698_vm9 = vmand %vm3374_vm2, %vm3400_vm6  ;;  %vm3419_vm11 = vcmp.ge.s32.totalorder %v3367_v7, %v511_v3  ;;  %vm3439_vm14 = vcmp.ge.s32.totalorder %v3370_v8, %v511_v3 }
  0xbf   : > { %v4821_v19 = vsel %vm3406_vm7, 4294967295, %v4820_v19  ;;  %vm709_vm10 = vmpackc.low %vm698_vm9, %vm697_vm5  ;;  %v4822_v20 = vmov 0  ;;  %vm3425_vm12 = vcmp.ge.s32.totalorder %v428_v14, 16  ;;  %v4824_v21 = vmov 0  ;;  %s2957_s1 = smov 15   ;;  %s2958_s11 = smov 16  }
  0xc0   : > { %v4823_v20 = vsel %vm3419_vm11, 4294967295, %v4822_v20  ;;  %v4825_v21 = vsel %vm3425_vm12, 4294967295, %v4824_v21  ;;  %v711_v22 = vsel %vm709_vm10, 65537, %v2951_v1  ;;  %vm3434_vm13 = vmand %vm3374_vm2, %vm3406_vm7  ;;  %v4828_v24 = vmov 0  ;;  %s2959_s5 = smov 17   ;;  %s1409_s3 = ssub.s32 7, %s3342_s7 }
  0xc1   : > { %v4829_v24 = vsel %vm3439_vm14, 4294967295, %v4828_v24  ;;  %vm3445_vm15 = vcmp.ge.s32.totalorder %v435_v15, 16  ;;  %v4830_v25 = vmov 0  ;;  %v476_v26 = vand.u32 15, %v3367_v7  ;;  %713 = vrot.lane.b32.xlu0 %v711_v22, %s2952_s30  ;;  %vm593_vm5 = vmpackc.low %vm3434_vm13, %vm3387_vm4  ;;  %s2484_s26 = sshll.u32 %s1409_s3, 7  ;;  %s4927_s18 = sld [smem:[#allocation31_spill]] }
  0xc2   : > { %v4831_v25 = vsel %vm3445_vm15, 4294967295, %v4830_v25  ;;  %v483_v27 = vand.u32 15, %v3370_v8  ;;  %v382_v28 = vcombine.high %v380_v16, %v380_v16  ;;  %v595_v29 = vsel %vm593_vm5, 65537, %v2951_v1  ;;  %vm3461_vm9 = vmand %vm3419_vm11, %vm3425_vm12  ;;  %s4928_s23 = sld [smem:[#allocation32_spill]]  ;;  %s4939_s27 = sld [smem:[#allocation19_spill]] }
  0xc3   : > { %597 = vrot.lane.b32.xlu1 %v595_v29, %s2953_s28  ;;  %vm3470_vm10 = vmand %vm3439_vm14, %vm3445_vm15  ;;  %vm3478_vm1 = vcmp.ge.s32.totalorder %v476_v26, 1  ;;  %v4836_v32 = vmov 0  ;;  %v4838_v34 = vmov 0  ;;  %v4843_v38 = vmov 0  ;;  %s2479_s21 = sshll.u32 %s3318_s29, 5  ;;  %p4941_p9 = scmp.ne.s32.totalorder %s4790_s16, 0 }
  0xc4   : > { %2482 = vst.sshfl [vmem:[#allocation2 + $0x10] sm:$0xf pattern:$0x76325410] %v382_v28  ;;  %vm594_vm5 = vmpackc.low %vm3470_vm10, %vm3461_vm9  ;;  %v4837_v32 = vsel %vm3478_vm1, 4294967295, %v4836_v32  ;;  %vm3487_vm7 = vcmp.ge.s32.totalorder %v483_v27, 1 }
  0xc5   : > { %v596_v33 = vsel %vm594_vm5, 65537, %v2951_v1  ;;  %vm529_vm8 = vmand %vm3434_vm13, %vm3400_vm6  ;;  %v4839_v34 = vsel %vm3487_vm7, 4294967295, %v4838_v34  ;;  %v4845_v40 = vmov 0  ;;  %v4847_v41 = vmov 0 }
  0xc6   : > { %vm4840_vm15 = vmand %vm3387_vm4, %vm3378_vm3  ;;  %vm3521_vm3 = vcmp.lt.s32.totalorder %v483_v27, 15  ;;  %v4851_v46 = vmov 0  ;;  %v4854_v47 = vmov 0  ;;  %v4861_v51 = vmov 0 }
  0xc7   : > { %vm540_vm12 = vmpackc.low %vm529_vm8, %vm4840_vm15  ;;  %599 = vrot.lane.b32.xlu1 %v596_v33, %s2953_s28  ;;  %v4844_v38 = vsel %vm3521_vm3, 4294967295, %v4843_v38  ;;  %v4882_v17 = vmov 0  ;;  %v4884_v22 = vmov 0  ;;  %v4896_v27 = vmov 0 }
  0xc8   : > { %v542_v35 = vsel %vm540_vm12, 65537, %v2951_v1  ;;  %vm699_vm5 = vmand %vm3419_vm11, %vm3478_vm1  ;;  %vm3512_vm12 = vcmp.lt.s32.totalorder %v476_v26, 15  ;;  %v4898_v28 = vmov 0 }
  0xc9   : > { %544 = vrot.lane.b32.xlu0 %v542_v35, %s2954_s2  ;;  %vm700_vm6 = vmand %vm3439_vm14, %vm3487_vm7 }
  0xca   : > { %vm710_vm2 = vmpackc.low %vm700_vm6, %vm699_vm5  ;;  %vm3530_vm5 = vcmp.lt.s32.totalorder %v462_v5, 15 }
  0xcb   : > { %v712_v36 = vsel %vm710_vm2, 65537, %v2951_v1  ;;  %vm530_vm8 = vmand %vm3461_vm9, %vm3478_vm1  ;;  %v4846_v40 = vsel %vm3530_vm5, 4294967295, %v4845_v40  ;;  %vm3539_vm1 = vcmp.lt.s32.totalorder %v469_v9, 15 }
  0xcc   : > { %715 = vrot.lane.b32.xlu1 %v712_v36, %s2952_s30  ;;  %vm531_vm15 = vmand %vm3470_vm10, %vm3487_vm7  ;;  %v4848_v41 = vsel %vm3539_vm1, 4294967295, %v4847_v41 }
  0xcd   : > { %vm541_vm2 = vmpackc.low %vm531_vm15, %vm530_vm8  ;;  %vm4719_vm15 = vcmp.lt.s32.totalorder %v3354_v2, 112 }
  0xce   : > { %v543_v39 = vsel %vm541_vm2, 65537, %v2951_v1  ;;  %vm643_vm6 = vmand %vm3461_vm9, %vm3512_vm12 }
  0xcf   : > { %546 = vrot.lane.b32.xlu0 %v543_v39, %s2954_s2  ;;  %vm644_vm7 = vmand %vm3470_vm10, %vm3521_vm3 }
  0xd0   : > { %vm654_vm8 = vmpackc.low %vm644_vm7, %vm643_vm6 }
  0xd1   : > { %v656_v42 = vsel %vm654_vm8, 65537, %v2951_v1  ;;  %vm641_vm9 = vmand %vm3387_vm4, %vm3530_vm5 }
  0xd2   : > { %659 = vrot.lane.b32.xlu1 %v656_v42, %s2955_s22  ;;  %vm642_vm10 = vmand %vm3434_vm13, %vm3539_vm1 }
  0xd3   : > { %vm653_vm2 = vmpackc.low %vm642_vm10, %vm641_vm9  ;;  %vm3579_vm9 = vcmp.lt.s32.totalorder %v428_v14, 112  ;;  %vm4853_vm10 = vnez %v4813_v10  ;;  %v1411_v14 = vstv %s2484_s26 }
  0xd4   : > { %v655_v43 = vsel %vm653_vm2, 65537, %v2951_v1  ;;  %vm771_vm7 = vmand %vm3419_vm11, %vm3512_vm12  ;;  %v4852_v46 = vsel %vm3579_vm9, 4294967295, %v4851_v46 }
  0xd5   : > { %657 = vrot.lane.b32.xlu0 %v655_v43, %s2955_s22  ;;  %vm772_vm4 = vmand %vm3439_vm14, %vm3521_vm3 }
  0xd6   : > { %vm3568_vm13 = vmand %vm3361_vm0, %vm4719_vm15 }
  0xd7   : > { %vm782_vm6 = vmpackc.low %vm772_vm4, %vm771_vm7  ;;  %vm3590_vm7 = vcmp.lt.s32.totalorder %v435_v15, 112 }
  0xd8   : > { %v784_v45 = vsel %vm782_vm6, 65537, %v2951_v1  ;;  %vm769_vm8 = vmand %vm3361_vm0, %vm3530_vm5  ;;  %v4855_v47 = vsel %vm3590_vm7, 4294967295, %v4854_v47  ;;  %vm4863_vm0 = vnez %v4839_v34 }
  0xd9   : > { %787 = vrot.lane.b32.xlu1 %v784_v45, %s2956_s14  ;;  %vm770_vm2 = vmand %vm4853_vm10, %vm3539_vm1 }
  0xda   : > { %vm781_vm4 = vmpackc.low %vm770_vm2, %vm769_vm8  ;;  %vm4860_vm8 = vnez %v4837_v32 }
  0xdb   : > { %v783_v48 = vsel %vm781_vm4, 65537, %v2951_v1  ;;  %vm3599_vm6 = vmand %vm3419_vm11, %vm3579_vm9  ;;  %vm3618_vm4 = vcmp.lt.s32.totalorder %v421_v12, 112  ;;  %vm4866_vm9 = vnez %v4815_v11 }
  0xdc   : > { %785 = vrot.lane.b32.xlu0 %v783_v48, %s2956_s14  ;;  %vm3608_vm15 = vmand %vm3439_vm14, %vm3590_vm7  ;;  %v4862_v51 = vsel %vm3618_vm4, 4294967295, %v4861_v51 }
  0xdd   : > { %vm833_vm2 = vmand %vm3599_vm6, %vm4860_vm8 }
  0xde   : > { %vm834_vm11 = vmand %vm3608_vm15, %vm4863_vm0 }
  0xdf   : > { %vm844_vm14 = vmpackc.low %vm834_vm11, %vm833_vm2  ;;  %vm4867_vm11 = vnez %v4819_v18 }
  0xe0   : > { %v846_v52 = vsel %vm844_vm14, 65537, %v2951_v1  ;;  %vm3631_vm7 = vmand %vm4853_vm10, %vm3618_vm4 }
  0xe1   : > { %849 = vrot.lane.b32.xlu1 %v846_v52, %s2957_s1  ;;  %vm831_vm8 = vmand %vm3568_vm13, %vm4866_vm9 }
  0xe2   : > { %vm832_vm14 = vmand %vm3631_vm7, %vm4867_vm11 }
  0xe3   : > { %vm843_vm2 = vmpackc.low %vm832_vm14, %vm831_vm8 }
  0xe4   : > { %v845_v54 = vsel %vm843_vm2, 65537, %v2951_v1  ;;  %vm893_vm10 = vmpackc.low %vm3631_vm7, %vm3568_vm13 }
  0xe5   : > { %847 = vrot.lane.b32.xlu0 %v845_v54, %s2957_s1  ;;  %vm894_vm4 = vmpackc.low %vm3608_vm15, %vm3599_vm6  ;;  %v895_v55 = vsel %vm893_vm10, 65537, %v2951_v1 }
  0xe6   : > { %v896_v56 = vsel %vm894_vm4, 65537, %v2951_v1  ;;  %vm935_vm8 = vmand %vm3568_vm13, %vm3530_vm5 }
  0xe7   : > { %899 = vrot.lane.b32.xlu1 %v896_v56, %s2958_s11  ;;  %vm936_vm14 = vmand %vm3631_vm7, %vm3539_vm1  ;;  %vm4868_vm7 = vnez %v4837_v32 }
  0xe8   : > { %vm947_vm2 = vmpackc.low %vm936_vm14, %vm935_vm8  ;;  %vm4869_vm8 = vnez %v4825_v21 }
  0xe9   : > { %897 = vrot.lane.b32.xlu0 %v895_v55, %s2958_s11  ;;  %vm937_vm10 = vmand %vm3599_vm6, %vm3512_vm12  ;;  %v949_v57 = vsel %vm947_vm2, 65537, %v2951_v1  ;;  %vm4870_vm6 = vnez %v4831_v25  ;;  %v696_v55 = vld [vmem:[#allocation2 + $0x10] sm:$0xf] }
  0xea   : > { %vm938_vm13 = vmand %vm3608_vm15, %vm3521_vm3  ;;  %vm4871_vm15 = vcmp.ge.s32.totalorder %v3354_v2, 16 }
  0xeb   : > { %vm948_vm4 = vmpackc.low %vm938_vm13, %vm937_vm10  ;;  %vm4872_vm13 = vnez %v4821_v19 }
  0xec   : > { %v950_v58 = vsel %vm948_vm4, 65537, %v2951_v1  ;;  %vm991_vm14 = vmand %vm4869_vm8, %vm4868_vm7 }
  0xed   : > { %951 = vrot.lane.b32.xlu0 %v949_v57, %s2959_s5  ;;  %953 = vrot.lane.b32.xlu1 %v950_v58, %s2959_s5  ;;  %vm992_vm2 = vmand %vm4870_vm6, %vm4863_vm0 }
  0xee   : > { %vm1002_vm1 = vmpackc.low %vm992_vm2, %vm991_vm14 }
  0xef   : > { %v1004_v59 = vsel %vm1002_vm1, 65537, %v2951_v1  ;;  %vm989_vm10 = vmand %vm4871_vm15, %vm4866_vm9 }
  0xf0   : > { %vm990_vm4 = vmand %vm4872_vm13, %vm4867_vm11 }
  0xf1   : > { %1007 = vrot.lane.b32.xlu1 %v1004_v59, %s2954_s2  ;;  %vm1001_vm7 = vmpackc.low %vm990_vm4, %vm989_vm10  ;;  %vm4874_vm4 = vnez %v4848_v41  ;;  %v4053_v59 = vld [vmem:[#allocation2] sm:$0xff] }
  0xf2   : > { %v1003_v60 = vsel %vm1001_vm7, 65537, %v2951_v1  ;;  %vm4873_vm0 = vmmov %vm4871_vm15 }
  0xf3   : > { %vm1051_vm1 = vmpackc.low %vm4872_vm13, %vm4873_vm0  ;;  %1005 = vrot.lane.b32.xlu0 %v1003_v60, %s2954_s2 }
  0xf4   : > { %vm1052_vm14 = vmpackc.low %vm4870_vm6, %vm4869_vm8  ;;  %v1053_v61 = vsel %vm1051_vm1, 65537, %v2951_v1 }
  0xf5   : > { %v1054_v62 = vsel %vm1052_vm14, 65537, %v2951_v1  ;;  %vm1095_vm7 = vmand %vm4869_vm8, %vm3512_vm12 }
  0xf6   : > { %1057 = vrot.lane.b32.xlu1 %v1054_v62, %s2953_s28  ;;  %vm1096_vm0 = vmand %vm4870_vm6, %vm3521_vm3 }
  0xf7   : > { %vm1106_vm2 = vmpackc.low %vm1096_vm0, %vm1095_vm7  ;;  %1055 = vrot.lane.b32.xlu0 %v1053_v61, %s2953_s28  ;;  %vm4875_vm0 = vnez %v4837_v32 }
  0xf8   : > { %v1108_v63 = vsel %vm1106_vm2, 65537, %v2951_v1  ;;  %vm1093_vm10 = vmand %vm4871_vm15, %vm3530_vm5  ;;  %vm4876_vm2 = vnez %v4839_v34 }
  0xf9   : > { %vm1094_vm1 = vmand %vm4872_vm13, %vm4874_vm4 }
  0xfa   : > { %1111 = vrot.lane.b32.xlu1 %v1108_v63, %s2955_s22  ;;  %vm1105_vm14 = vmpackc.low %vm1094_vm1, %vm1093_vm10 }
  0xfb   : > { %v1107_v0 = vsel %vm1105_vm14, 65537, %v2951_v1  ;;  %vm1155_vm7 = vmpackc.low %vm4867_vm11, %vm4866_vm9  ;;  %vm4877_vm14 = vnez %v4852_v46 }
  0xfc   : > { %1109 = vrot.lane.b32.xlu0 %v1107_v0, %s2955_s22  ;;  %vm1156_vm15 = vmpackc.low %vm4876_vm2, %vm4875_vm0  ;;  %v1157_v3 = vsel %vm1155_vm7, 65537, %v2951_v1 }
  0xfd   : > { %v1158_v5 = vsel %vm1156_vm15, 65537, %v2951_v1  ;;  %vm1210_vm10 = vmpackc.low %vm3521_vm3, %vm3512_vm12  ;;  %vm4878_vm15 = vnez %v4855_v47 }
  0xfe   : > { %1161 = vrot.lane.b32.xlu1 %v1158_v5, %s2952_s30  ;;  %vm1209_vm1 = vmpackc.low %vm4874_vm4, %vm3530_vm5  ;;  %v1212_v9 = vsel %vm1210_vm10, 65537, %v2951_v1  ;;  %vm4879_vm10 = vcmp.lt.s32.totalorder %v3354_v2, 112  ;;  %vm4880_vm5 = vnez %v4862_v51 }
  0xff   : > { %vm1253_vm7 = vmand %vm4877_vm14, %vm4875_vm0  ;;  %v1211_v12 = vsel %vm1209_vm1, 65537, %v2951_v1 }
 0x100   : > { %1159 = vrot.lane.b32.xlu0 %v1157_v3, %s2952_s30  ;;  %vm1254_vm13 = vmand %vm4878_vm15, %vm4876_vm2 }
 0x101   : > { %vm1264_vm6 = vmpackc.low %vm1254_vm13, %vm1253_vm7  ;;  %vm3798_vm7 = vcmp.lt.s32.totalorder %v3370_v8, %v1411_v14 }
 0x102   : > { %1215 = vrot.lane.b32.xlu1 %v1212_v9, %s2956_s14  ;;  %vm1251_vm4 = vmand %vm4879_vm10, %vm4866_vm9  ;;  %v1266_v13 = vsel %vm1264_vm6, 65537, %v2951_v1  ;;  %v4885_v22 = vsel %vm3798_vm7, 4294967295, %v4884_v22  ;;  %v768_v9 = vld [vmem:[#allocation2 + $0x14] sm:$0xf] }
 0x103   : > { %vm1252_vm0 = vmand %vm4880_vm5, %vm4867_vm11 }
 0x104   : > { %1213 = vrot.lane.b32.xlu0 %v1211_v12, %s2956_s14  ;;  %vm1263_vm2 = vmpackc.low %vm1252_vm0, %vm1251_vm4  ;;  %vm3788_vm0 = vcmp.lt.s32.totalorder %v3367_v7, %v1411_v14 }
 0x105   : > { %v1265_v15 = vsel %vm1263_vm2, 65537, %v2951_v1  ;;  %vm1314_vm13 = vmpackc.low %vm4878_vm15, %vm4877_vm14  ;;  %v4883_v17 = vsel %vm3788_vm0, 4294967295, %v4882_v17 }
 0x106   : > { %1269 = vrot.lane.b32.xlu1 %v1266_v13, %s2957_s1  ;;  %vm4881_vm6 = vmmov %vm4879_vm10  ;;  %v1316_v16 = vsel %vm1314_vm13, 65537, %v2951_v1 }
 0x107   : > { %vm1313_vm1 = vmpackc.low %vm4880_vm5, %vm4881_vm6  ;;  %vm4888_vm6 = vnez %v4831_v25  ;;  %v403_v25 = vld [vmem:[%s325_s8] sm:$0x3]  ;;  %s2549_s8 = sshll.u32 %s4939_s27, 3 }
 0x108   : > { %vm1357_vm4 = vmand %vm4877_vm14, %vm3512_vm12  ;;  %1267 = vrot.lane.b32.xlu0 %v1265_v15, %s2957_s1  ;;  %v1315_v23 = vsel %vm1313_vm1, 65537, %v2951_v1  ;;  %vm4891_vm1 = vnez %v4837_v32  ;;  %vm4894_vm14 = vcmp.lt.s32.totalorder %v3354_v2, 112  ;;  %404 = vst [vmem:[#allocation2 + $0x18] sm:$0x3] %v403_v25  ;;  %v822_v25 = vld [vmem:[#allocation2 + $0x14] sm:$0xf]  ;;  %s2314_s15 = sadd.s32 %s2549_s8, %s3342_s7 }
 0x109   : > { %vm1358_vm2 = vmand %vm4878_vm15, %vm3521_vm3  ;;  %vm3843_vm3 = vcmp.lt.s32.totalorder %v3354_v2, %v1411_v14  ;;  %s2550_s10 = sshll.u32 %s2314_s15, 7 }
 0x10a   : > { %vm1368_vm10 = vmpackc.low %vm1358_vm2, %vm1357_vm4  ;;  %1319 = vrot.lane.b32.xlu1 %v1316_v16, %s2958_s11  ;;  %vm4892_vm4 = vnez %v4839_v34  ;;  %v4897_v27 = vsel %vm3843_vm3, 4294967295, %v4896_v27 }
 0x10b   : > { %vm3808_vm13 = vmand %vm3788_vm0, %vm4869_vm8  ;;  %v1370_v26 = vsel %vm1368_vm10, 65537, %v2951_v1  ;;  %vm4895_vm0 = vnez %v4848_v41 }
 0x10c   : > { %vm3817_vm15 = vmand %vm3798_vm7, %vm4888_vm6  ;;  %1317 = vrot.lane.b32.xlu0 %v1315_v23, %s2958_s11  ;;  %vm4893_vm6 = vnez %v4846_v40  ;;  %v508_v23 = vld [vmem:[#allocation2 + $0x10] sm:$0xf] }
 0x10d   : > { %vm1422_vm8 = vmand %vm3808_vm13, %vm4891_vm1 }
 0x10e   : > { %vm1423_vm2 = vmand %vm3817_vm15, %vm4892_vm4  ;;  %1373 = vrot.lane.b32.xlu1 %v1370_v26, %s2959_s5 }
 0x10f   : > { %vm1433_vm10 = vmpackc.low %vm1423_vm2, %vm1422_vm8  ;;  %vm3848_vm2 = vcmp.lt.s32.totalorder %v3357_v4, %v1411_v14 }
 0x110   : > { %v1435_v21 = vsel %vm1433_vm10, 65537, %v2951_v1  ;;  %vm1355_vm7 = vmand %vm4894_vm14, %vm4893_vm6  ;;  %v4899_v28 = vsel %vm3848_vm2, 4294967295, %v4898_v28  ;;  %vm4903_vm10 = vnez %v4821_v19 }
 0x111   : > { %vm1356_vm1 = vmand %vm4880_vm5, %vm4895_vm0 }
 0x112   : > { %vm1367_vm8 = vmpackc.low %vm1356_vm1, %vm1355_vm7  ;;  %1438 = vrot.lane.b32.xlu1 %v1435_v21, %s2954_s2  ;;  %vm4900_vm7 = vcmp.ge.s32.totalorder %v3354_v2, 16 }
 0x113   : > { %v1369_v29 = vsel %vm1367_vm8, 65537, %v2951_v1  ;;  %vm1483_vm14 = vmpackc.low %vm3817_vm15, %vm3808_vm13 }
 0x114   : > { %1371 = vrot.lane.b32.xlu0 %v1369_v29, %s2959_s5  ;;  %v1485_v30 = vsel %vm1483_vm14, 65537, %v2951_v1  ;;  %vm3864_vm1 = vmand %vm3843_vm3, %vm4900_vm7  ;;  %v636_v29 = vld [vmem:[#allocation2 + $0x10] sm:$0xf] }
 0x115   : > { %vm3872_vm8 = vmand %vm3848_vm2, %vm4903_vm10  ;;  %vm4906_vm2 = vnez %v4844_v38 }
 0x116   : > { %vm1420_vm14 = vmand %vm3864_vm1, %vm4866_vm9  ;;  %1488 = vrot.lane.b32.xlu1 %v1485_v30, %s2953_s28 }
 0x117   : > { %vm1421_vm7 = vmand %vm3872_vm8, %vm4867_vm11  ;;  %vm4907_vm11 = vnez %v4837_v32 }
 0x118   : > { %vm1432_vm5 = vmpackc.low %vm1421_vm7, %vm1420_vm14  ;;  %vm4908_vm14 = vnez %v4883_v17 }
 0x119   : > { %v1434_v19 = vsel %vm1432_vm5, 65537, %v2951_v1  ;;  %vm1526_vm10 = vmand %vm3808_vm13, %vm3512_vm12  ;;  %vm4909_vm13 = vnez %v4885_v22 }
 0x11a   : > { %1436 = vrot.lane.b32.xlu0 %v1434_v19, %s2954_s2  ;;  %vm1527_vm3 = vmand %vm3817_vm15, %vm4906_vm2 }
 0x11b   : > { %vm1537_vm9 = vmpackc.low %vm1527_vm3, %vm1526_vm10 }
 0x11c   : > { %v1539_v33 = vsel %vm1537_vm9, 65537, %v2951_v1  ;;  %vm1580_vm5 = vmand %vm4908_vm14, %vm4907_vm11 }
 0x11d   : > { %1542 = vrot.lane.b32.xlu1 %v1539_v33, %s2955_s22  ;;  %vm1581_vm7 = vmand %vm4909_vm13, %vm4892_vm4 }
 0x11e   : > { %vm1591_vm0 = vmpackc.low %vm1581_vm7, %vm1580_vm5  ;;  %vm4910_vm5 = vnez %v4848_v41 }
 0x11f   : > { %v1593_v35 = vsel %vm1591_vm0, 65537, %v2951_v1  ;;  %vm1482_vm3 = vmpackc.low %vm3872_vm8, %vm3864_vm1 }
 0x120   : > { %v1484_v36 = vsel %vm1482_vm3, 65537, %v2951_v1  ;;  %vm1650_vm9 = vmand %vm4908_vm14, %vm3512_vm12 }
 0x121   : > { %1596 = vrot.lane.b32.xlu1 %v1593_v35, %s2952_s30  ;;  %1486 = vrot.lane.b32.xlu0 %v1484_v36, %s2953_s28  ;;  %vm1651_vm15 = vmand %vm4909_vm13, %vm4906_vm2  ;;  %vm4911_vm2 = vnez %v4852_v46  ;;  %v4084_v36 = vld [vmem:[#allocation2 + $0xc] sm:$0xff] }
 0x122   : > { %vm1661_vm0 = vmpackc.low %vm1651_vm15, %vm1650_vm9 }
 0x123   : > { %v1663_v39 = vsel %vm1661_vm0, 65537, %v2951_v1  ;;  %vm1524_vm10 = vmand %vm3864_vm1, %vm4893_vm6  ;;  %vm4914_vm1 = vnez %v4855_v47 }
 0x124   : > { %vm1525_vm7 = vmand %vm3872_vm8, %vm4910_vm5 }
 0x125   : > { %1666 = vrot.lane.b32.xlu1 %v1663_v39, %s2956_s14  ;;  %vm1536_vm3 = vmpackc.low %vm1525_vm7, %vm1524_vm10  ;;  %vm4917_vm10 = vnez %v4815_v11  ;;  %vm4918_vm7 = vnez %v4897_v27  ;;  %v4086_v39 = vld [vmem:[#allocation2 + $0x4] sm:$0xff] }
 0x126   : > { %v1538_v42 = vsel %vm1536_vm3, 65537, %v2951_v1  ;;  %vm3936_vm9 = vmand %vm4908_vm14, %vm4911_vm2 }
 0x127   : > { %1540 = vrot.lane.b32.xlu0 %v1538_v42, %s2955_s22  ;;  %vm3945_vm8 = vmand %vm4909_vm13, %vm4914_vm1  ;;  %vm4919_vm1 = vnez %v4819_v18  ;;  %vm4920_vm13 = vnez %v4899_v28 }
 0x128   : > { %vm1708_vm15 = vmand %vm3936_vm9, %vm4907_vm11 }
 0x129   : > { %vm1709_vm2 = vmand %vm3945_vm8, %vm4892_vm4 }
 0x12a   : > { %vm1719_vm0 = vmpackc.low %vm1709_vm2, %vm1708_vm15 }
 0x12b   : > { %v1721_v45 = vsel %vm1719_vm0, 65537, %v2951_v1  ;;  %vm1578_vm3 = vmand %vm4918_vm7, %vm4917_vm10 }
 0x12c   : > { %1724 = vrot.lane.b32.xlu1 %v1721_v45, %s2957_s1  ;;  %vm1579_vm11 = vmand %vm4920_vm13, %vm4919_vm1 }
 0x12d   : > { %vm1590_vm14 = vmpackc.low %vm1579_vm11, %vm1578_vm3  ;;  %vm4921_vm3 = vnez %v4844_v38 }
 0x12e   : > { %v1592_v32 = vsel %vm1590_vm14, 65537, %v2951_v1  ;;  %vm1769_vm4 = vmpackc.low %vm3945_vm8, %vm3936_vm9 }
 0x12f   : > { %1594 = vrot.lane.b32.xlu0 %v1592_v32, %s2952_s30  ;;  %v1771_v34 = vsel %vm1769_vm4, 65537, %v2951_v1  ;;  %vm1648_vm15 = vmand %vm4918_vm7, %vm4893_vm6 }
 0x130   : > { %1774 = vrot.lane.b32.xlu1 %v1771_v34, %s2958_s11  ;;  %vm1649_vm14 = vmand %vm4920_vm13, %vm4910_vm5  ;;  %vm4922_vm5 = vcmp.lt.s32.totalorder %v3354_v2, 112 }
 0x131   : > { %vm1660_vm2 = vmpackc.low %vm1649_vm14, %vm1648_vm15 }
 0x132   : > { %v1662_v46 = vsel %vm1660_vm2, 65537, %v2951_v1  ;;  %vm1812_vm0 = vmand %vm3936_vm9, %vm3512_vm12  ;;  %vm4925_vm12 = vnez %v4862_v51  ;;  %v584_v51 = vld [vmem:[#allocation2 + $0x10] sm:$0xf] }
 0x133   : > { %1664 = vrot.lane.b32.xlu0 %v1662_v46, %s2956_s14  ;;  %vm1813_vm11 = vmand %vm3945_vm8, %vm4921_vm3  ;;  %v4011_v37 = vpop.permute.xlu0 %713 }
 0x134   : > { %vm1823_vm4 = vmpackc.low %vm1813_vm11, %vm1812_vm0  ;;  %vm4926_vm0 = vnez %v4848_v41  ;;  %vm603_vm11 = vcmask 916480   ;;  %v717_v56 = vrot.slane %v4011_v37, 4 }
 0x135   : > { %v1825_v47 = vsel %vm1823_vm4, 65537, %v2951_v1  ;;  %vm3998_vm15 = vmand %vm4918_vm7, %vm4922_vm5  ;;  %v4015_v2 = vpop.permute.xlu1 %597 }
 0x136   : > { %1828 = vrot.lane.b32.xlu1 %v1825_v47, %s2959_s5  ;;  %vm1703_vm9 = vmand %vm4920_vm13, %vm4925_vm12  ;;  %v601_v52 = vrot.slane %v4015_v2, 4 }
 0x137   : > { %vm1706_vm8 = vmand %vm3998_vm15, %vm4917_vm10 }
 0x138   : > { %vm1707_vm5 = vmand %vm1703_vm9, %vm4919_vm1  ;;  %v604_v57 = vsel %vm603_vm11, %v601_v52, %v4015_v2 }
 0x139   : > { %vm1718_vm14 = vmpackc.low %vm1707_vm5, %vm1706_vm8  ;;  %v4028_v18 = vpop.permute.xlu1 %599  ;;  %vm607_vm12 = vcmp.ne.s16.totalorder %v604_v57, 0 }
 0x13a   : > { %v1720_v38 = vsel %vm1718_vm14, 65537, %v2951_v1  ;;  %vm1768_vm2 = vmpackc.low %vm1703_vm9, %vm3998_vm15  ;;  %v602_v49 = vrot.slane %v4028_v18, 4  ;;  %v610_v62 = vsel %vm607_vm12, %v4053_v59, 0  ;;  %vm552_vm14 = vcmask 1043456  }
 0x13b   : > { %1722 = vrot.lane.b32.xlu0 %v1720_v38, %s2957_s1  ;;  %vm1810_vm10 = vmand %vm3998_vm15, %vm4893_vm6  ;;  %v1770_v11 = vsel %vm1768_vm2, 65537, %v2951_v1  ;;  %v4031_v50 = vpop.permute.xlu0 %544  ;;  %vm719_vm15 = vcmask 1039360   ;;  %vm742_vm2 = vcmask 7168   ;;  %vm4759_vm12 = vcmask 130048  }
 0x13c   : > { %vm1811_vm1 = vmand %vm1703_vm9, %vm4926_vm0  ;;  %vm609_vm6 = vcmp.ne.s16.totalorder %v602_v49, 0  ;;  %v720_v61 = vsel %vm719_vm15, %v717_v56, %v4011_v37  ;;  %v548_v42 = vrot.slane %v4031_v50, 4 }
 0x13d   : > { %vm1822_vm3 = vmpackc.low %vm1811_vm1, %vm1810_vm10  ;;  %v612_v53 = vsel %vm609_vm6, %v584_v51, 0  ;;  %vm723_vm9 = vcmp.ne.s16.totalorder %v720_v61, 0  ;;  %vm686_vm1 = vcmask 121856  }
 0x13e   : > { %v1824_v40 = vsel %vm1822_vm3, 65537, %v2951_v1  ;;  %v4038_v41 = vpop.permute.xlu1 %715  ;;  %620 = vrot.lane.b32.xlu1 %v612_v53, %s2958_s11  ;;  %v726_v3 = vsel %vm723_vm9, %v4053_v59, 0 }
 0x13f   : > { %1772 = vrot.lane.b32.xlu0 %v1770_v11, %s2958_s11  ;;  %v718_v54 = vrot.slane %v4038_v41, 4 }
 0x141   : > { %v4048_v58 = vpop.permute.xlu0 %546  ;;  %vm725_vm4 = vcmp.ne.s16.totalorder %v718_v54, 0 }
 0x142   : > { %v728_v1 = vsel %vm725_vm4, %v696_v55, 0  ;;  %v549_v12 = vrot.slane %v4048_v58, 4  ;;  %vm550_vm4 = vcmask 908288  }
 0x143   : > { %1826 = vrot.lane.b32.xlu0 %v1824_v40, %s2959_s5  ;;  %736 = vrot.lane.b32.xlu1 %v728_v1, %s2956_s14  ;;  %v551_v48 = vsel %vm550_vm4, %v548_v42, %v4031_v50  ;;  %v605_v50 = vsel %vm552_vm14, %v601_v52, %v602_v49 }
 0x144   : > { %v4055_v60 = vpop.permute.xlu1 %659  ;;  %vm557_vm5 = vcmp.ne.s16.totalorder %v549_v12, 0  ;;  %v553_v40 = vsel %vm552_vm14, %v548_v42, %v549_v12  ;;  %v606_v49 = vsel %vm603_vm11, %v605_v50, %v4028_v18 }
 0x145   : > { %v662_v16 = vrot.slane %v4055_v60, 4  ;;  %v560_v8 = vsel %vm557_vm5, %v508_v23, 0 }
 0x147   : > { %v4062_v63 = vpop.permute.xlu0 %657  ;;  %616 = vrot.lane.b32.xlu1 %v610_v62, %s2958_s11  ;;  %vm669_vm10 = vcmp.ne.s16.totalorder %v662_v16, 0 }
 0x148   : > { %v672_v33 = vsel %vm669_vm10, %v636_v29, 0  ;;  %v661_v38 = vrot.slane %v4062_v63, 4  ;;  %vm555_vm10 = vcmp.ne.s16.totalorder %v551_v48, 0 }
 0x14a   : > { %v665_v2 = vsel %vm552_vm14, %v661_v38, %v662_v16 }
 0x14b   : > { %v788_v0 = vpop.permute.xlu1 %787  ;;  %732 = vrot.lane.b32.xlu1 %v726_v3, %s2956_s14 }
 0x14c   : > { %v790_v5 = vrot.slane %v788_v0, 4 }
 0x14e   : > { %v786_v13 = vpop.permute.xlu0 %785  ;;  %vm796_vm8 = vcmp.ne.s16.totalorder %v790_v5, 0 }
 0x14f   : > { %v789_v14 = vrot.slane %v786_v13, 4  ;;  %v799_v15 = vsel %vm796_vm8, %v768_v9, 0  ;;  %v4131_v9 = vld [vmem:[#allocation2 + $0x8] sm:$0xff] }
 0x150   : > { %807 = vrot.lane.b32.xlu0 %v799_v15, %s2952_s30  ;;  %v721_v15 = vsel %vm552_vm14, %v717_v56, %v718_v54 }
 0x151   : > { %v792_v7 = vsel %vm552_vm14, %v789_v14, %v790_v5  ;;  %v791_v4 = vsel %vm742_vm2, %v789_v14, %v786_v13  ;;  %v558_v5 = vsel %vm555_vm10, %v4053_v59, 0  ;;  %v722_v37 = vsel %vm719_vm15, %v721_v15, %v4038_v41  ;;  %v988_v15 = vld [vmem:[#allocation2 + $0x14] sm:$0xf] }
 0x152   : > { %v793_v30 = vsel %vm742_vm2, %v792_v7, %v788_v0  ;;  %vm794_vm6 = vcmp.ne.s16.totalorder %v791_v4, 0  ;;  %v554_v0 = vsel %vm550_vm4, %v553_v40, %v4048_v58  ;;  %v934_v4 = vld [vmem:[#allocation2 + $0x14] sm:$0xf] }
 0x153   : > { %v4071_v26 = vpop.permute.xlu1 %849  ;;  %vm795_vm3 = vcmp.ne.s16.totalorder %v793_v30, 0  ;;  %v797_v46 = vsel %vm794_vm6, %v4086_v39, 0  ;;  %vm574_vm6 = vcmask 138240  }
 0x154   : > { %v852_v21 = vrot.slane %v4071_v26, 4  ;;  %568 = vrot.lane.b32.xlu0 %v560_v8, %s2959_s5  ;;  %v798_v34 = vsel %vm795_vm3, %v4084_v36, 0  ;;  %vm556_vm3 = vcmp.ne.s16.totalorder %v554_v0, 0 }
 0x155   : > { %v559_v13 = vsel %vm556_vm3, %v4131_v9, 0  ;;  %vm724_vm3 = vcmp.ne.s16.totalorder %v722_v37, 0 }
 0x156   : > { %vm858_vm0 = vcmp.ne.s16.totalorder %v852_v21, 0 }
 0x157   : > { %v4079_v31 = vpop.permute.xlu0 %847  ;;  %v861_v19 = vsel %vm858_vm0, %v822_v25, 0  ;;  %vm663_vm0 = vcmask 924672  }
 0x158   : > { %v851_v35 = vrot.slane %v4079_v31, 4  ;;  %869 = vrot.lane.b32.xlu1 %v861_v19, %s2955_s22  ;;  %680 = vrot.lane.b32.xlu0 %v672_v33, %s2957_s1  ;;  %v666_v58 = vsel %vm663_vm0, %v665_v2, %v4055_v60  ;;  %v664_v18 = vsel %vm663_vm0, %v661_v38, %v4062_v63  ;;  %v727_v33 = vsel %vm724_vm3, %v4131_v9, 0  ;;  %v884_v38 = vld [vmem:[#allocation2 + $0x14] sm:$0xf] }
 0x159   : > { %v4089_v43 = vpop.permute.xlu1 %899 }
 0x15a   : > { %v902_v44 = vrot.slane %v4089_v43, 4  ;;  %v853_v45 = vsel %vm686_vm1, %v851_v35, %v4079_v31  ;;  %v854_v56 = vsel %vm552_vm14, %v851_v35, %v852_v21 }
 0x15b   : > { %v898_v32 = vpop.permute.xlu0 %897  ;;  %vm856_vm9 = vcmp.ne.s16.totalorder %v853_v45, 0  ;;  %v855_v21 = vsel %vm686_vm1, %v854_v56, %v4071_v26 }
 0x15c   : > { %v901_v47 = vrot.slane %v898_v32, 4  ;;  %805 = vrot.lane.b32.xlu1 %v798_v34, %s2952_s30  ;;  %803 = vrot.lane.b32.xlu0 %v797_v46, %s2952_s30  ;;  %v859_v53 = vsel %vm856_vm9, %v4086_v39, 0  ;;  %vm608_vm9 = vcmp.ne.s16.totalorder %v606_v49, 0 }
 0x15d   : > { %v611_v60 = vsel %vm608_vm9, %v4131_v9, 0 }
 0x15e   : > { %v903_v11 = vsel %vm4759_vm12, %v901_v47, %v898_v32  ;;  %v904_v51 = vsel %vm552_vm14, %v901_v47, %v902_v44 }
 0x15f   : > { %vm906_vm8 = vcmp.ne.s16.totalorder %v903_v11, 0  ;;  %v905_v55 = vsel %vm4759_vm12, %v904_v51, %v4089_v43  ;;  %v4116_v57 = vpop.permute.xlu1 %953  ;;  %v952_v61 = vpop.permute.xlu0 %951  ;;  %v1042_v43 = vld [vmem:[#allocation2 + $0x14] sm:$0xf] }
 0x160   : > { %865 = vrot.lane.b32.xlu1 %v859_v53, %s2955_s22  ;;  %v909_v1 = vsel %vm906_vm8, %v4086_v39, 0  ;;  %vm907_vm5 = vcmp.ne.s16.totalorder %v905_v55, 0  ;;  %v955_v52 = vrot.slane %v952_v61, 4  ;;  %vm668_vm8 = vcmp.ne.s16.totalorder %v666_v58, 0 }
 0x161   : > { %915 = vrot.lane.b32.xlu0 %v909_v1, %s2953_s28  ;;  %v910_v62 = vsel %vm907_vm5, %v4084_v36, 0  ;;  %vm667_vm5 = vcmp.ne.s16.totalorder %v664_v18, 0  ;;  %v956_v7 = vrot.slane %v4116_v57, 4  ;;  %v671_v54 = vsel %vm668_vm8, %v4131_v9, 0 }
 0x162   : > { %v957_v14 = vsel %vm574_vm6, %v955_v52, %v952_v61  ;;  %v670_v25 = vsel %vm667_vm5, %v4053_v59, 0  ;;  %vm857_vm8 = vcmp.ne.s16.totalorder %v855_v21, 0 }
 0x163   : > { %v4127_v3 = vpop.permute.xlu1 %1007  ;;  %vm960_vm10 = vcmp.ne.s16.totalorder %v957_v14, 0  ;;  %vm962_vm9 = vcmp.ne.s16.totalorder %v956_v7, 0  ;;  %v958_v26 = vsel %vm552_vm14, %v955_v52, %v956_v7  ;;  %v860_v34 = vsel %vm857_vm8, %v4084_v36, 0 }
 0x164   : > { %917 = vrot.lane.b32.xlu1 %v910_v62, %s2953_s28  ;;  %v1010_v23 = vrot.slane %v4127_v3, 4  ;;  %v963_v41 = vsel %vm960_vm10, %v4086_v39, 0  ;;  %v965_v35 = vsel %vm962_vm9, %v934_v4, 0  ;;  %vm908_vm10 = vcmp.ne.s16.totalorder %v902_v44, 0 }
 0x165   : > { %564 = vrot.lane.b32.xlu0 %v558_v5, %s2959_s5  ;;  %v4136_v12 = vpop.permute.xlu0 %1005  ;;  %v959_v51 = vsel %vm574_vm6, %v958_v26, %v4116_v57  ;;  %v911_v53 = vsel %vm908_vm10, %v884_v38, 0 }
 0x166   : > { %v1009_v63 = vrot.slane %v4136_v12, 4  ;;  %vm961_vm9 = vcmp.ne.s16.totalorder %v959_v51, 0 }
 0x167   : > { %v964_v0 = vsel %vm961_vm9, %v4084_v36, 0 }
 0x168   : > { %v4147_v16 = vpop.permute.xlu1 %1057  ;;  %566 = vrot.lane.b32.xlu1 %v559_v13, %s2959_s5  ;;  %v1012_v30 = vsel %vm552_vm14, %v1009_v63, %v1010_v23  ;;  %v1011_v44 = vsel %vm550_vm4, %v1009_v63, %v4136_v12 }
 0x169   : > { %618 = vrot.lane.b32.xlu0 %v611_v60, %s2958_s11  ;;  %v1056_v29 = vpop.permute.xlu0 %1055  ;;  %v1013_v19 = vsel %vm550_vm4, %v1012_v30, %v4127_v3  ;;  %v1060_v11 = vrot.slane %v4147_v16, 4  ;;  %v1146_v3 = vld [vmem:[#allocation2 + $0x14] sm:$0xf] }
 0x16a   : > { %v1059_v31 = vrot.slane %v1056_v29, 4  ;;  %vm1015_vm5 = vcmp.ne.s16.totalorder %v1013_v19, 0 }
 0x16b   : > { %v1018_v48 = vsel %vm1015_vm5, %v4084_v36, 0  ;;  %vm1066_vm8 = vcmp.ne.s16.totalorder %v1060_v11, 0  ;;  %vm1014_vm5 = vcmp.ne.s16.totalorder %v1011_v44, 0 }
 0x16c   : > { %v4163_v8 = vpop.permute.xlu1 %1111  ;;  %678 = vrot.lane.b32.xlu1 %v671_v54, %s2957_s1  ;;  %v1061_v45 = vsel %vm603_vm11, %v1059_v31, %v1056_v29  ;;  %v1069_v2 = vsel %vm1066_vm8, %v1042_v43, 0  ;;  %v1062_v5 = vsel %vm552_vm14, %v1059_v31, %v1060_v11  ;;  %v1017_v12 = vsel %vm1014_vm5, %v4086_v39, 0  ;;  %v4242_v31 = vld [vmem:[#allocation2 + $0x10] sm:$0xff] }
 0x16d   : > { %676 = vrot.lane.b32.xlu0 %v670_v25, %s2957_s1  ;;  %v1114_v46 = vrot.slane %v4163_v8, 4  ;;  %vm1064_vm3 = vcmp.ne.s16.totalorder %v1061_v45, 0  ;;  %v1063_v63 = vsel %vm603_vm11, %v1062_v5, %v4147_v16 }
 0x16e   : > { %v1110_v42 = vpop.permute.xlu0 %1109  ;;  %v1067_v1 = vsel %vm1064_vm3, %v4086_v39, 0  ;;  %vm1016_vm3 = vcmp.ne.s16.totalorder %v1010_v23, 0  ;;  %vm1065_vm8 = vcmp.ne.s16.totalorder %v1063_v63, 0 }
 0x16f   : > { %v1113_v47 = vrot.slane %v1110_v42, 4  ;;  %v1019_v37 = vsel %vm1016_vm3, %v988_v15, 0  ;;  %v1068_v30 = vsel %vm1065_vm8, %v4084_v36, 0 }
 0x170   : > { %v4176_v59 = vpop.permute.xlu1 %1161  ;;  %969 = vrot.lane.b32.xlu1 %v963_v41, %s2954_s2 }
 0x171   : > { %734 = vrot.lane.b32.xlu0 %v727_v33, %s2956_s14  ;;  %v1116_v50 = vsel %vm552_vm14, %v1113_v47, %v1114_v46  ;;  %v1164_v60 = vrot.slane %v4176_v59, 4  ;;  %v1115_v23 = vsel %vm663_vm0, %v1113_v47, %v1110_v42 }
 0x172   : > { %v1160_v55 = vpop.permute.xlu0 %1159  ;;  %v1117_v61 = vsel %vm663_vm0, %v1116_v50, %v4163_v8 }
 0x173   : > { %v1163_v57 = vrot.slane %v1160_v55, 4  ;;  %vm1119_vm10 = vcmp.ne.s16.totalorder %v1117_v61, 0  ;;  %vm1170_vm5 = vcmp.ne.s16.totalorder %v1164_v60, 0 }
 0x174   : > { %v4183_v32 = vpop.permute.xlu1 %1215  ;;  %973 = vrot.lane.b32.xlu1 %v965_v35, %s2954_s2  ;;  %v1122_v14 = vsel %vm1119_vm10, %v4084_v36, 0  ;;  %v1173_v4 = vsel %vm1170_vm5, %v1146_v3, 0  ;;  %vm1118_vm10 = vcmp.ne.s16.totalorder %v1115_v23, 0 }
 0x175   : > { %867 = vrot.lane.b32.xlu0 %v860_v34, %s2955_s22  ;;  %v1165_v52 = vsel %vm719_vm15, %v1163_v57, %v1160_v55  ;;  %v1218_v18 = vrot.slane %v4183_v32, 4  ;;  %v1166_v19 = vsel %vm552_vm14, %v1163_v57, %v1164_v60  ;;  %v1121_v35 = vsel %vm1118_vm10, %v4086_v39, 0  ;;  %v1092_v34 = vld [vmem:[#allocation2 + $0x14] sm:$0xf] }
 0x176   : > { %v1214_v49 = vpop.permute.xlu0 %1213  ;;  %vm1168_vm9 = vcmp.ne.s16.totalorder %v1165_v52, 0  ;;  %v1167_v47 = vsel %vm719_vm15, %v1166_v19, %v4176_v59  ;;  %v1304_v19 = vld [vmem:[#allocation2 + $0x18] sm:$0xf] }
 0x177   : > { %v1217_v13 = vrot.slane %v1214_v49, 4  ;;  %v1171_v25 = vsel %vm1168_vm9, %v4086_v39, 0  ;;  %vm1120_vm9 = vcmp.ne.s16.totalorder %v1114_v46, 0  ;;  %vm1169_vm5 = vcmp.ne.s16.totalorder %v1167_v47, 0  ;;  %v1250_v46 = vld [vmem:[#allocation2 + $0x18] sm:$0xf] }
 0x178   : > { %v4195_v40 = vpop.permute.xlu1 %1269  ;;  %1025 = vrot.lane.b32.xlu1 %v1018_v48, %s2959_s5  ;;  %v1123_v11 = vsel %vm1120_vm9, %v1092_v34, 0 }
 0x179   : > { %919 = vrot.lane.b32.xlu0 %v911_v53, %s2953_s28  ;;  %v1220_v56 = vsel %vm552_vm14, %v1217_v13, %v1218_v18  ;;  %v1272_v48 = vrot.slane %v4195_v40, 4  ;;  %v1219_v59 = vsel %vm742_vm2, %v1217_v13, %v1214_v49 }
 0x17a   : > { %v1268_v54 = vpop.permute.xlu0 %1267  ;;  %v1221_v29 = vsel %vm742_vm2, %v1220_v56, %v4183_v32 }
 0x17b   : > { %v1271_v16 = vrot.slane %v1268_v54, 4  ;;  %vm1223_vm3 = vcmp.ne.s16.totalorder %v1221_v29, 0  ;;  %vm1278_vm10 = vcmp.ne.s16.totalorder %v1272_v48, 0 }
 0x17c   : > { %v4207_v62 = vpop.permute.xlu1 %1319  ;;  %1073 = vrot.lane.b32.xlu1 %v1067_v1, %s2958_s11  ;;  %v1226_v26 = vsel %vm1223_vm3, %v4242_v31, 0  ;;  %v1172_v1 = vsel %vm1169_vm5, %v4084_v36, 0  ;;  %vm1222_vm3 = vcmp.ne.s16.totalorder %v1219_v59, 0  ;;  %v1281_v57 = vsel %vm1278_vm10, %v1250_v46, 0 }
 0x17d   : > { %971 = vrot.lane.b32.xlu0 %v964_v0, %s2954_s2  ;;  %v1273_v33 = vsel %vm686_vm1, %v1271_v16, %v1268_v54  ;;  %v1322_v42 = vrot.slane %v4207_v62, 4  ;;  %v1274_v0 = vsel %vm552_vm14, %v1271_v16, %v1272_v48  ;;  %v1225_v49 = vsel %vm1222_vm3, %v4131_v9, 0 }
 0x17e   : > { %v1318_v21 = vpop.permute.xlu0 %1317  ;;  %vm1276_vm8 = vcmp.ne.s16.totalorder %v1273_v33, 0 }
 0x17f   : > { %v1321_v45 = vrot.slane %v1318_v21, 4  ;;  %v1279_v8 = vsel %vm1276_vm8, %v4131_v9, 0  ;;  %vm1224_vm8 = vcmp.ne.s16.totalorder %v1218_v18, 0  ;;  %v1354_v18 = vld [vmem:[#allocation2 + $0x18] sm:$0xf] }
 0x180   : > { %v4214_v58 = vpop.permute.xlu1 %1373  ;;  %1077 = vrot.lane.b32.xlu1 %v1069_v2, %s2958_s11 }
 0x181   : > { %1023 = vrot.lane.b32.xlu0 %v1017_v12, %s2959_s5  ;;  %v1324_v53 = vsel %vm552_vm14, %v1321_v45, %v1322_v42  ;;  %v1200_v12 = vld [vmem:[#allocation2 + $0x18] sm:$0xf]  ;;  %v1376_v13 = vrot.slane %v4214_v58, 4  ;;  %v1323_v32 = vsel %vm4759_vm12, %v1321_v45, %v1318_v21 }
 0x182   : > { %v1325_v50 = vsel %vm4759_vm12, %v1324_v53, %v4207_v62  ;;  %v1227_v63 = vsel %vm1224_vm8, %v1200_v12, 0 }
 0x183   : > { %vm1327_vm9 = vcmp.ne.s16.totalorder %v1325_v50, 0  ;;  %vm1382_vm3 = vcmp.ne.s16.totalorder %v1376_v13, 0 }
 0x184   : > { %v4226_v7 = vpop.permute.xlu1 %1438  ;;  %1129 = vrot.lane.b32.xlu1 %v1122_v14, %s2957_s1  ;;  %v1330_v5 = vsel %vm1327_vm9, %v4242_v31, 0  ;;  %v1275_v14 = vsel %vm686_vm1, %v1274_v0, %v4195_v40  ;;  %vm1326_vm9 = vcmp.ne.s16.totalorder %v1323_v32, 0  ;;  %v1385_v16 = vsel %vm1382_vm3, %v1354_v18, 0 }
 0x185   : > { %1027 = vrot.lane.b32.xlu0 %v1019_v37, %s2959_s5  ;;  %v1441_v2 = vrot.slane %v4226_v7, 4  ;;  %vm1277_vm10 = vcmp.ne.s16.totalorder %v1275_v14, 0 }
 0x186   : > { %v1372_v51 = vpop.permute.xlu0 %1371 }
 0x187   : > { %v1375_v55 = vrot.slane %v1372_v51, 4 }
 0x188   : > { %1177 = vrot.lane.b32.xlu1 %v1171_v25, %s2956_s14  ;;  %v4239_v41 = vpop.permute.xlu1 %1488  ;;  %v1280_v25 = vsel %vm1277_vm10, %v4242_v31, 0 }
 0x189   : > { %1075 = vrot.lane.b32.xlu0 %v1068_v30, %s2958_s11  ;;  %v1377_v61 = vsel %vm574_vm6, %v1375_v55, %v1372_v51  ;;  %v1378_v30 = vsel %vm552_vm14, %v1375_v55, %v1376_v13  ;;  %v1491_v47 = vrot.slane %v4239_v41, 4 }
 0x18a   : > { %vm1380_vm5 = vcmp.ne.s16.totalorder %v1377_v61, 0 }
 0x18b   : > { %v1383_v54 = vsel %vm1380_vm5, %v4131_v9, 0  ;;  %vm1328_vm5 = vcmp.ne.s16.totalorder %v1322_v42, 0 }
 0x18c   : > { %1181 = vrot.lane.b32.xlu1 %v1173_v4, %s2956_s14  ;;  %v1437_v43 = vpop.permute.xlu0 %1436  ;;  %v1329_v4 = vsel %vm1326_vm9, %v4131_v9, 0  ;;  %v1331_v48 = vsel %vm1328_vm5, %v1304_v19, 0  ;;  %vm1497_vm9 = vcmp.ne.s16.totalorder %v1491_v47, 0 }
 0x18d   : > { %1127 = vrot.lane.b32.xlu0 %v1121_v35, %s2957_s1  ;;  %v1440_v52 = vrot.slane %v1437_v43, 4 }
 0x18f   : > { %v4256_v38 = vpop.permute.xlu1 %1542  ;;  %v1443_v37 = vsel %vm552_vm14, %v1440_v52, %v1441_v2  ;;  %v1442_v62 = vsel %vm550_vm4, %v1440_v52, %v1437_v43 }
 0x190   : > { %1233 = vrot.lane.b32.xlu1 %v1226_v26, %s2952_s30  ;;  %v1444_v56 = vsel %vm550_vm4, %v1443_v37, %v4226_v7  ;;  %v1545_v33 = vrot.slane %v4256_v38, 4  ;;  %v1379_v26 = vsel %vm574_vm6, %v1378_v30, %v4214_v58  ;;  %v1473_v58 = vld [vmem:[#allocation2 + $0x18] sm:$0xf] }
 0x191   : > { %1131 = vrot.lane.b32.xlu0 %v1123_v11, %s2957_s1  ;;  %vm1446_vm8 = vcmp.ne.s16.totalorder %v1444_v56, 0  ;;  %vm1381_vm3 = vcmp.ne.s16.totalorder %v1379_v26, 0  ;;  %v1500_v46 = vsel %vm1497_vm9, %v1473_v58, 0 }
 0x192   : > { %v1449_v21 = vsel %vm1446_vm8, %v4242_v31, 0  ;;  %v1384_v51 = vsel %vm1381_vm3, %v4242_v31, 0  ;;  %vm1445_vm8 = vcmp.ne.s16.totalorder %v1442_v62, 0 }
 0x193   : > { %v4269_v44 = vpop.permute.xlu1 %1596  ;;  %v1487_v15 = vpop.permute.xlu0 %1486 }
 0x194   : > { %1285 = vrot.lane.b32.xlu1 %v1279_v8, %s2955_s22  ;;  %v1490_v40 = vrot.slane %v1487_v15, 4 }
 0x195   : > { %1179 = vrot.lane.b32.xlu0 %v1172_v1, %s2956_s14  ;;  %v1448_v1 = vsel %vm1445_vm8, %v4131_v9, 0 }
 0x196   : > { %v1492_v29 = vsel %vm603_vm11, %v1490_v40, %v1487_v15  ;;  %v1493_v50 = vsel %vm552_vm14, %v1490_v40, %v1491_v47 }
 0x197   : > { %v4284_v60 = vpop.permute.xlu1 %1666  ;;  %vm1495_vm10 = vcmp.ne.s16.totalorder %v1492_v29, 0  ;;  %v1523_v29 = vld [vmem:[#allocation2 + $0x18] sm:$0xf] }
 0x198   : > { %1289 = vrot.lane.b32.xlu1 %v1281_v57, %s2955_s22  ;;  %v1498_v11 = vsel %vm1495_vm10, %v4131_v9, 0  ;;  %vm1447_vm10 = vcmp.ne.s16.totalorder %v1441_v2, 0  ;;  %v1408_v57 = vld [vmem:[#allocation2 + $0x18] sm:$0xf]  ;;  %v1669_v61 = vrot.slane %v4284_v60, 4  ;;  %v1599_v2 = vrot.slane %v4269_v44, 4 }
 0x199   : > { %1231 = vrot.lane.b32.xlu0 %v1225_v49, %s2952_s30  ;;  %v1541_v3 = vpop.permute.xlu0 %1540  ;;  %v1450_v7 = vsel %vm1447_vm10, %v1408_v57, 0 }
 0x19a   : > { %v1544_v35 = vrot.slane %v1541_v3, 4  ;;  %vm1605_vm8 = vcmp.ne.s16.totalorder %v1599_v2, 0 }
 0x19c   : > { %1337 = vrot.lane.b32.xlu1 %v1330_v5, %s2953_s28  ;;  %v1547_v42 = vsel %vm552_vm14, %v1544_v35, %v1545_v33  ;;  %v1494_v5 = vsel %vm603_vm11, %v1493_v50, %v4239_v41  ;;  %v1546_v13 = vsel %vm663_vm0, %v1544_v35, %v1541_v3  ;;  %v4364_v3 = vld [vmem:[#allocation2 + $0x14] sm:$0xff]  ;;  %v1647_v50 = vld [vmem:[#allocation2 + $0x1c] sm:$0xf] }
 0x19d   : > { %1235 = vrot.lane.b32.xlu0 %v1227_v63, %s2952_s30  ;;  %v1548_v55 = vsel %vm663_vm0, %v1547_v42, %v4256_v38  ;;  %vm1496_vm9 = vcmp.ne.s16.totalorder %v1494_v5, 0  ;;  %v1577_v63 = vld [vmem:[#allocation2 + $0x18] sm:$0xf] }
 0x19e   : > { %v4297_v23 = vpop.permute.xlu1 %1724  ;;  %vm1550_vm5 = vcmp.ne.s16.totalorder %v1548_v55, 0  ;;  %v1499_v37 = vsel %vm1496_vm9, %v4242_v31, 0  ;;  %v1608_v56 = vsel %vm1605_vm8, %v1577_v63, 0  ;;  %v1759_v63 = vld [vmem:[#allocation2 + $0x1c] sm:$0xf] }
 0x19f   : > { %v1553_v12 = vsel %vm1550_vm5, %v4242_v31, 0  ;;  %vm1549_vm5 = vcmp.ne.s16.totalorder %v1546_v13, 0 }
 0x1a0   : > { %1389 = vrot.lane.b32.xlu1 %v1383_v54, %s2954_s2 }
 0x1a1   : > { %1287 = vrot.lane.b32.xlu0 %v1280_v25, %s2955_s22  ;;  %v1595_v45 = vpop.permute.xlu0 %1594  ;;  %v1552_v25 = vsel %vm1549_vm5, %v4131_v9, 0 }
 0x1a2   : > { %v4311_v34 = vpop.permute.xlu1 %1774  ;;  %v1598_v59 = vrot.slane %v1595_v45, 4 }
 0x1a3   : > { %v1777_v30 = vrot.slane %v4311_v34, 4 }
 0x1a4   : > { %1393 = vrot.lane.b32.xlu1 %v1385_v16, %s2954_s2  ;;  %v1600_v43 = vsel %vm719_vm15, %v1598_v59, %v1595_v45  ;;  %v1601_v40 = vsel %vm552_vm14, %v1598_v59, %v1599_v2 }
 0x1a5   : > { %1335 = vrot.lane.b32.xlu0 %v1329_v4, %s2953_s28  ;;  %v4323_v53 = vpop.permute.xlu0 %1664  ;;  %vm1603_vm3 = vcmp.ne.s16.totalorder %v1600_v43, 0 }
 0x1a6   : > { %v1668_v0 = vrot.slane %v4323_v53, 4  ;;  %v1606_v15 = vsel %vm1603_vm3, %v4131_v9, 0  ;;  %vm1551_vm3 = vcmp.ne.s16.totalorder %v1545_v33, 0  ;;  %v1602_v9 = vsel %vm719_vm15, %v1601_v40, %v4269_v44  ;;  %v4437_v40 = vld [vmem:[%s4927_s18] sm:$0xff] }
 0x1a7   : > { %v1554_v38 = vsel %vm1551_vm3, %v1523_v29, 0  ;;  %vm1604_vm8 = vcmp.ne.s16.totalorder %v1602_v9, 0  ;;  %v1727_v33 = vrot.slane %v4297_v23, 4 }
 0x1a8   : > { %1456 = vrot.lane.b32.xlu1 %v1449_v21, %s2959_s5  ;;  %v4325_v8 = vpop.permute.xlu1 %1828  ;;  %v1671_v14 = vsel %vm552_vm14, %v1668_v0, %v1669_v61  ;;  %v1670_v45 = vsel %vm742_vm2, %v1668_v0, %v4323_v53  ;;  %v1607_v62 = vsel %vm1604_vm8, %v4242_v31, 0 }
 0x1a9   : > { %1339 = vrot.lane.b32.xlu0 %v1331_v48, %s2953_s28  ;;  %v1672_v18 = vsel %vm742_vm2, %v1671_v14, %v4284_v60  ;;  %vm1733_vm5 = vcmp.ne.s16.totalorder %v1727_v33, 0  ;;  %v1831_v60 = vrot.slane %v4325_v8, 4 }
 0x1aa   : > { %vm1674_vm10 = vcmp.ne.s16.totalorder %v1672_v18, 0 }
 0x1ab   : > { %v1677_v35 = vsel %vm1674_vm10, %v4364_v3, 0  ;;  %vm1673_vm10 = vcmp.ne.s16.totalorder %v1670_v45, 0 }
 0x1ac   : > { %1504 = vrot.lane.b32.xlu1 %v1498_v11, %s2958_s11  ;;  %v1701_v11 = vld [vmem:[#allocation2 + $0x1c] sm:$0xf] }
 0x1ad   : > { %1391 = vrot.lane.b32.xlu0 %v1384_v51, %s2954_s2  ;;  %v1723_v49 = vpop.permute.xlu0 %1722  ;;  %v1736_v59 = vsel %vm1733_vm5, %v1701_v11, 0 }
 0x1ae   : > { %v1726_v32 = vrot.slane %v1723_v49, 4 }
 0x1b0   : > { %1508 = vrot.lane.b32.xlu1 %v1500_v46, %s2958_s11  ;;  %v4339_v52 = vpop.permute.xlu1 %620  ;;  %v1728_v16 = vsel %vm686_vm1, %v1726_v32, %v1723_v49  ;;  %v1729_v53 = vsel %vm552_vm14, %v1726_v32, %v1727_v33  ;;  %v1676_v46 = vsel %vm1673_vm10, %v4084_v36, 0  ;;  %vm1837_vm10 = vcmp.ne.s16.totalorder %v1831_v60, 0 }
 0x1b1   : > { %1454 = vrot.lane.b32.xlu0 %v1448_v1, %s2959_s5  ;;  %v4353_v41 = vpop.permute.xlu0 %1772  ;;  %vm1731_vm9 = vcmp.ne.s16.totalorder %v1728_v16, 0  ;;  %v1730_v43 = vsel %vm686_vm1, %v1729_v53, %v4297_v23 }
 0x1b2   : > { %v1776_v4 = vrot.slane %v4353_v41, 4  ;;  %v1734_v44 = vsel %vm1731_vm9, %v4084_v36, 0  ;;  %vm1675_vm9 = vcmp.ne.s16.totalorder %v1669_v61, 0  ;;  %vm1732_vm5 = vcmp.ne.s16.totalorder %v1730_v43, 0 }
 0x1b3   : > { %v1678_v0 = vsel %vm1675_vm9, %v1647_v50, 0  ;;  %vm1783_vm9 = vcmp.ne.s16.totalorder %v1777_v30, 0 }
 0x1b4   : > { %1560 = vrot.lane.b32.xlu1 %v1553_v12, %s2957_s1  ;;  %v1779_v26 = vsel %vm552_vm14, %v1776_v4, %v1777_v30  ;;  %v1778_v61 = vsel %vm4759_vm12, %v1776_v4, %v4353_v41  ;;  %v1809_v12 = vld [vmem:[#allocation2 + $0x1c] sm:$0xf] }
 0x1b5   : > { %1458 = vrot.lane.b32.xlu0 %v1450_v7, %s2959_s5  ;;  %v4356_v54 = vpop.permute.xlu1 %736  ;;  %v1827_v21 = vpop.permute.xlu0 %1826  ;;  %v1780_v58 = vsel %vm4759_vm12, %v1779_v26, %v4311_v34  ;;  %v1735_v7 = vsel %vm1732_vm5, %v4364_v3, 0  ;;  %v1840_v14 = vsel %vm1837_vm10, %v1809_v12, 0  ;;  %vm4929_vm10 = vnez %v4823_v20  ;;  %s2960_s5 = smov [#allocation10]  }
 0x1b6   : > { %v1830_v42 = vrot.slane %v1827_v21, 4  ;;  %vm1782_vm3 = vcmp.ne.s16.totalorder %v1780_v58, 0  ;;  %s2796_s3 = sshll.u32 %s2960_s5, 4  ;;  %s2797_s3 = int_to_ptr.vmem [resolvable:$false] %s2796_s3 }
 0x1b7   : > { %v1785_v57 = vsel %vm1782_vm3, %v4364_v3, 0  ;;  %vm1781_vm3 = vcmp.ne.s16.totalorder %v1778_v61, 0  ;;  %s2798_s26 = scalar_lea.vmem %s2797_s3, 1024 }
 0x1b8   : > { %1612 = vrot.lane.b32.xlu1 %v1606_v15, %s2956_s14  ;;  %v1832_v55 = vsel %vm574_vm6, %v1830_v42, %v1827_v21  ;;  %v1833_v13 = vsel %vm552_vm14, %v1830_v42, %v1831_v60  ;;  %v1784_v41 = vsel %vm1781_vm3, %v4084_v36, 0  ;;  %v624_v21 = vrot.slane %v4339_v52, 4 }
 0x1b9   : > { %1506 = vrot.lane.b32.xlu0 %v1499_v37, %s2958_s11  ;;  %v4372_v19 = vpop.permute.xlu1 %616  ;;  %vm1835_vm8 = vcmp.ne.s16.totalorder %v1832_v55, 0  ;;  %v1834_v32 = vsel %vm574_vm6, %v1833_v13, %v4325_v8  ;;  %vm4930_vm3 = vnez %v4829_v24  ;;  %v740_v24 = vrot.slane %v4356_v54, 4 }
 0x1ba   : > { %v1838_v23 = vsel %vm1835_vm8, %v4084_v36, 0  ;;  %vm2198_vm8 = vcmask 719872   ;;  %vm1836_vm5 = vcmp.ne.s16.totalorder %v1834_v32, 0  ;;  %v622_v9 = vrot.slane %v4372_v19, 4 }
 0x1bc   : > { %1616 = vrot.lane.b32.xlu1 %v1608_v56, %s2956_s14  ;;  %v1786_v56 = vsel %vm1783_vm9, %v1759_v63, 0  ;;  %vm761_vm9 = vmpackc.low %vm4930_vm3, %vm4929_vm10 }
 0x1bd   : > { %1558 = vrot.lane.b32.xlu0 %v1552_v25, %s2957_s1  ;;  %v4387_v48 = vpop.permute.xlu1 %732  ;;  %v2486_v25 = vcombine.high %v4437_v40, %v4437_v40  ;;  %v763_v12 = vsel %vm761_vm9, %v4084_v36, 0 }
 0x1bf   : > { %2544 = vmatprep.mubr.msk.bf16.mxu0 %vm2198_vm8, %v2486_v25  ;;  %2546 = vmatprep.mubr.msk.bf16.mxu1 %vm2198_vm8, %v2486_v25  ;;  %vm4931_vm8 = vnez %v4811_v6 }
 0x1c0   : > { %1684 = vrot.lane.b32.xlu1 %v1677_v35, %s2952_s30 }
 0x1c1   : > { %1562 = vrot.lane.b32.xlu0 %v1554_v38, %s2957_s1  ;;  %v1839_v38 = vsel %vm1836_vm5, %v4364_v3, 0  ;;  %vm4932_vm5 = vnez %v4813_v10  ;;  %s2302_s1 = scalar_lea.sflag [#allocation6], %s3318_s29 }
 0x1c2   : > { %v4383_v47 = vpop.permute.xlu0 %807 }
 0x1c3   : > { %v811_v33 = vrot.slane %v4383_v47, 4  ;;  %v1916_v47 = vld [vmem:[%s4928_s23] sm:$0xff] }
 0x1c4   : > { %1740 = vrot.lane.b32.xlu1 %v1734_v44, %s2955_s22 }
 0x1c5   : > { %1614 = vrot.lane.b32.xlu0 %v1607_v62, %s2956_s14  ;;  %s4940_s14 = sld [smem:[#allocation33_spill]] }
 0x1c6   : > { %v4393_v51 = vpop.permute.xlu0 %568 }
 0x1c7   : > { %v572_v8 = vrot.slane %v4393_v51, 4 }
 0x1c8   : > { %1744 = vrot.lane.b32.xlu1 %v1736_v59, %s2955_s22 }
 0x1c9   : > { %1682 = vrot.lane.b32.xlu0 %v1676_v46, %s2952_s30 }
 0x1ca   : > { %v4402_v1 = vpop.permute.xlu1 %869  ;;  %v4404_v34 = vpop.permute.xlu0 %680 }
 0x1cb   : > { %v684_v61 = vrot.slane %v4404_v34, 4  ;;  %s4600_s7 = scalar_lea.hbm %s4940_s14, %s2550_s10 }
 0x1cc   : > { %1792 = vrot.lane.b32.xlu1 %v1785_v57, %s2953_s28 }
 0x1cd   : > { %1686 = vrot.lane.b32.xlu0 %v1678_v0, %s2952_s30  ;;  %s361_s30 = scalar_lea.vmem [#allocation10], %s2479_s21 }
 0x1ce   : > { %v4414_v49 = vpop.permute.xlu1 %805  ;;  %v4416_v5 = vpop.permute.xlu0 %803 }
 0x1cf   : > { %v810_v45 = vrot.slane %v4414_v49, 4  ;;  %v809_v11 = vrot.slane %v4416_v5, 4 }
 0x1d0   : > { %1844 = vrot.lane.b32.xlu1 %v1838_v23, %s2954_s2 }
 0x1d1   : > { %1742 = vrot.lane.b32.xlu0 %v1735_v7, %s2955_s22  ;;  %v814_v23 = vsel %vm552_vm14, %v810_v45, %v811_v33  ;;  %v812_v20 = vsel %vm552_vm14, %v809_v11, %v810_v45  ;;  %v738_v7 = vrot.slane %v4387_v48, 4 }
 0x1d2   : > { %v4422_v2 = vpop.permute.xlu1 %865  ;;  %v813_v54 = vsel %vm719_vm15, %v4416_v5, %v812_v20 }
 0x1d3   : > { %v4425_v15 = vpop.permute.xlu0 %915  ;;  %v871_v36 = vrot.slane %v4422_v2, 4 }
 0x1d4   : > { %1848 = vrot.lane.b32.xlu1 %v1840_v14, %s2954_s2  ;;  %v815_v14 = vsel %vm719_vm15, %v4414_v49, %v814_v23  ;;  %v921_v63 = vrot.slane %v4425_v15, 4 }
 0x1d5   : > { %1790 = vrot.lane.b32.xlu0 %v1784_v41, %s2953_s28 }
 0x1d6   : > { %v4430_v37 = vpop.permute.xlu1 %917 }
 0x1d7   : > { %v565_v18 = vpop.permute.xlu0 %564  ;;  %v922_v32 = vrot.slane %v4430_v37, 4 }
 0x1d8   : > { %v570_v16 = vrot.slane %v565_v18, 4 }
 0x1d9   : > { %1794 = vrot.lane.b32.xlu0 %v1786_v56, %s2953_s28  ;;  %v924_v45 = vsel %vm552_vm14, %v921_v63, %v922_v32  ;;  %s2318_s28 = sshll.u32 %s361_s30, 4  ;;  %s4602_s28 = int_to_ptr.vmem [resolvable:$true] %s2318_s28 }
 0x1da   : > { %v567_v29 = vpop.permute.xlu1 %566  ;;  %s2792_s11 = scalar_lea.vmem %s4602_s28, 512  ;;  %p2799_p4 = scmp.lt.s32.totalorder %s4602_s28, %s2797_s3 }
 0x1db   : > { %v571_v30 = vrot.slane %v567_v29, 4  ;;  %v619_v4 = vpop.permute.xlu0 %618  ;;  %p2793_p12 = scmp.ne.s32.totalorder %s4602_s28, %s2792_s11  ;;  %p2800_p0 = scmp.lt.s32.totalorder %s2798_s26, %s2792_s11 }
 0x1dc   : > { %v623_v35 = vrot.slane %v619_v4, 4 }
 0x1dd   : > { %1846 = vrot.lane.b32.xlu0 %v1839_v38, %s2954_s2  ;;  %v573_v26 = vsel %vm552_vm14, %v570_v16, %v571_v30  ;;  %v576_v44 = vsel %vm552_vm14, %v571_v30, %v572_v8  ;;  %v873_v38 = vrot.slane %v4402_v1, 4  ;;  %v2497_v1 = vcombine.low %v763_v12, %v815_v14  ;;  %p2794_p5 = pnand %p2793_p12, %p4941_p9  ;;  %p2801_p8 = por %p2800_p0, %p2799_p4 }
 0x1de   : > { %v679_v62 = vpop.permute.xlu1 %678  ;;  %v575_v52 = vsel %vm574_vm6, %v565_v18, %v573_v26  ;;  %v625_v42 = vsel %vm552_vm14, %v622_v9, %v623_v35  ;;  %v628_v58 = vsel %vm552_vm14, %v623_v35, %v624_v21  ;;  %v577_v46 = vsel %vm574_vm6, %v567_v29, %v576_v44 }
 0x1df   : > { %v683_v51 = vrot.slane %v679_v62, 4  ;;  %v677_v53 = vpop.permute.xlu0 %676  ;;  %v627_v59 = vsel %vm4759_vm12, %v4372_v19, %v625_v42  ;;  %v629_v55 = vsel %vm4759_vm12, %v619_v4, %v628_v58  ;;  %vm760_vm12 = vmpackc.low %vm4932_vm5, %vm4931_vm8  ;;  %v2498_v9 = vcombine.high %v763_v12, %v815_v14  ;;  %p2795_p3 = pneg %p2794_p5 }
 0x1e0   : > { %v682_v50 = vrot.slane %v677_v53, 4  ;;  %v2488_v43 = vcombine.high %v575_v52, %v627_v59  ;;  %v2490_v57 = vcombine.high %v577_v46, %v629_v55  ;;  %v2487_v0 = vcombine.low %v575_v52, %v627_v59 }
 0x1e1   : > { %v2489_v60 = vcombine.low %v577_v46, %v629_v55  ;;  %1919 = vperm.xlu0 %2698, %v1916_v47   ;;  %v688_v6 = vsel %vm552_vm14, %v683_v51, %v684_v61  ;;  %v762_v41 = vsel %vm760_vm12, %v4086_v39, 0  ;;  %v925_v58 = vsel %vm603_vm11, %v4425_v15, %v924_v45  ;;  %p2802_p11 = pnand %p2801_p8, %p2795_p3 }
 0x1e2   : > { %v4473_v19 = vpop.permute.xlu1 %969  ;;  %2215 = vmatprep.subr.bf16.mxu0 %v2488_v43  ;;  %2256 = vmatprep.subr.bf16.mxu1 %v2490_v57  ;;  %v685_v10 = vsel %vm552_vm14, %v682_v50, %v683_v51  ;;  %v689_v16 = vsel %vm686_vm1, %v679_v62, %v688_v6  ;;  %v2496_v33 = vcombine.high %v762_v41, %v813_v54  ;;  %vm4933_vm12 = vcmask 130048  }
 0x1e3   : > { %2216 = vmatpush1.bf16.msra.mxu0 %v2487_v0  ;;  %2257 = vmatpush1.bf16.msra.mxu1 %v2489_v60  ;;  %v735_v34 = vpop.permute.xlu0 %734  ;;  %v687_v49 = vsel %vm686_vm1, %v677_v53, %v685_v10  ;;  %v2495_v42 = vcombine.low %v762_v41, %v813_v54  ;;  %v975_v0 = vrot.slane %v4473_v19, 4  ;;  %vm4934_vm10 = vmmov %vm4933_vm12 }
 0x1e4   : > { %v739_v13 = vrot.slane %v735_v34, 4  ;;  %vm4935_vm3 = vmmov %vm4934_vm10 }
 0x1e5   : > { %vm4936_vm9 = vmmov %vm4935_vm3 }
 0x1e6   : > { %v974_v18 = vpop.permute.xlu1 %973  ;;  %v741_v56 = vsel %vm552_vm14, %v738_v7, %v739_v13  ;;  %v744_v25 = vsel %vm552_vm14, %v739_v13, %v740_v24 }
 0x1e7   : > { %v745_v39 = vsel %vm742_vm2, %v735_v34, %v744_v25  ;;  %v868_v29 = vpop.permute.xlu0 %867  ;;  %v743_v5 = vsel %vm742_vm2, %v4387_v48, %v741_v56  ;;  %v977_v24 = vrot.slane %v974_v18, 4 }
 0x1e8   : > { %v2493_v8 = vcombine.low %v689_v16, %v745_v39  ;;  %v2494_v30 = vcombine.high %v689_v16, %v745_v39  ;;  %v872_v4 = vrot.slane %v868_v29, 4  ;;  %v2492_v21 = vcombine.high %v687_v49, %v743_v5 }
 0x1e9   : > { %v2491_v35 = vcombine.low %v687_v49, %v743_v5 }
 0x1ea   : > { %v1026_v26 = vpop.permute.xlu1 %1025  ;;  %v874_v44 = vsel %vm552_vm14, %v871_v36, %v872_v4  ;;  %2217 = vmatprep.subr.bf16.mxu0 %v2492_v21  ;;  %2258 = vmatprep.subr.bf16.mxu1 %v2494_v30  ;;  %v876_v62 = vsel %vm552_vm14, %v872_v4, %v873_v38 }
 0x1eb   : > { %2218 = vmatpush1.bf16.msra.mxu0 %v2491_v35  ;;  %2259 = vmatpush1.bf16.msra.mxu1 %v2493_v8  ;;  %v920_v11 = vpop.permute.xlu0 %919  ;;  %v875_v48 = vsel %vm663_vm0, %v4422_v2, %v874_v44  ;;  %v877_v59 = vsel %vm663_vm0, %v868_v29, %v876_v62  ;;  %v1030_v61 = vrot.slane %v1026_v26, 4 }
 0x1ec   : > { %v923_v52 = vrot.slane %v920_v11, 4  ;;  %2219 = vmatprep.subr.bf16.mxu0 %v2496_v33  ;;  %2260 = vmatprep.subr.bf16.mxu1 %v2498_v9  ;;  %v2500_v53 = vcombine.high %v875_v48, %v925_v58  ;;  %v2499_v57 = vcombine.low %v875_v48, %v925_v58 }
 0x1ee   : > { %v1074_v47 = vpop.permute.xlu1 %1073  ;;  %v926_v51 = vsel %vm552_vm14, %v922_v32, %v923_v52 }
 0x1ef   : > { %2220 = vmatpush1.bf16.msra.mxu0 %v2495_v42  ;;  %2261 = vmatpush1.bf16.msra.mxu1 %v2497_v1  ;;  %v972_v46 = vpop.permute.xlu0 %971  ;;  %v927_v2 = vsel %vm603_vm11, %v4430_v37, %v926_v51  ;;  %v1079_v16 = vrot.slane %v1074_v47, 4 }
 0x1f0   : > { %v976_v55 = vrot.slane %v972_v46, 4  ;;  %2221 = vmatprep.subr.bf16.mxu0 %v2500_v53  ;;  %v2502_v50 = vcombine.high %v877_v59, %v927_v2  ;;  %v2501_v43 = vcombine.low %v877_v59, %v927_v2  ;;  %v1194_v59 = vld [vmem:[#allocation2 + $0x8] sm:$0xff] }
 0x1f2   : > { %v1078_v15 = vpop.permute.xlu1 %1077  ;;  %2262 = vmatprep.subr.bf16.mxu1 %v2502_v50  ;;  %v978_v23 = vsel %vm552_vm14, %v975_v0, %v976_v55  ;;  %v980_v10 = vsel %vm552_vm14, %v976_v55, %v977_v24 }
 0x1f3   : > { %2222 = vmatpush1.bf16.msra.mxu0 %v2499_v57  ;;  %2263 = vmatpush1.bf16.msra.mxu1 %v2501_v43  ;;  %v1024_v60 = vpop.permute.xlu0 %1023  ;;  %v979_v34 = vsel %vm550_vm4, %v4473_v19, %v978_v23  ;;  %v981_v63 = vsel %vm550_vm4, %v972_v46, %v980_v10  ;;  %v1081_v30 = vrot.slane %v1078_v15, 4 }
 0x1f4   : > { %v1029_v20 = vrot.slane %v1024_v60, 4 }
 0x1f6   : > { %v1130_v12 = vpop.permute.xlu1 %1129  ;;  %v1032_v37 = vsel %vm552_vm14, %v1029_v20, %v1030_v61 }
 0x1f7   : > { %v1033_v7 = vsel %vm574_vm6, %v1024_v60, %v1032_v37  ;;  %v1028_v6 = vpop.permute.xlu0 %1027  ;;  %v1134_v29 = vrot.slane %v1130_v12, 4 }
 0x1f8   : > { %v2503_v13 = vcombine.low %v979_v34, %v1033_v7  ;;  %v2504_v14 = vcombine.high %v979_v34, %v1033_v7  ;;  %v1031_v41 = vrot.slane %v1028_v6, 4 }
 0x1fa   : > { %v1178_v54 = vpop.permute.xlu1 %1177  ;;  %v1034_v36 = vsel %vm552_vm14, %v1030_v61, %v1031_v41  ;;  %2223 = vmatprep.subr.bf16.mxu0 %v2504_v14 }
 0x1fb   : > { %2224 = vmatpush1.bf16.msra.mxu0 %v2503_v13  ;;  %v1076_v32 = vpop.permute.xlu0 %1075  ;;  %v1035_v18 = vsel %vm574_vm6, %v1026_v26, %v1034_v36  ;;  %v1183_v62 = vrot.slane %v1178_v54, 4 }
 0x1fc   : > { %v1080_v56 = vrot.slane %v1076_v32, 4  ;;  %v2506_v19 = vcombine.high %v981_v63, %v1035_v18  ;;  %v2505_v25 = vcombine.low %v981_v63, %v1035_v18 }
 0x1fe   : > { %v1182_v49 = vpop.permute.xlu1 %1181  ;;  %2264 = vmatprep.subr.bf16.mxu1 %v2506_v19  ;;  %v1082_v5 = vsel %vm552_vm14, %v1079_v16, %v1080_v56  ;;  %v1084_v33 = vsel %vm552_vm14, %v1080_v56, %v1081_v30 }
 0x1ff   : > { %2265 = vmatpush1.bf16.msra.mxu1 %v2505_v25  ;;  %v1128_v39 = vpop.permute.xlu0 %1127  ;;  %v1083_v9 = vsel %vm4933_vm12, %v1074_v47, %v1082_v5  ;;  %v1085_v52 = vsel %vm4934_vm10, %v1076_v32, %v1084_v33  ;;  %v1185_v58 = vrot.slane %v1182_v49, 4 }
 0x200   : > { %v1133_v8 = vrot.slane %v1128_v39, 4 }
 0x202   : > { %v1234_v4 = vpop.permute.xlu1 %1233  ;;  %v1136_v21 = vsel %vm552_vm14, %v1133_v8, %v1134_v29 }
 0x203   : > { %v1137_v35 = vsel %vm686_vm1, %v1128_v39, %v1136_v21  ;;  %v1132_v38 = vpop.permute.xlu0 %1131  ;;  %v1238_v37 = vrot.slane %v1234_v4, 4 }
 0x204   : > { %v2507_v45 = vcombine.low %v1083_v9, %v1137_v35  ;;  %v2508_v26 = vcombine.high %v1083_v9, %v1137_v35  ;;  %v1135_v44 = vrot.slane %v1132_v38, 4 }
 0x206   : > { %v1286_v11 = vpop.permute.xlu1 %1285  ;;  %v1138_v48 = vsel %vm552_vm14, %v1134_v29, %v1135_v44  ;;  %2225 = vmatprep.subr.bf16.mxu0 %v2508_v26 }
 0x207   : > { %2226 = vmatpush1.bf16.msra.mxu0 %v2507_v45  ;;  %v1180_v1 = vpop.permute.xlu0 %1179  ;;  %v1139_v42 = vsel %vm686_vm1, %v1130_v12, %v1138_v48  ;;  %v1291_v7 = vrot.slane %v1286_v11, 4 }
 0x208   : > { %v1184_v47 = vrot.slane %v1180_v1, 4  ;;  %v2510_v51 = vcombine.high %v1085_v52, %v1139_v42  ;;  %v2509_v53 = vcombine.low %v1085_v52, %v1139_v42 }
 0x20a   : > { %v1290_v46 = vpop.permute.xlu1 %1289  ;;  %v1186_v2 = vsel %vm552_vm14, %v1183_v62, %v1184_v47  ;;  %v1188_v55 = vsel %vm552_vm14, %v1184_v47, %v1185_v58  ;;  %2266 = vmatprep.subr.bf16.mxu1 %v2510_v51 }
 0x20b   : > { %v1189_v50 = vsel %vm742_vm2, %v1180_v1, %v1188_v55  ;;  %2267 = vmatpush1.bf16.msra.mxu1 %v2509_v53  ;;  %v1232_v43 = vpop.permute.xlu0 %1231  ;;  %v1187_v57 = vsel %vm742_vm2, %v1178_v54, %v1186_v2  ;;  %v1293_v10 = vrot.slane %v1290_v46, 4 }
 0x20c   : > { %v2513_v0 = vcombine.low %v1189_v50, %v4242_v31  ;;  %v2514_v15 = vcombine.high %v1189_v50, %v4242_v31  ;;  %v2512_v60 = vcombine.high %v1187_v57, %v1194_v59  ;;  %v2511_v61 = vcombine.low %v1187_v57, %v1194_v59 }
 0x20d   : > { %v1237_v24 = vrot.slane %v1232_v43, 4 }
 0x20e   : > { %v1338_v23 = vpop.permute.xlu1 %1337  ;;  %2227 = vmatprep.subr.bf16.mxu0 %v2512_v60  ;;  %2268 = vmatprep.subr.bf16.mxu1 %v2514_v15 }
 0x20f   : > { %2228 = vmatpush1.bf16.msra.mxu0 %v2511_v61  ;;  %2269 = vmatpush1.bf16.msra.mxu1 %v2513_v0  ;;  %v1236_v20 = vpop.permute.xlu0 %1235  ;;  %v1240_v13 = vsel %vm552_vm14, %v1237_v24, %v1238_v37  ;;  %v1342_v21 = vrot.slane %v1338_v23, 4 }
 0x210   : > { %v1239_v12 = vrot.slane %v1236_v20, 4  ;;  %v1241_v63 = vsel %vm719_vm15, %v1232_v43, %v1240_v13 }
 0x212   : > { %v1390_v34 = vpop.permute.xlu1 %1389  ;;  %v1242_v14 = vsel %vm552_vm14, %v1238_v37, %v1239_v12 }
 0x213   : > { %v1288_v6 = vpop.permute.xlu0 %1287  ;;  %v1243_v32 = vsel %vm719_vm15, %v1234_v4, %v1242_v14  ;;  %v1395_v4 = vrot.slane %v1390_v34, 4 }
 0x214   : > { %v1292_v31 = vrot.slane %v1288_v6, 4 }
 0x216   : > { %v1394_v41 = vpop.permute.xlu1 %1393  ;;  %v1294_v54 = vsel %vm552_vm14, %v1291_v7, %v1292_v31  ;;  %v1296_v36 = vsel %vm552_vm14, %v1292_v31, %v1293_v10 }
 0x217   : > { %v1297_v18 = vsel %vm663_vm0, %v1288_v6, %v1296_v36  ;;  %v1336_v56 = vpop.permute.xlu0 %1335  ;;  %v1295_v19 = vsel %vm663_vm0, %v1286_v11, %v1294_v54  ;;  %v1397_v38 = vrot.slane %v1394_v41, 4 }
 0x218   : > { %v2517_v25 = vcombine.low %v1243_v32, %v1297_v18  ;;  %v2518_v16 = vcombine.high %v1243_v32, %v1297_v18  ;;  %v2516_v49 = vcombine.high %v1241_v63, %v1295_v19  ;;  %v2515_v39 = vcombine.low %v1241_v63, %v1295_v19 }
 0x219   : > { %v1341_v8 = vrot.slane %v1336_v56, 4 }
 0x21a   : > { %v1457_v29 = vpop.permute.xlu1 %1456  ;;  %2229 = vmatprep.subr.bf16.mxu0 %v2516_v49  ;;  %2270 = vmatprep.subr.bf16.mxu1 %v2518_v16 }
 0x21b   : > { %2230 = vmatpush1.bf16.msra.mxu0 %v2515_v39  ;;  %2271 = vmatpush1.bf16.msra.mxu1 %v2517_v25  ;;  %v1340_v5 = vpop.permute.xlu0 %1339  ;;  %v1344_v33 = vsel %vm552_vm14, %v1341_v8, %v1342_v21  ;;  %v1461_v43 = vrot.slane %v1457_v29, 4 }
 0x21c   : > { %v1343_v30 = vrot.slane %v1340_v5, 4  ;;  %v1345_v62 = vsel %vm603_vm11, %v1336_v56, %v1344_v33 }
 0x21e   : > { %v1505_v9 = vpop.permute.xlu1 %1504  ;;  %v1346_v45 = vsel %vm552_vm14, %v1342_v21, %v1343_v30 }
 0x21f   : > { %v1392_v35 = vpop.permute.xlu0 %1391  ;;  %v1347_v52 = vsel %vm603_vm11, %v1338_v23, %v1346_v45  ;;  %v1510_v0 = vrot.slane %v1505_v9, 4 }
 0x220   : > { %v1396_v26 = vrot.slane %v1392_v35, 4 }
 0x222   : > { %v1509_v44 = vpop.permute.xlu1 %1508  ;;  %v1398_v11 = vsel %vm552_vm14, %v1395_v4, %v1396_v26  ;;  %v1400_v48 = vsel %vm552_vm14, %v1396_v26, %v1397_v38 }
 0x223   : > { %v1401_v1 = vsel %vm550_vm4, %v1392_v35, %v1400_v48  ;;  %v1455_v42 = vpop.permute.xlu0 %1454  ;;  %v1399_v58 = vsel %vm550_vm4, %v1390_v34, %v1398_v11  ;;  %v1512_v60 = vrot.slane %v1509_v44, 4 }
 0x224   : > { %v2521_v47 = vcombine.low %v1347_v52, %v1401_v1  ;;  %v2522_v51 = vcombine.high %v1347_v52, %v1401_v1  ;;  %v2520_v53 = vcombine.high %v1345_v62, %v1399_v58  ;;  %v2519_v59 = vcombine.low %v1345_v62, %v1399_v58 }
 0x225   : > { %v1460_v55 = vrot.slane %v1455_v42, 4 }
 0x226   : > { %v1561_v46 = vpop.permute.xlu1 %1560  ;;  %2231 = vmatprep.subr.bf16.mxu0 %v2520_v53  ;;  %2272 = vmatprep.subr.bf16.mxu1 %v2522_v51 }
 0x227   : > { %2232 = vmatpush1.bf16.msra.mxu0 %v2519_v59  ;;  %2273 = vmatpush1.bf16.msra.mxu1 %v2521_v47  ;;  %v1459_v2 = vpop.permute.xlu0 %1458  ;;  %v1463_v61 = vsel %vm552_vm14, %v1460_v55, %v1461_v43  ;;  %v1565_v56 = vrot.slane %v1561_v46, 4 }
 0x228   : > { %v1462_v50 = vrot.slane %v1459_v2, 4  ;;  %v1464_v34 = vsel %vm574_vm6, %v1455_v42, %v1463_v61 }
 0x22a   : > { %v1613_v57 = vpop.permute.xlu1 %1612  ;;  %v1465_v23 = vsel %vm552_vm14, %v1461_v43, %v1462_v50 }
 0x22b   : > { %v1507_v15 = vpop.permute.xlu0 %1506  ;;  %v1466_v7 = vsel %vm574_vm6, %v1457_v29, %v1465_v23  ;;  %v1618_v25 = vrot.slane %v1613_v57, 4  ;;  %vm1639_vm6 = vmpackc.low %vm4920_vm13, %vm4918_vm7  ;;  %vm4937_vm13 = vnez %v4883_v17  ;;  %vm4938_vm7 = vnez %v4885_v22 }
 0x22c   : > { %v1511_v20 = vrot.slane %v1507_v15, 4 }
 0x22e   : > { %v1617_v24 = vpop.permute.xlu1 %1616  ;;  %v1513_v12 = vsel %vm552_vm14, %v1510_v0, %v1511_v20  ;;  %v1515_v37 = vsel %vm552_vm14, %v1511_v20, %v1512_v60 }
 0x22f   : > { %v1516_v6 = vsel %vm4935_vm3, %v1507_v15, %v1515_v37  ;;  %v1559_v10 = vpop.permute.xlu0 %1558  ;;  %v1514_v13 = vsel %vm4936_vm9, %v1505_v9, %v1513_v12  ;;  %v1620_v49 = vrot.slane %v1617_v24, 4  ;;  %v1629_v9 = vld [vmem:[#allocation2 + $0xc] sm:$0xff] }
 0x230   : > { %v2525_v14 = vcombine.low %v1466_v7, %v1516_v6  ;;  %v2526_v31 = vcombine.high %v1466_v7, %v1516_v6  ;;  %v2524_v41 = vcombine.high %v1464_v34, %v1514_v13  ;;  %v2523_v54 = vcombine.low %v1464_v34, %v1514_v13 }
 0x231   : > { %v1564_v32 = vrot.slane %v1559_v10, 4  ;;  %v1641_v52 = vsel %vm1639_vm6, %v1629_v9, 0 }
 0x232   : > { %v1685_v36 = vpop.permute.xlu1 %1684  ;;  %2233 = vmatprep.subr.bf16.mxu0 %v2524_v41  ;;  %2274 = vmatprep.subr.bf16.mxu1 %v2526_v31 }
 0x233   : > { %2234 = vmatpush1.bf16.msra.mxu0 %v2523_v54  ;;  %2275 = vmatpush1.bf16.msra.mxu1 %v2525_v14  ;;  %v1563_v63 = vpop.permute.xlu0 %1562  ;;  %v1567_v39 = vsel %vm552_vm14, %v1564_v32, %v1565_v56  ;;  %v1689_v8 = vrot.slane %v1685_v36, 4 }
 0x234   : > { %v1566_v18 = vrot.slane %v1563_v63, 4  ;;  %v1568_v4 = vsel %vm686_vm1, %v1559_v10, %v1567_v39 }
 0x236   : > { %v1741_v19 = vpop.permute.xlu1 %1740  ;;  %v1569_v29 = vsel %vm552_vm14, %v1565_v56, %v1566_v18 }
 0x237   : > { %v1615_v16 = vpop.permute.xlu0 %1614  ;;  %v1570_v38 = vsel %vm686_vm1, %v1561_v46, %v1569_v29  ;;  %vm1640_vm1 = vmpackc.low %vm4938_vm7, %vm4937_vm13  ;;  %v1746_v43 = vrot.slane %v1741_v19, 4 }
 0x238   : > { %v1619_v5 = vrot.slane %v1615_v16, 4  ;;  %v1642_v59 = vsel %vm1640_vm1, %v4364_v3, 0 }
 0x23a   : > { %v1621_v30 = vsel %vm552_vm14, %v1618_v25, %v1619_v5  ;;  %v1623_v21 = vsel %vm552_vm14, %v1619_v5, %v1620_v49  ;;  %v1745_v35 = vpop.permute.xlu1 %1744 }
 0x23b   : > { %v1624_v33 = vsel %vm742_vm2, %v1615_v16, %v1623_v21  ;;  %v1683_v45 = vpop.permute.xlu0 %1682  ;;  %v1622_v26 = vsel %vm742_vm2, %v1613_v57, %v1621_v30  ;;  %v1748_v3 = vrot.slane %v1745_v35, 4  ;;  %v2485_v21 = vcombine.low %v4437_v40, %v4437_v40 }
 0x23c   : > { %v2529_v44 = vcombine.low %v1570_v38, %v1624_v33  ;;  %v2530_v11 = vcombine.high %v1570_v38, %v1624_v33  ;;  %v1688_v48 = vrot.slane %v1683_v45, 4  ;;  %v2528_v62 = vcombine.high %v1568_v4, %v1622_v26 }
 0x23d   : > { %v2527_v1 = vcombine.low %v1568_v4, %v1622_v26 }
 0x23e   : > { %v1691_v27 = vsel %vm552_vm14, %v1688_v48, %v1689_v8  ;;  %2235 = vmatprep.subr.bf16.mxu0 %v2528_v62  ;;  %2276 = vmatprep.subr.bf16.mxu1 %v2530_v11  ;;  %v1793_v53 = vpop.permute.xlu1 %1792 }
 0x23f   : > { %v1692_v28 = vsel %vm719_vm15, %v1683_v45, %v1691_v27  ;;  %2236 = vmatpush1.bf16.msra.mxu0 %v2527_v1  ;;  %2277 = vmatpush1.bf16.msra.mxu1 %v2529_v44  ;;  %v1687_v42 = vpop.permute.xlu0 %1686  ;;  %v1797_v15 = vrot.slane %v1793_v53, 4 }
 0x240   : > { %v2531_v58 = vcombine.low %v1641_v52, %v1692_v28  ;;  %v2532_v47 = vcombine.high %v1641_v52, %v1692_v28  ;;  %v1690_v51 = vrot.slane %v1687_v42, 4 }
 0x242   : > { %v1693_v46 = vsel %vm552_vm14, %v1689_v8, %v1690_v51  ;;  %2237 = vmatprep.subr.bf16.mxu0 %v2532_v47  ;;  %v1845_v57 = vpop.permute.xlu1 %1844 }
 0x243   : > { %2238 = vmatpush1.bf16.msra.mxu0 %v2531_v58  ;;  %v1743_v2 = vpop.permute.xlu0 %1742  ;;  %v1694_v17 = vsel %vm719_vm15, %v1685_v36, %v1693_v46  ;;  %v1850_v14 = vrot.slane %v1845_v57, 4 }
 0x244   : > { %v1747_v22 = vrot.slane %v1743_v2, 4  ;;  %v2534_v55 = vcombine.high %v1642_v59, %v1694_v17  ;;  %v2533_v50 = vcombine.low %v1642_v59, %v1694_v17 }
 0x246   : > { %2278 = vmatprep.subr.bf16.mxu1 %v2534_v55  ;;  %v1749_v60 = vsel %vm552_vm14, %v1746_v43, %v1747_v22  ;;  %v1751_v37 = vsel %vm552_vm14, %v1747_v22, %v1748_v3  ;;  %v1849_v10 = vpop.permute.xlu1 %1848 }
 0x247   : > { %2279 = vmatpush1.bf16.msra.mxu1 %v2533_v50  ;;  %v1791_v0 = vpop.permute.xlu0 %1790  ;;  %v1750_v20 = vsel %vm663_vm0, %v1741_v19, %v1749_v60  ;;  %v1752_v31 = vsel %vm663_vm0, %v1743_v2, %v1751_v37  ;;  %v1852_v36 = vrot.slane %v1849_v10, 4 }
 0x248   : > { %v1796_v61 = vrot.slane %v1791_v0, 4 }
 0x24a   : > { %v1799_v23 = vsel %vm552_vm14, %v1796_v61, %v1797_v15 }
 0x24b   : > { %v1800_v24 = vsel %vm603_vm11, %v1791_v0, %v1799_v23  ;;  %v1795_v12 = vpop.permute.xlu0 %1794 }
 0x24c   : > { %v2535_v34 = vcombine.low %v1750_v20, %v1800_v24  ;;  %v2536_v7 = vcombine.high %v1750_v20, %v1800_v24  ;;  %v1798_v6 = vrot.slane %v1795_v12, 4 }
 0x24e   : > { %v1801_v13 = vsel %vm552_vm14, %v1797_v15, %v1798_v6  ;;  %2239 = vmatprep.subr.bf16.mxu0 %v2536_v7 }
 0x24f   : > { %2240 = vmatpush1.bf16.msra.mxu0 %v2535_v34  ;;  %v1847_v41 = vpop.permute.xlu0 %1846  ;;  %v1802_v54 = vsel %vm603_vm11, %v1793_v53, %v1801_v13 }
 0x250   : > { %v1851_v63 = vrot.slane %v1847_v41, 4  ;;  %v2538_v32 = vcombine.high %v1752_v31, %v1802_v54  ;;  %v2537_v18 = vcombine.low %v1752_v31, %v1802_v54 }
 0x252   : > { %v1853_v56 = vsel %vm552_vm14, %v1850_v14, %v1851_v63  ;;  %v1855_v19 = vsel %vm552_vm14, %v1851_v63, %v1852_v36  ;;  %2280 = vmatprep.subr.bf16.mxu1 %v2538_v32 }
 0x253   : > { %v1856_v25 = vsel %vm550_vm4, %v1847_v41, %v1855_v19  ;;  %2281 = vmatpush1.bf16.msra.mxu1 %v2537_v18  ;;  %v1854_v16 = vsel %vm550_vm4, %v1845_v57, %v1853_v56 }
 0x254   : > { %v2541_v49 = vcombine.low %v1856_v25, %v1856_v25  ;;  %v2542_v39 = vcombine.high %v1856_v25, %v1856_v25  ;;  %v2540_v29 = vcombine.high %v1854_v16, %v1854_v16  ;;  %v2539_v5 = vcombine.low %v1854_v16, %v1854_v16 }
 0x256   : > { %2543 = vmatprep.subr.msk.bf16.mxu0 %vm552_vm14, %v2540_v29  ;;  %2545 = vmatprep.subr.msk.bf16.mxu1 %vm552_vm14, %v2542_v39  ;;  %v2204_v8 = vsel %vm552_vm14, %v2539_v5, 0  ;;  %v2210_v30 = vsel %vm552_vm14, %v2541_v49, 0 }
 0x257   : > { %2242 = vmatpush1.bf16.msra.mxu0 %v2204_v8  ;;  %2283 = vmatpush1.bf16.msra.mxu1 %v2210_v30 }
 0x25a   : > { %2248 = vmatmul.mubr.bf16.vlgmr.msra.gmra.mrb[0].mxu0 %v2485_v21  ;;  %2289 = vmatmul.mubr.bf16.vlgmr.msra.gmra.mrb[0].mxu1 %v2485_v21 }
 0x260   : > { %v1920_v9 = vpop.permute.xlu0 %1919 }
 0x32d   : > { %v2249_v4 = vpop.f32.mrb[0].mxu0  ;;  %v2290_v35 = vpop.f32.mrb[0].mxu1 }
 0x32e   : > { %v2250_v38 = vadd.f32 %v2249_v4, %v1920_v9  ;;  %v2291_v33 = vadd.f32 %v2290_v35, %v1920_v9  ;;  %v2251_v45 = vpop.f32.mrb[1].mxu0  ;;  %v2292_v26 = vpop.f32.mrb[1].mxu1 }
 0x32f   : > { %v2252_v40 = vadd.f32 %v2251_v45, %v1920_v9  ;;  %v2293_v44 = vadd.f32 %v2292_v26, %v1920_v9  ;;  %v2253_v11 = vpop.f32.mrb[2].mxu0  ;;  %v2294_v48 = vpop.f32.mrb[2].mxu1 }
 0x330   : > { %2297 = vst [vmem:[%s361_s30] sm:$0xff] %v2250_v38  ;;  %2299 = vst [vmem:[%s361_s30 + $0x10] sm:$0xff] %v2291_v33  ;;  %v2254_v62 = vpop.f32.mrb[3].mxu0  ;;  %v2295_v52 = vpop.f32.mrb[3].mxu1 }
 0x331   : > { %2298 = vst [vmem:[%s361_s30 + $0x8] sm:$0xff] %v2252_v40  ;;  %2300 = vst [vmem:[%s361_s30 + $0x18] sm:$0xff] %v2293_v44 }
 0x332   : > { %2805 = shalt.err (!%p2802_p11)
}
 0x333   : > { %s2806_s29 = scalar_lea.hbm %s4600_s7, 512  ;;  %s2810_s18 = scalar_lea.hbm %s4940_s14, 2048 }
 0x334   : > { %p2807_p2 = scmp.ne.s32.totalorder %s4600_s7, %s2806_s29  ;;  %p2811_p6 = scmp.lt.u32.totalorder %s4600_s7, %s4940_s14 }
 0x335   : > { %p2812_p13 = scmp.lt.u32.totalorder %s2810_s18, %s2806_s29  ;;  %p2814_p12 = scmp.lt.u32.totalorder %s2806_s29, %s4600_s7 }
 0x336   : > { %p2808_p1 = pnand %p2807_p2, %p4941_p9 }
 0x337   : > { %p2813_p10 = por %p2812_p13, %p2811_p6 }
 0x338   : > { %p2809_p7 = pneg %p2808_p1 }
 0x339   : > { %p2815_p5 = por %p2814_p12, %p2813_p10 }
 0x33b   : > { %p2816_p3 = pnand %p2815_p5, %p2809_p7 }
 0x33d   : > { %2819 = shalt.err (!%p2816_p3)
}
 0x33e   : > { %2559 = dma.vmem_to_hbm [thread:$0]  (%p4941_p9), %s4602_s28, 512, %s4600_s7, %s2302_s1  }
 0x33f PF: > { %s4942_s23 = sld [smem:[#allocation27_spill]]  ;;  %p2576_p4 = scmp.ge.s32.totalorder %s2946_s6, 2 }
 0x340   : > { %s2330_s27 = sand.u32 1, %s2918_s24  }
 0x341   : > { %s2331_s21 = scalar_lea.sflag [#allocation6], %s2330_s27 }
 0x345   : > { %p4943_p0 = scmp.ne.s32.totalorder %s4942_s23, 0 }
 0x347   : > { %p2572_p8 = pnand %p2576_p4, %p4943_p0 }
 0x349   : > { %2889 = dma.done.wait (!%p2572_p8), %s2331_s21, 512  }
 0x34a   : > { %2891 = vsyncadd (!%p2572_p8), %s2331_s21, 4294966784  ;;  %s24_s6 = sadd.s32 1, %s2946_s6   ;;  %s4945_s21 = sld [smem:[#allocation15_spill]] }
 0x34b   : > { %p4631_p11 = scmp.ge.s32.totalorder %s24_s6, 6   ;;  %s4946_s22 = sld [smem:[#allocation16_spill]] }
 0x34c   : > { %s4947_s23 = sld [smem:[#allocation25_spill]]  ;;  %s4948_s16 = sld [smem:[#allocation17_spill]] }
 0x34d   : > { %s4949_s26 = sld [smem:[#allocation26_spill]]  ;;  %s4950_s27 = sld [smem:[#allocation20_spill]] }
 0x34e   : > { %s4951_s28 = sld [smem:[#allocation21_spill]]  ;;  %s4952_s29 = sld [smem:[#allocation22_spill]] }
 0x34f   : > { %s4953_s30 = sld [smem:[#allocation23_spill]]  ;;  %s4954_s18 = smov %s2898_s19 }
 0x350   : > { %s4955_s19 = smov %s2902_s20  ;;  %s4956_s20 = smov %s3272_s13 }
 0x351   : > { %s4957_s24 = smov %s2922_s25  ;;  %23 = sbr.rel (!%p4631_p11) target bundleno = 19 (0x13), region = 109 }
 0x352   : > { %s4958_s25 = smov %s4948_s16 }
 0x358   :  { %2336 = vsyncpa [#allocation5], 1 }
 0x359   :  { %2338 = vsyncpa [#allocation5 + $0x1], 1 }
 0x35a   :  { %2339 = vsyncpa [#allocation8], 1 }
 0x35b   :  { %2341 = vsyncpa [#allocation8 + $0x1], 1 }
 0x35c   :  { %2342 = vsyncpa [#allocation6], 1 }
 0x35d   :  { %2344 = vsyncpa [#allocation6 + $0x1], 1 }

</bundles_post_ra>
